<compile_context>
chip_gen: v7x
topology: tpu7x:2x2x1
jax: 0.10.0
libtpu: 0.0.40
codegen_flags: <defaults>
</compile_context>

<pallas_src>
import functools
import math

import jax
import jax.numpy as jnp
from jax.experimental import pallas as pl
from jax.experimental.pallas import tpu as pltpu


# ---------------------------------------------------------------------------
# One fused kernel: conv stem (layer 0) + all encoder layers + fc head.
# ---------------------------------------------------------------------------
def _fused_vit_kernel(patches_ref, conv_w_ref, pool_ref, stem_vecs_ref,
                      wqkv_ref, wo_ref, ff1_w_ref, ff1_b_ref, ff2_w_ref,
                      vecs_ref, fc_w_ref, fc_b_ref,
                      o_ref, h_ref,
                      *, B, S, T, T_pad, D, nhead, eps):
    # patches_ref:   (B*S*P, Kpad) bf16   im2col patches (all batch elements)
    # conv_w_ref:    (Kpad, D)     bf16   conv taps
    # pool_ref:      (B*S, B*S*P)  bf16   block-diagonal 1/P pooling matrix
    # stem_vecs_ref: (2+S, D) f32  [conv_b ; cls_token+pe[0] ; pe[1:T]]
    # wqkv_ref:      (D, 3D) bf16  fused q|k|v projection for this layer
    # wo_ref:        (D, D)  bf16  output projection
    # ff1_w_ref:     (D, d_ff) bf16 ;  ff1_b_ref: (1, d_ff) f32
    # ff2_w_ref:     (d_ff, D) bf16
    # vecs_ref:      (9, D) f32   [bq, bk, bv, bo, ln1_g, ln1_b, ff2_b, ln2_g, ln2_b]
    # fc_w_ref:      (D, 128) bf16 ;  fc_b_ref: (1, 128) f32
    # o_ref:         (B, 128) f32  lane-dense logits (padded classes)
    # h_ref:         (B*T_pad, D) f32  resident token activations
    layer = pl.program_id(0)
    dh = D // nhead
    scale = 1.0 / math.sqrt(dh)

    # -------- layer 0: fused conv stem + cls token + positional encoding ----
    @pl.when(layer == 0)
    def _():
        x = jnp.dot(patches_ref[...], conv_w_ref[...],
                    preferred_element_type=jnp.float32)          # (B*S*P, D)
        x = jnp.maximum(x + stem_vecs_ref[0:1, :], 0.0)          # bias + ReLU
        # GAP as a pooling matmul on the MXU (block-diag 1/P matrix).
        feats = jnp.dot(pool_ref[...], x.astype(jnp.bfloat16),
                        preferred_element_type=jnp.float32)      # (B*S, D)
        cls = stem_vecs_ref[1:2, :]                              # cls + pe[0]
        pe = stem_vecs_ref[2:2 + S, :]                           # pe[1:T]
        rows = []
        for b in range(B):                                       # static
            rows.append(cls)
            rows.append(feats[b * S:(b + 1) * S, :] + pe)
            if T_pad > T:
                rows.append(jnp.zeros((T_pad - T, D), jnp.float32))
        h_ref[...] = jnp.concatenate(rows, axis=0)               # one store

    h = h_ref[...]                                               # (B*T_pad, D)
    hb = h.astype(jnp.bfloat16)

    # -------- multi-head self-attention: one fused QKV matmul ---------------
    qkv = jnp.dot(hb, wqkv_ref[...], preferred_element_type=jnp.float32)
    q = qkv[:, 0:D] + vecs_ref[0:1, :]
    k = qkv[:, D:2 * D] + vecs_ref[1:2, :]
    v = qkv[:, 2 * D:3 * D] + vecs_ref[2:3, :]

    key_valid = jax.lax.broadcasted_iota(jnp.int32, (1, 1, T_pad), 2) < T
    heads = []
    for hh in range(nhead):                                      # static unroll
        sl = slice(hh * dh, (hh + 1) * dh)
        qh = q[:, sl].reshape(B, T_pad, dh)
        kh = k[:, sl].reshape(B, T_pad, dh)
        vh = v[:, sl].reshape(B, T_pad, dh)
        s = jnp.einsum("bqd,bkd->bqk", qh, kh,
                       preferred_element_type=jnp.float32) * scale
        s = jnp.where(key_valid, s, -1e30)                       # mask pad keys
        s = s - jnp.max(s, axis=-1, keepdims=True)
        p = jnp.exp(s)
        p = p * pl.reciprocal(jnp.sum(p, axis=-1, keepdims=True), approx=True)
        oh = jnp.einsum("bqk,bkd->bqd", p, vh,
                        preferred_element_type=jnp.float32)      # (B, T_pad, dh)
        heads.append(oh.reshape(B * T_pad, dh))
    attn_in = jnp.concatenate(heads, axis=-1).astype(jnp.bfloat16)
    attn = jnp.dot(attn_in, wo_ref[...],
                   preferred_element_type=jnp.float32) + vecs_ref[3:4, :]

    # -------- residual + LayerNorm 1 (post-norm, biased var) ----------------
    y = h + attn
    mu = jnp.mean(y, axis=-1, keepdims=True)
    var = jnp.mean(jnp.square(y - mu), axis=-1, keepdims=True)
    y = (y - mu) * jax.lax.rsqrt(var + eps) * vecs_ref[4:5, :] + vecs_ref[5:6, :]

    # -------- feed-forward (ReLU); bf16 MXU operands, f32 accumulation ------
    ff = jnp.dot(y.astype(jnp.bfloat16), ff1_w_ref[...],
                 preferred_element_type=jnp.float32) + ff1_b_ref[...]
    ff = jnp.maximum(ff, 0.0)
    ff = jnp.dot(ff.astype(jnp.bfloat16), ff2_w_ref[...],
                 preferred_element_type=jnp.float32) + vecs_ref[6:7, :]

    # -------- residual + LayerNorm 2 -----------------------------------------
    z = y + ff
    mu2 = jnp.mean(z, axis=-1, keepdims=True)
    var2 = jnp.mean(jnp.square(z - mu2), axis=-1, keepdims=True)
    z = (z - mu2) * jax.lax.rsqrt(var2 + eps) * vecs_ref[7:8, :] + vecs_ref[8:9, :]

    h_ref[...] = z

    # -------- classification head on cls tokens, fused into last layer -------
    @pl.when(layer == pl.num_programs(0) - 1)
    def _():
        cls_rows = jnp.concatenate(
            [z[b * T_pad:b * T_pad + 1, :] for b in range(B)], axis=0)  # (B, D)
        logits = jnp.dot(cls_rows.astype(jnp.bfloat16), fc_w_ref[...],
                         preferred_element_type=jnp.float32) + fc_b_ref[...]
        o_ref[...] = logits                                      # (B, 128) dense


def pallas_vit_forward(patches, conv_w, pool, stem_vecs, enc, fc_w, fc_b,
                       *, B, S, T, T_pad, nhead):
    D = conv_w.shape[1]
    L = enc["wqkv"].shape[0]
    d_ff = enc["ff1_w"].shape[2]
    n_cls_pad = fc_w.shape[1]

    kernel = functools.partial(_fused_vit_kernel, B=B, S=S, T=T, T_pad=T_pad,
                               D=D, nhead=nhead, eps=1e-5)
    return pl.pallas_call(
        kernel,
        out_shape=jax.ShapeDtypeStruct((B, n_cls_pad), jnp.float32),
        grid_spec=pltpu.PrefetchScalarGridSpec(
            num_scalar_prefetch=0,
            grid=(L,),
            in_specs=[
                # stem inputs: constant block index -> DMA'd once, kept resident
                pl.BlockSpec(patches.shape, lambda l: (0, 0)),
                pl.BlockSpec(conv_w.shape, lambda l: (0, 0)),
                pl.BlockSpec(pool.shape, lambda l: (0, 0)),
                pl.BlockSpec(stem_vecs.shape, lambda l: (0, 0)),
                # per-layer stacked weights: streamed (double-buffered) over l
                pl.BlockSpec((None, D, 3 * D), lambda l: (l, 0, 0)),
                pl.BlockSpec((None, D, D), lambda l: (l, 0, 0)),
                pl.BlockSpec((None, D, d_ff), lambda l: (l, 0, 0)),
                pl.BlockSpec((None, 1, d_ff), lambda l: (l, 0, 0)),
                pl.BlockSpec((None, d_ff, D), lambda l: (l, 0, 0)),
                pl.BlockSpec((None, 9, D), lambda l: (l, 0, 0)),
                # classification head: constant, resident
                pl.BlockSpec(fc_w.shape, lambda l: (0, 0)),
                pl.BlockSpec(fc_b.shape, lambda l: (0, 0)),
            ],
            out_specs=pl.BlockSpec((B, n_cls_pad), lambda l: (0, 0)),
            scratch_shapes=[pltpu.VMEM((B * T_pad, D), jnp.float32)]),
        compiler_params=pltpu.CompilerParams(
            dimension_semantics=("arbitrary",)),
    )(patches, conv_w, pool, stem_vecs,
      enc["wqkv"], enc["wo"], enc["ff1_w"], enc["ff1_b"], enc["ff2_w"],
      enc["vecs"], fc_w, fc_b)


# ------------------------------- JAX glue -----------------------------------
def im2col3x3(x_nhwc):
    """3x3, stride 1, pad 1 im2col.  (N,H,W,C) -> (N, H*W, 9*C)."""
    n, h, w, c = x_nhwc.shape
    xp = jnp.pad(x_nhwc, ((0, 0), (1, 1), (1, 1), (0, 0)))
    cols = [xp[:, dy:dy + h, dx:dx + w, :] for dy in range(3) for dx in range(3)]
    p = jnp.stack(cols, axis=3)                    # (N, H, W, 9, C)
    return p.reshape(n, h * w, 9 * c)


def make_positional_encoding(max_len, d_model):
    """Identical to PositionalEncoding.pe (sin on even, cos on odd dims)."""
    position = jnp.arange(max_len, dtype=jnp.float32)[:, None]
    div_term = jnp.exp(jnp.arange(0, d_model, 2, dtype=jnp.float32)
                       * (-math.log(10000.0) / d_model))
    pe = jnp.zeros((max_len, d_model), jnp.float32)
    pe = pe.at[:, 0::2].set(jnp.sin(position * div_term))
    pe = pe.at[:, 1::2].set(jnp.cos(position * div_term))
    return pe[None]                                # (1, max_len, d_model)


def init_params(key, *, c, d_model, nhead, num_layers, d_ff, num_classes,
                max_len=50, n_cls_pad=128):
    assert d_model % nhead == 0
    cnt = [0]

    def nxt():
        cnt[0] += 1
        return jax.random.fold_in(key, cnt[0])

    def nrm(shape, dtype=jnp.float32, scale=0.02):
        return (scale * jax.random.normal(nxt(), shape)).astype(dtype)

    k_taps = 9 * c
    k_pad = max(32, ((k_taps + 7) // 8) * 8)       # pad contraction dim
    conv_w = jnp.zeros((k_pad, d_model), jnp.float32)
    conv_w = conv_w.at[:k_taps].set(0.02 * jax.random.normal(nxt(),
                                                             (k_taps, d_model)))

    # packed per-layer small vectors:
    # rows = [bq, bk, bv, bo, ln1_g, ln1_b, ff2_b, ln2_g, ln2_b]
    vecs = jnp.zeros((num_layers, 9, d_model), jnp.float32)
    vecs = vecs.at[:, 4, :].set(1.0)               # ln1 gamma
    vecs = vecs.at[:, 7, :].set(1.0)               # ln2 gamma

    fc_w = jnp.zeros((d_model, n_cls_pad), jnp.float32)
    fc_w = fc_w.at[:, :num_classes].set(
        0.02 * jax.random.normal(nxt(), (d_model, num_classes)))

    params = {
        "conv_w": conv_w.astype(jnp.bfloat16),
        "conv_b": jnp.zeros((1, d_model), jnp.float32),
        "cls_token": jnp.zeros((1, 1, d_model), jnp.float32),   # as in module
        "pe": make_positional_encoding(max_len, d_model),
        "fc_w": fc_w.astype(jnp.bfloat16),                      # lane-padded
        "fc_b": jnp.zeros((1, n_cls_pad), jnp.float32),
        "enc": {
            "wqkv": nrm((num_layers, d_model, 3 * d_model), jnp.bfloat16),
            "wo": nrm((num_layers, d_model, d_model), jnp.bfloat16),
            "ff1_w": nrm((num_layers, d_model, d_ff), jnp.bfloat16),
            "ff1_b": jnp.zeros((num_layers, 1, d_ff), jnp.float32),
            "ff2_w": nrm((num_layers, d_ff, d_model), jnp.bfloat16),
            "vecs": vecs,
        },
    }
    return params


def forward(params, x, *, nhead, num_classes):
    B, S, C, H, W = x.shape
    D = params["conv_w"].shape[1]
    k_pad = params["conv_w"].shape[0]
    P = H * W
    T = S + 1
    T_pad = ((T + 7) // 8) * 8                     # pad tokens to full sublanes

    # ---- CNN stem inputs: NCHW -> NHWC -> im2col, pad taps, bf16 operands ---
    frames = x.reshape(B * S, C, H, W).transpose(0, 2, 3, 1)
    patches = im2col3x3(frames)                    # (B*S, P, 9C)
    patches = jnp.pad(patches,
                      ((0, 0), (0, 0), (0, k_pad - patches.shape[-1])))
    patches = patches.reshape(B * S * P, k_pad).astype(jnp.bfloat16)

    # block-diagonal 1/P pooling matrix -> GAP as an MXU matmul in-kernel
    pool = (jnp.repeat(jnp.eye(B * S, dtype=jnp.float32), P, axis=1)
            / P).astype(jnp.bfloat16)              # (B*S, B*S*P)

    pe = params["pe"][0]                           # (max_len, D)
    cls_pe = params["cls_token"][0] + pe[0:1]      # (1, D)
    stem_vecs = jnp.concatenate([params["conv_b"], cls_pe, pe[1:T]], axis=0)

    logits = pallas_vit_forward(patches, params["conv_w"], pool, stem_vecs,
                                params["enc"], params["fc_w"], params["fc_b"],
                                B=B, S=S, T=T, T_pad=T_pad, nhead=nhead)
    return logits[:, :num_classes]                 # (B, num_classes)


# ----------------------------------- main ------------------------------------
if __name__ == "__main__":
    B, S, C, H, W = 2, 4, 3, 16, 16
    d_model, nhead, num_layers, num_classes = 32, 4, 2, 2
    d_ff = 2048   # nn.TransformerEncoderLayer default dim_feedforward

    key = jax.random.PRNGKey(0)
    pkey, xkey = jax.random.split(key)
    params = init_params(pkey, c=C, d_model=d_model, nhead=nhead,
                         num_layers=num_layers, d_ff=d_ff,
                         num_classes=num_classes)
    x = jax.random.normal(xkey, (B, S, C, H, W), dtype=jnp.float32)

    fwd = jax.jit(functools.partial(forward, nhead=nhead,
                                    num_classes=num_classes))
    out = fwd(params, x)
    jax.block_until_ready(out)
    assert out.shape == (B, num_classes) and out.dtype == jnp.float32
    print("KERNEL_OK")
</pallas_src>

<mosaic_0001>
module attributes {stable_mosaic.version = 11 : i64} {
  func.func @_fused_vit_kernel(%arg0: i32, %arg1: memref<2048x32xbf16, #tpu.memory_space<vmem>>, %arg2: memref<32x32xbf16, #tpu.memory_space<vmem>>, %arg3: memref<8x2048xbf16, #tpu.memory_space<vmem>>, %arg4: memref<6x32xf32, #tpu.memory_space<vmem>>, %arg5: memref<1x32x96xbf16, #tpu.memory_space<vmem>>, %arg6: memref<1x32x32xbf16, #tpu.memory_space<vmem>>, %arg7: memref<1x32x2048xbf16, #tpu.memory_space<vmem>>, %arg8: memref<1x1x2048xf32, #tpu.memory_space<vmem>>, %arg9: memref<1x2048x32xbf16, #tpu.memory_space<vmem>>, %arg10: memref<1x9x32xf32, #tpu.memory_space<vmem>>, %arg11: memref<32x128xbf16, #tpu.memory_space<vmem>>, %arg12: memref<1x128xf32, #tpu.memory_space<vmem>>, %arg13: memref<2x128xf32, #tpu.memory_space<vmem>>, %arg14: memref<16x32xf32, #tpu.memory_space<vmem>>) attributes {dimension_semantics = [#tpu.dimension_semantics<arbitrary>], iteration_bounds = array<i64: 2>, scalar_prefetch = 0 : i64, scratch_operands = 1 : i64, tpu.core_type = #tpu.core_type<tc>, window_params = [{pipeline_mode = #tpu.pipeline_mode<synchronous>, transform_indices = @transform_0, window_bounds = array<i64: 2048, 32>}, {pipeline_mode = #tpu.pipeline_mode<synchronous>, transform_indices = @transform_1, window_bounds = array<i64: 32, 32>}, {pipeline_mode = #tpu.pipeline_mode<synchronous>, transform_indices = @transform_2, window_bounds = array<i64: 8, 2048>}, {pipeline_mode = #tpu.pipeline_mode<synchronous>, transform_indices = @transform_3, window_bounds = array<i64: 6, 32>}, {transform_indices = @transform_4, window_bounds = array<i64: 1, 32, 96>}, {transform_indices = @transform_5, window_bounds = array<i64: 1, 32, 32>}, {transform_indices = @transform_6, window_bounds = array<i64: 1, 32, 2048>}, {transform_indices = @transform_7, window_bounds = array<i64: 1, 1, 2048>}, {transform_indices = @transform_8, window_bounds = array<i64: 1, 2048, 32>}, {transform_indices = @transform_9, window_bounds = array<i64: 1, 9, 32>}, {pipeline_mode = #tpu.pipeline_mode<synchronous>, transform_indices = @transform_10, window_bounds = array<i64: 32, 128>}, {pipeline_mode = #tpu.pipeline_mode<synchronous>, transform_indices = @transform_11, window_bounds = array<i64: 1, 128>}, {pipeline_mode = #tpu.pipeline_mode<synchronous>, transform_indices = @transform_12, window_bounds = array<i64: 2, 128>}]} {
    %c0_i32 = arith.constant 0 : i32
    %0 = arith.cmpi eq, %arg0, %c0_i32 : i32
    %1 = arith.extui %0 : i1 to i32
    %c0_i32_0 = arith.constant 0 : i32
    %2 = arith.cmpi ne, %1, %c0_i32_0 : i32
    scf.if %2 {
      %c0_77 = arith.constant 0 : index
      %c0_78 = arith.constant 0 : index
      %211 = vector.load %arg1[%c0_77, %c0_78] : memref<2048x32xbf16, #tpu.memory_space<vmem>>, vector<2048x32xbf16>
      %c0_79 = arith.constant 0 : index
      %c0_80 = arith.constant 0 : index
      %212 = vector.load %arg2[%c0_79, %c0_80] : memref<32x32xbf16, #tpu.memory_space<vmem>>, vector<32x32xbf16>
      %cst_81 = arith.constant dense<0.000000e+00> : vector<2048x32xf32>
      %213 = tpu.matmul %211, %212, %cst_81 {dimension_numbers = #tpu.dot_dimension_numbers<[1], [0], [0], [1], [0, 0, 1, 1], [], []>} : vector<2048x32xbf16>, vector<32x32xbf16>, vector<2048x32xf32> -> vector<2048x32xf32>
      %c0_82 = arith.constant 0 : index
      %c0_83 = arith.constant 0 : index
      %214 = vector.load %arg4[%c0_82, %c0_83] : memref<6x32xf32, #tpu.memory_space<vmem>>, vector<1x32xf32>
      %215 = vector.broadcast %214 : vector<1x32xf32> to vector<2048x32xf32>
      %216 = arith.addf %213, %215 : vector<2048x32xf32>
      %cst_84 = arith.constant 0.000000e+00 : f32
      %217 = vector.broadcast %cst_84 : f32 to vector<2048x32xf32>
      %218 = arith.maximumf %216, %217 : vector<2048x32xf32>
      %c0_85 = arith.constant 0 : index
      %c0_86 = arith.constant 0 : index
      %219 = vector.load %arg3[%c0_85, %c0_86] : memref<8x2048xbf16, #tpu.memory_space<vmem>>, vector<8x2048xbf16>
      %220 = arith.truncf %218 : vector<2048x32xf32> to vector<2048x32xbf16>
      %cst_87 = arith.constant dense<0.000000e+00> : vector<8x32xf32>
      %221 = tpu.matmul %219, %220, %cst_87 {dimension_numbers = #tpu.dot_dimension_numbers<[1], [0], [0], [1], [0, 0, 1, 1], [], []>} : vector<8x2048xbf16>, vector<2048x32xbf16>, vector<8x32xf32> -> vector<8x32xf32>
      %c1_88 = arith.constant 1 : index
      %c0_89 = arith.constant 0 : index
      %222 = vector.load %arg4[%c1_88, %c0_89] : memref<6x32xf32, #tpu.memory_space<vmem>>, vector<1x32xf32>
      %c2_90 = arith.constant 2 : index
      %c0_91 = arith.constant 0 : index
      %223 = vector.load %arg4[%c2_90, %c0_91] : memref<6x32xf32, #tpu.memory_space<vmem>>, vector<4x32xf32>
      %224 = vector.extract_strided_slice %221 {offsets = [0, 0], sizes = [4, 32], strides = [1, 1]} : vector<8x32xf32> to vector<4x32xf32>
      %225 = arith.addf %224, %223 : vector<4x32xf32>
      %cst_92 = arith.constant 0.000000e+00 : f32
      %226 = vector.broadcast %cst_92 : f32 to vector<3x32xf32>
      %227 = vector.extract_strided_slice %221 {offsets = [4, 0], sizes = [4, 32], strides = [1, 1]} : vector<8x32xf32> to vector<4x32xf32>
      %228 = arith.addf %227, %223 : vector<4x32xf32>
      %cst_93 = arith.constant 0.000000e+00 : f32
      %229 = vector.broadcast %cst_93 : f32 to vector<3x32xf32>
      %230 = tpu.concatenate %222, %225, %226, %222, %228, %229 in 0 : vector<1x32xf32>, vector<4x32xf32>, vector<3x32xf32>, vector<1x32xf32>, vector<4x32xf32>, vector<3x32xf32> -> vector<16x32xf32>
      %c0_94 = arith.constant 0 : index
      %c0_95 = arith.constant 0 : index
      %231 = vector.load %arg14[%c0_94, %c0_95] : memref<16x32xf32, #tpu.memory_space<vmem>>, vector<16x32xf32>
      tpu.vector_store %arg14[%c0_94, %c0_95], %230 {strides = array<i32>} : memref<16x32xf32, #tpu.memory_space<vmem>>, vector<16x32xf32>,
    } else {
    }
    %c0 = arith.constant 0 : index
    %c0_1 = arith.constant 0 : index
    %3 = vector.load %arg14[%c0, %c0_1] : memref<16x32xf32, #tpu.memory_space<vmem>>, vector<16x32xf32>
    %4 = arith.truncf %3 : vector<16x32xf32> to vector<16x32xbf16>
    %c0_2 = arith.constant 0 : index
    %c0_3 = arith.constant 0 : index
    %c0_4 = arith.constant 0 : index
    %5 = vector.load %arg5[%c0_2, %c0_3, %c0_4] : memref<1x32x96xbf16, #tpu.memory_space<vmem>>, vector<1x32x96xbf16>
    %6 = vector.shape_cast %5 : vector<1x32x96xbf16> to vector<32x96xbf16>
    %cst = arith.constant dense<0.000000e+00> : vector<16x96xf32>
    %7 = tpu.matmul %4, %6, %cst {dimension_numbers = #tpu.dot_dimension_numbers<[1], [0], [0], [1], [0, 0, 1, 1], [], []>} : vector<16x32xbf16>, vector<32x96xbf16>, vector<16x96xf32> -> vector<16x96xf32>
    %8 = vector.extract_strided_slice %7 {offsets = [0, 0], sizes = [16, 32], strides = [1, 1]} : vector<16x96xf32> to vector<16x32xf32>
    %c0_5 = arith.constant 0 : index
    %c0_6 = arith.constant 0 : index
    %c0_7 = arith.constant 0 : index
    %9 = vector.load %arg10[%c0_5, %c0_6, %c0_7] : memref<1x9x32xf32, #tpu.memory_space<vmem>>, vector<1x1x32xf32>
    %10 = vector.shape_cast %9 : vector<1x1x32xf32> to vector<1x32xf32>
    %11 = vector.broadcast %10 : vector<1x32xf32> to vector<16x32xf32>
    %12 = arith.addf %8, %11 : vector<16x32xf32>
    %13 = vector.extract_strided_slice %7 {offsets = [0, 32], sizes = [16, 32], strides = [1, 1]} : vector<16x96xf32> to vector<16x32xf32>
    %c0_8 = arith.constant 0 : index
    %c1 = arith.constant 1 : index
    %c0_9 = arith.constant 0 : index
    %14 = vector.load %arg10[%c0_8, %c1, %c0_9] : memref<1x9x32xf32, #tpu.memory_space<vmem>>, vector<1x1x32xf32>
    %15 = vector.shape_cast %14 : vector<1x1x32xf32> to vector<1x32xf32>
    %16 = vector.broadcast %15 : vector<1x32xf32> to vector<16x32xf32>
    %17 = arith.addf %13, %16 : vector<16x32xf32>
    %18 = vector.extract_strided_slice %7 {offsets = [0, 64], sizes = [16, 32], strides = [1, 1]} : vector<16x96xf32> to vector<16x32xf32>
    %c0_10 = arith.constant 0 : index
    %c2 = arith.constant 2 : index
    %c0_11 = arith.constant 0 : index
    %19 = vector.load %arg10[%c0_10, %c2, %c0_11] : memref<1x9x32xf32, #tpu.memory_space<vmem>>, vector<1x1x32xf32>
    %20 = vector.shape_cast %19 : vector<1x1x32xf32> to vector<1x32xf32>
    %21 = vector.broadcast %20 : vector<1x32xf32> to vector<16x32xf32>
    %22 = arith.addf %18, %21 : vector<16x32xf32>
    %23 = tpu.iota {dimensions = array<i32: 2>} : vector<1x1x8xi32>
    %c5_i32 = arith.constant 5 : i32
    %24 = vector.broadcast %c5_i32 : i32 to vector<1x1x8xi32>
    %25 = arith.cmpi slt, %23, %24 : vector<1x1x8xi32>
    %26 = vector.extract_strided_slice %12 {offsets = [0, 0], sizes = [16, 8], strides = [1, 1]} : vector<16x32xf32> to vector<16x8xf32>
    %27 = vector.shape_cast %26 : vector<16x8xf32> to vector<2x8x8xf32>
    %28 = vector.extract_strided_slice %17 {offsets = [0, 0], sizes = [16, 8], strides = [1, 1]} : vector<16x32xf32> to vector<16x8xf32>
    %29 = vector.shape_cast %28 : vector<16x8xf32> to vector<2x8x8xf32>
    %30 = vector.extract_strided_slice %22 {offsets = [0, 0], sizes = [16, 8], strides = [1, 1]} : vector<16x32xf32> to vector<16x8xf32>
    %31 = vector.shape_cast %30 : vector<16x8xf32> to vector<2x8x8xf32>
    "tpu.trace_start"() <{level = 10 : i32, message = "bqd,bkd->bqk"}> : () -> ()
    %cst_12 = arith.constant dense<0.000000e+00> : vector<2x8x8xf32>
    %32 = tpu.matmul %27, %29, %cst_12 {dimension_numbers = #tpu.dot_dimension_numbers<[2], [2], [1], [1], [0, 0, 0, 1, 1, 1], [0], [0]>} : vector<2x8x8xf32>, vector<2x8x8xf32>, vector<2x8x8xf32> -> vector<2x8x8xf32>
    "tpu.trace_stop"() : () -> ()
    %cst_13 = arith.constant 0.353553385 : f32
    %33 = vector.broadcast %cst_13 : f32 to vector<2x8x8xf32>
    %34 = arith.mulf %32, %33 : vector<2x8x8xf32>
    %cst_14 = arith.constant -1.000000e+30 : f32
    %35 = vector.shape_cast %25 : vector<1x1x8xi1> to vector<1x1x8xi1>
    %36 = vector.broadcast %35 : vector<1x1x8xi1> to vector<2x8x8xi1>
    %37 = vector.broadcast %cst_14 : f32 to vector<2x8x8xf32>
    %38 = arith.select %36, %34, %37 : vector<2x8x8xi1>, vector<2x8x8xf32>
    %cst_15 = arith.constant dense<0xFF800000> : vector<2x8xf32>
    %39 = vector.multi_reduction <maximumf>, %38, %cst_15 [2] : vector<2x8x8xf32> to vector<2x8xf32>
    %40 = vector.shape_cast %39 : vector<2x8xf32> to vector<2x8x1xf32>
    %41 = vector.broadcast %40 : vector<2x8x1xf32> to vector<2x8x8xf32>
    %42 = arith.subf %38, %41 : vector<2x8x8xf32>
    %43 = math.exp %42 : vector<2x8x8xf32>
    %cst_16 = arith.constant dense<0.000000e+00> : vector<2x8xf32>
    %44 = vector.multi_reduction <add>, %43, %cst_16 [2] : vector<2x8x8xf32> to vector<2x8xf32>
    %45 = vector.shape_cast %44 : vector<2x8xf32> to vector<2x8x1xf32>
    %46 = tpu.reciprocal %45 {approx = true} : vector<2x8x1xf32> -> vector<2x8x1xf32>
    %47 = vector.broadcast %46 : vector<2x8x1xf32> to vector<2x8x8xf32>
    %48 = arith.mulf %43, %47 : vector<2x8x8xf32>
    "tpu.trace_start"() <{level = 10 : i32, message = "bqk,bkd->bqd"}> : () -> ()
    %cst_17 = arith.constant dense<0.000000e+00> : vector<2x8x8xf32>
    %49 = tpu.matmul %48, %31, %cst_17 {dimension_numbers = #tpu.dot_dimension_numbers<[2], [1], [1], [2], [0, 0, 0, 1, 1, 2], [0], [0]>} : vector<2x8x8xf32>, vector<2x8x8xf32>, vector<2x8x8xf32> -> vector<2x8x8xf32>
    "tpu.trace_stop"() : () -> ()
    %50 = vector.shape_cast %49 : vector<2x8x8xf32> to vector<16x8xf32>
    %51 = vector.extract_strided_slice %12 {offsets = [0, 8], sizes = [16, 8], strides = [1, 1]} : vector<16x32xf32> to vector<16x8xf32>
    %52 = vector.shape_cast %51 : vector<16x8xf32> to vector<2x8x8xf32>
    %53 = vector.extract_strided_slice %17 {offsets = [0, 8], sizes = [16, 8], strides = [1, 1]} : vector<16x32xf32> to vector<16x8xf32>
    %54 = vector.shape_cast %53 : vector<16x8xf32> to vector<2x8x8xf32>
    %55 = vector.extract_strided_slice %22 {offsets = [0, 8], sizes = [16, 8], strides = [1, 1]} : vector<16x32xf32> to vector<16x8xf32>
    %56 = vector.shape_cast %55 : vector<16x8xf32> to vector<2x8x8xf32>
    "tpu.trace_start"() <{level = 10 : i32, message = "bqd,bkd->bqk"}> : () -> ()
    %cst_18 = arith.constant dense<0.000000e+00> : vector<2x8x8xf32>
    %57 = tpu.matmul %52, %54, %cst_18 {dimension_numbers = #tpu.dot_dimension_numbers<[2], [2], [1], [1], [0, 0, 0, 1, 1, 1], [0], [0]>} : vector<2x8x8xf32>, vector<2x8x8xf32>, vector<2x8x8xf32> -> vector<2x8x8xf32>
    "tpu.trace_stop"() : () -> ()
    %cst_19 = arith.constant 0.353553385 : f32
    %58 = vector.broadcast %cst_19 : f32 to vector<2x8x8xf32>
    %59 = arith.mulf %57, %58 : vector<2x8x8xf32>
    %cst_20 = arith.constant -1.000000e+30 : f32
    %60 = vector.shape_cast %25 : vector<1x1x8xi1> to vector<1x1x8xi1>
    %61 = vector.broadcast %60 : vector<1x1x8xi1> to vector<2x8x8xi1>
    %62 = vector.broadcast %cst_20 : f32 to vector<2x8x8xf32>
    %63 = arith.select %61, %59, %62 : vector<2x8x8xi1>, vector<2x8x8xf32>
    %cst_21 = arith.constant dense<0xFF800000> : vector<2x8xf32>
    %64 = vector.multi_reduction <maximumf>, %63, %cst_21 [2] : vector<2x8x8xf32> to vector<2x8xf32>
    %65 = vector.shape_cast %64 : vector<2x8xf32> to vector<2x8x1xf32>
    %66 = vector.broadcast %65 : vector<2x8x1xf32> to vector<2x8x8xf32>
    %67 = arith.subf %63, %66 : vector<2x8x8xf32>
    %68 = math.exp %67 : vector<2x8x8xf32>
    %cst_22 = arith.constant dense<0.000000e+00> : vector<2x8xf32>
    %69 = vector.multi_reduction <add>, %68, %cst_22 [2] : vector<2x8x8xf32> to vector<2x8xf32>
    %70 = vector.shape_cast %69 : vector<2x8xf32> to vector<2x8x1xf32>
    %71 = tpu.reciprocal %70 {approx = true} : vector<2x8x1xf32> -> vector<2x8x1xf32>
    %72 = vector.broadcast %71 : vector<2x8x1xf32> to vector<2x8x8xf32>
    %73 = arith.mulf %68, %72 : vector<2x8x8xf32>
    "tpu.trace_start"() <{level = 10 : i32, message = "bqk,bkd->bqd"}> : () -> ()
    %cst_23 = arith.constant dense<0.000000e+00> : vector<2x8x8xf32>
    %74 = tpu.matmul %73, %56, %cst_23 {dimension_numbers = #tpu.dot_dimension_numbers<[2], [1], [1], [2], [0, 0, 0, 1, 1, 2], [0], [0]>} : vector<2x8x8xf32>, vector<2x8x8xf32>, vector<2x8x8xf32> -> vector<2x8x8xf32>
    "tpu.trace_stop"() : () -> ()
    %75 = vector.shape_cast %74 : vector<2x8x8xf32> to vector<16x8xf32>
    %76 = vector.extract_strided_slice %12 {offsets = [0, 16], sizes = [16, 8], strides = [1, 1]} : vector<16x32xf32> to vector<16x8xf32>
    %77 = vector.shape_cast %76 : vector<16x8xf32> to vector<2x8x8xf32>
    %78 = vector.extract_strided_slice %17 {offsets = [0, 16], sizes = [16, 8], strides = [1, 1]} : vector<16x32xf32> to vector<16x8xf32>
    %79 = vector.shape_cast %78 : vector<16x8xf32> to vector<2x8x8xf32>
    %80 = vector.extract_strided_slice %22 {offsets = [0, 16], sizes = [16, 8], strides = [1, 1]} : vector<16x32xf32> to vector<16x8xf32>
    %81 = vector.shape_cast %80 : vector<16x8xf32> to vector<2x8x8xf32>
    "tpu.trace_start"() <{level = 10 : i32, message = "bqd,bkd->bqk"}> : () -> ()
    %cst_24 = arith.constant dense<0.000000e+00> : vector<2x8x8xf32>
    %82 = tpu.matmul %77, %79, %cst_24 {dimension_numbers = #tpu.dot_dimension_numbers<[2], [2], [1], [1], [0, 0, 0, 1, 1, 1], [0], [0]>} : vector<2x8x8xf32>, vector<2x8x8xf32>, vector<2x8x8xf32> -> vector<2x8x8xf32>
    "tpu.trace_stop"() : () -> ()
    %cst_25 = arith.constant 0.353553385 : f32
    %83 = vector.broadcast %cst_25 : f32 to vector<2x8x8xf32>
    %84 = arith.mulf %82, %83 : vector<2x8x8xf32>
    %cst_26 = arith.constant -1.000000e+30 : f32
    %85 = vector.shape_cast %25 : vector<1x1x8xi1> to vector<1x1x8xi1>
    %86 = vector.broadcast %85 : vector<1x1x8xi1> to vector<2x8x8xi1>
    %87 = vector.broadcast %cst_26 : f32 to vector<2x8x8xf32>
    %88 = arith.select %86, %84, %87 : vector<2x8x8xi1>, vector<2x8x8xf32>
    %cst_27 = arith.constant dense<0xFF800000> : vector<2x8xf32>
    %89 = vector.multi_reduction <maximumf>, %88, %cst_27 [2] : vector<2x8x8xf32> to vector<2x8xf32>
    %90 = vector.shape_cast %89 : vector<2x8xf32> to vector<2x8x1xf32>
    %91 = vector.broadcast %90 : vector<2x8x1xf32> to vector<2x8x8xf32>
    %92 = arith.subf %88, %91 : vector<2x8x8xf32>
    %93 = math.exp %92 : vector<2x8x8xf32>
    %cst_28 = arith.constant dense<0.000000e+00> : vector<2x8xf32>
    %94 = vector.multi_reduction <add>, %93, %cst_28 [2] : vector<2x8x8xf32> to vector<2x8xf32>
    %95 = vector.shape_cast %94 : vector<2x8xf32> to vector<2x8x1xf32>
    %96 = tpu.reciprocal %95 {approx = true} : vector<2x8x1xf32> -> vector<2x8x1xf32>
    %97 = vector.broadcast %96 : vector<2x8x1xf32> to vector<2x8x8xf32>
    %98 = arith.mulf %93, %97 : vector<2x8x8xf32>
    "tpu.trace_start"() <{level = 10 : i32, message = "bqk,bkd->bqd"}> : () -> ()
    %cst_29 = arith.constant dense<0.000000e+00> : vector<2x8x8xf32>
    %99 = tpu.matmul %98, %81, %cst_29 {dimension_numbers = #tpu.dot_dimension_numbers<[2], [1], [1], [2], [0, 0, 0, 1, 1, 2], [0], [0]>} : vector<2x8x8xf32>, vector<2x8x8xf32>, vector<2x8x8xf32> -> vector<2x8x8xf32>
    "tpu.trace_stop"() : () -> ()
    %100 = vector.shape_cast %99 : vector<2x8x8xf32> to vector<16x8xf32>
    %101 = vector.extract_strided_slice %12 {offsets = [0, 24], sizes = [16, 8], strides = [1, 1]} : vector<16x32xf32> to vector<16x8xf32>
    %102 = vector.shape_cast %101 : vector<16x8xf32> to vector<2x8x8xf32>
    %103 = vector.extract_strided_slice %17 {offsets = [0, 24], sizes = [16, 8], strides = [1, 1]} : vector<16x32xf32> to vector<16x8xf32>
    %104 = vector.shape_cast %103 : vector<16x8xf32> to vector<2x8x8xf32>
    %105 = vector.extract_strided_slice %22 {offsets = [0, 24], sizes = [16, 8], strides = [1, 1]} : vector<16x32xf32> to vector<16x8xf32>
    %106 = vector.shape_cast %105 : vector<16x8xf32> to vector<2x8x8xf32>
    "tpu.trace_start"() <{level = 10 : i32, message = "bqd,bkd->bqk"}> : () -> ()
    %cst_30 = arith.constant dense<0.000000e+00> : vector<2x8x8xf32>
    %107 = tpu.matmul %102, %104, %cst_30 {dimension_numbers = #tpu.dot_dimension_numbers<[2], [2], [1], [1], [0, 0, 0, 1, 1, 1], [0], [0]>} : vector<2x8x8xf32>, vector<2x8x8xf32>, vector<2x8x8xf32> -> vector<2x8x8xf32>
    "tpu.trace_stop"() : () -> ()
    %cst_31 = arith.constant 0.353553385 : f32
    %108 = vector.broadcast %cst_31 : f32 to vector<2x8x8xf32>
    %109 = arith.mulf %107, %108 : vector<2x8x8xf32>
    %cst_32 = arith.constant -1.000000e+30 : f32
    %110 = vector.shape_cast %25 : vector<1x1x8xi1> to vector<1x1x8xi1>
    %111 = vector.broadcast %110 : vector<1x1x8xi1> to vector<2x8x8xi1>
    %112 = vector.broadcast %cst_32 : f32 to vector<2x8x8xf32>
    %113 = arith.select %111, %109, %112 : vector<2x8x8xi1>, vector<2x8x8xf32>
    %cst_33 = arith.constant dense<0xFF800000> : vector<2x8xf32>
    %114 = vector.multi_reduction <maximumf>, %113, %cst_33 [2] : vector<2x8x8xf32> to vector<2x8xf32>
    %115 = vector.shape_cast %114 : vector<2x8xf32> to vector<2x8x1xf32>
    %116 = vector.broadcast %115 : vector<2x8x1xf32> to vector<2x8x8xf32>
    %117 = arith.subf %113, %116 : vector<2x8x8xf32>
    %118 = math.exp %117 : vector<2x8x8xf32>
    %cst_34 = arith.constant dense<0.000000e+00> : vector<2x8xf32>
    %119 = vector.multi_reduction <add>, %118, %cst_34 [2] : vector<2x8x8xf32> to vector<2x8xf32>
    %120 = vector.shape_cast %119 : vector<2x8xf32> to vector<2x8x1xf32>
    %121 = tpu.reciprocal %120 {approx = true} : vector<2x8x1xf32> -> vector<2x8x1xf32>
    %122 = vector.broadcast %121 : vector<2x8x1xf32> to vector<2x8x8xf32>
    %123 = arith.mulf %118, %122 : vector<2x8x8xf32>
    "tpu.trace_start"() <{level = 10 : i32, message = "bqk,bkd->bqd"}> : () -> ()
    %cst_35 = arith.constant dense<0.000000e+00> : vector<2x8x8xf32>
    %124 = tpu.matmul %123, %106, %cst_35 {dimension_numbers = #tpu.dot_dimension_numbers<[2], [1], [1], [2], [0, 0, 0, 1, 1, 2], [0], [0]>} : vector<2x8x8xf32>, vector<2x8x8xf32>, vector<2x8x8xf32> -> vector<2x8x8xf32>
    "tpu.trace_stop"() : () -> ()
    %125 = vector.shape_cast %124 : vector<2x8x8xf32> to vector<16x8xf32>
    %126 = tpu.concatenate %50, %75, %100, %125 in 1 : vector<16x8xf32>, vector<16x8xf32>, vector<16x8xf32>, vector<16x8xf32> -> vector<16x32xf32>
    %127 = arith.truncf %126 : vector<16x32xf32> to vector<16x32xbf16>
    %c0_36 = arith.constant 0 : index
    %c0_37 = arith.constant 0 : index
    %c0_38 = arith.constant 0 : index
    %128 = vector.load %arg6[%c0_36, %c0_37, %c0_38] : memref<1x32x32xbf16, #tpu.memory_space<vmem>>, vector<1x32x32xbf16>
    %129 = vector.shape_cast %128 : vector<1x32x32xbf16> to vector<32x32xbf16>
    %cst_39 = arith.constant dense<0.000000e+00> : vector<16x32xf32>
    %130 = tpu.matmul %127, %129, %cst_39 {dimension_numbers = #tpu.dot_dimension_numbers<[1], [0], [0], [1], [0, 0, 1, 1], [], []>} : vector<16x32xbf16>, vector<32x32xbf16>, vector<16x32xf32> -> vector<16x32xf32>
    %c0_40 = arith.constant 0 : index
    %c3 = arith.constant 3 : index
    %c0_41 = arith.constant 0 : index
    %131 = vector.load %arg10[%c0_40, %c3, %c0_41] : memref<1x9x32xf32, #tpu.memory_space<vmem>>, vector<1x1x32xf32>
    %132 = vector.shape_cast %131 : vector<1x1x32xf32> to vector<1x32xf32>
    %133 = vector.broadcast %132 : vector<1x32xf32> to vector<16x32xf32>
    %134 = arith.addf %130, %133 : vector<16x32xf32>
    %135 = arith.addf %3, %134 : vector<16x32xf32>
    %cst_42 = arith.constant dense<0.000000e+00> : vector<16xf32>
    %136 = vector.multi_reduction <add>, %135, %cst_42 [1] : vector<16x32xf32> to vector<16xf32>
    %137 = vector.shape_cast %136 : vector<16xf32> to vector<16x1xf32>
    %cst_43 = arith.constant 3.200000e+01 : f32
    %138 = vector.broadcast %cst_43 : f32 to vector<16x1xf32>
    %139 = arith.divf %137, %138 : vector<16x1xf32>
    %140 = vector.broadcast %139 : vector<16x1xf32> to vector<16x32xf32>
    %141 = arith.subf %135, %140 : vector<16x32xf32>
    %142 = arith.mulf %141, %141 : vector<16x32xf32>
    %cst_44 = arith.constant dense<0.000000e+00> : vector<16xf32>
    %143 = vector.multi_reduction <add>, %142, %cst_44 [1] : vector<16x32xf32> to vector<16xf32>
    %144 = vector.shape_cast %143 : vector<16xf32> to vector<16x1xf32>
    %cst_45 = arith.constant 3.200000e+01 : f32
    %145 = vector.broadcast %cst_45 : f32 to vector<16x1xf32>
    %146 = arith.divf %144, %145 : vector<16x1xf32>
    %147 = vector.broadcast %139 : vector<16x1xf32> to vector<16x32xf32>
    %148 = arith.subf %135, %147 : vector<16x32xf32>
    %cst_46 = arith.constant 9.99999974E-6 : f32
    %149 = vector.broadcast %cst_46 : f32 to vector<16x1xf32>
    %150 = arith.addf %146, %149 : vector<16x1xf32>
    %151 = math.rsqrt %150 : vector<16x1xf32>
    %152 = vector.broadcast %151 : vector<16x1xf32> to vector<16x32xf32>
    %153 = arith.mulf %148, %152 : vector<16x32xf32>
    %c0_47 = arith.constant 0 : index
    %c4 = arith.constant 4 : index
    %c0_48 = arith.constant 0 : index
    %154 = vector.load %arg10[%c0_47, %c4, %c0_48] : memref<1x9x32xf32, #tpu.memory_space<vmem>>, vector<1x1x32xf32>
    %155 = vector.shape_cast %154 : vector<1x1x32xf32> to vector<1x32xf32>
    %156 = vector.broadcast %155 : vector<1x32xf32> to vector<16x32xf32>
    %157 = arith.mulf %153, %156 : vector<16x32xf32>
    %c0_49 = arith.constant 0 : index
    %c5 = arith.constant 5 : index
    %c0_50 = arith.constant 0 : index
    %158 = vector.load %arg10[%c0_49, %c5, %c0_50] : memref<1x9x32xf32, #tpu.memory_space<vmem>>, vector<1x1x32xf32>
    %159 = vector.shape_cast %158 : vector<1x1x32xf32> to vector<1x32xf32>
    %160 = vector.broadcast %159 : vector<1x32xf32> to vector<16x32xf32>
    %161 = arith.addf %157, %160 : vector<16x32xf32>
    %162 = arith.truncf %161 : vector<16x32xf32> to vector<16x32xbf16>
    %c0_51 = arith.constant 0 : index
    %c0_52 = arith.constant 0 : index
    %c0_53 = arith.constant 0 : index
    %163 = vector.load %arg7[%c0_51, %c0_52, %c0_53] : memref<1x32x2048xbf16, #tpu.memory_space<vmem>>, vector<1x32x2048xbf16>
    %164 = vector.shape_cast %163 : vector<1x32x2048xbf16> to vector<32x2048xbf16>
    %cst_54 = arith.constant dense<0.000000e+00> : vector<16x2048xf32>
    %165 = tpu.matmul %162, %164, %cst_54 {dimension_numbers = #tpu.dot_dimension_numbers<[1], [0], [0], [1], [0, 0, 1, 1], [], []>} : vector<16x32xbf16>, vector<32x2048xbf16>, vector<16x2048xf32> -> vector<16x2048xf32>
    %c0_55 = arith.constant 0 : index
    %c0_56 = arith.constant 0 : index
    %c0_57 = arith.constant 0 : index
    %166 = vector.load %arg8[%c0_55, %c0_56, %c0_57] : memref<1x1x2048xf32, #tpu.memory_space<vmem>>, vector<1x1x2048xf32>
    %167 = vector.shape_cast %166 : vector<1x1x2048xf32> to vector<1x2048xf32>
    %168 = vector.broadcast %167 : vector<1x2048xf32> to vector<16x2048xf32>
    %169 = arith.addf %165, %168 : vector<16x2048xf32>
    %cst_58 = arith.constant 0.000000e+00 : f32
    %170 = vector.broadcast %cst_58 : f32 to vector<16x2048xf32>
    %171 = arith.maximumf %169, %170 : vector<16x2048xf32>
    %172 = arith.truncf %171 : vector<16x2048xf32> to vector<16x2048xbf16>
    %c0_59 = arith.constant 0 : index
    %c0_60 = arith.constant 0 : index
    %c0_61 = arith.constant 0 : index
    %173 = vector.load %arg9[%c0_59, %c0_60, %c0_61] : memref<1x2048x32xbf16, #tpu.memory_space<vmem>>, vector<1x2048x32xbf16>
    %174 = vector.shape_cast %173 : vector<1x2048x32xbf16> to vector<2048x32xbf16>
    %cst_62 = arith.constant dense<0.000000e+00> : vector<16x32xf32>
    %175 = tpu.matmul %172, %174, %cst_62 {dimension_numbers = #tpu.dot_dimension_numbers<[1], [0], [0], [1], [0, 0, 1, 1], [], []>} : vector<16x2048xbf16>, vector<2048x32xbf16>, vector<16x32xf32> -> vector<16x32xf32>
    %c0_63 = arith.constant 0 : index
    %c6 = arith.constant 6 : index
    %c0_64 = arith.constant 0 : index
    %176 = vector.load %arg10[%c0_63, %c6, %c0_64] : memref<1x9x32xf32, #tpu.memory_space<vmem>>, vector<1x1x32xf32>
    %177 = vector.shape_cast %176 : vector<1x1x32xf32> to vector<1x32xf32>
    %178 = vector.broadcast %177 : vector<1x32xf32> to vector<16x32xf32>
    %179 = arith.addf %175, %178 : vector<16x32xf32>
    %180 = arith.addf %161, %179 : vector<16x32xf32>
    %cst_65 = arith.constant dense<0.000000e+00> : vector<16xf32>
    %181 = vector.multi_reduction <add>, %180, %cst_65 [1] : vector<16x32xf32> to vector<16xf32>
    %182 = vector.shape_cast %181 : vector<16xf32> to vector<16x1xf32>
    %cst_66 = arith.constant 3.200000e+01 : f32
    %183 = vector.broadcast %cst_66 : f32 to vector<16x1xf32>
    %184 = arith.divf %182, %183 : vector<16x1xf32>
    %185 = vector.broadcast %184 : vector<16x1xf32> to vector<16x32xf32>
    %186 = arith.subf %180, %185 : vector<16x32xf32>
    %187 = arith.mulf %186, %186 : vector<16x32xf32>
    %cst_67 = arith.constant dense<0.000000e+00> : vector<16xf32>
    %188 = vector.multi_reduction <add>, %187, %cst_67 [1] : vector<16x32xf32> to vector<16xf32>
    %189 = vector.shape_cast %188 : vector<16xf32> to vector<16x1xf32>
    %cst_68 = arith.constant 3.200000e+01 : f32
    %190 = vector.broadcast %cst_68 : f32 to vector<16x1xf32>
    %191 = arith.divf %189, %190 : vector<16x1xf32>
    %192 = vector.broadcast %184 : vector<16x1xf32> to vector<16x32xf32>
    %193 = arith.subf %180, %192 : vector<16x32xf32>
    %cst_69 = arith.constant 9.99999974E-6 : f32
    %194 = vector.broadcast %cst_69 : f32 to vector<16x1xf32>
    %195 = arith.addf %191, %194 : vector<16x1xf32>
    %196 = math.rsqrt %195 : vector<16x1xf32>
    %197 = vector.broadcast %196 : vector<16x1xf32> to vector<16x32xf32>
    %198 = arith.mulf %193, %197 : vector<16x32xf32>
    %c0_70 = arith.constant 0 : index
    %c7 = arith.constant 7 : index
    %c0_71 = arith.constant 0 : index
    %199 = vector.load %arg10[%c0_70, %c7, %c0_71] : memref<1x9x32xf32, #tpu.memory_space<vmem>>, vector<1x1x32xf32>
    %200 = vector.shape_cast %199 : vector<1x1x32xf32> to vector<1x32xf32>
    %201 = vector.broadcast %200 : vector<1x32xf32> to vector<16x32xf32>
    %202 = arith.mulf %198, %201 : vector<16x32xf32>
    %c0_72 = arith.constant 0 : index
    %c8 = arith.constant 8 : index
    %c0_73 = arith.constant 0 : index
    %203 = vector.load %arg10[%c0_72, %c8, %c0_73] : memref<1x9x32xf32, #tpu.memory_space<vmem>>, vector<1x1x32xf32>
    %204 = vector.shape_cast %203 : vector<1x1x32xf32> to vector<1x32xf32>
    %205 = vector.broadcast %204 : vector<1x32xf32> to vector<16x32xf32>
    %206 = arith.addf %202, %205 : vector<16x32xf32>
    %c0_74 = arith.constant 0 : index
    %c0_75 = arith.constant 0 : index
    %207 = vector.load %arg14[%c0_74, %c0_75] : memref<16x32xf32, #tpu.memory_space<vmem>>, vector<16x32xf32>
    tpu.vector_store %arg14[%c0_74, %c0_75], %206 {strides = array<i32>} : memref<16x32xf32, #tpu.memory_space<vmem>>, vector<16x32xf32>,
    %c1_i32 = arith.constant 1 : i32
    %208 = arith.cmpi eq, %arg0, %c1_i32 : i32
    %209 = arith.extui %208 : i1 to i32
    %c0_i32_76 = arith.constant 0 : i32
    %210 = arith.cmpi ne, %209, %c0_i32_76 : i32
    scf.if %210 {
      %211 = vector.extract_strided_slice %206 {offsets = [0, 0], sizes = [1, 32], strides = [1, 1]} : vector<16x32xf32> to vector<1x32xf32>
      %212 = vector.extract_strided_slice %206 {offsets = [8, 0], sizes = [1, 32], strides = [1, 1]} : vector<16x32xf32> to vector<1x32xf32>
      %213 = tpu.concatenate %211, %212 in 0 : vector<1x32xf32>, vector<1x32xf32> -> vector<2x32xf32>
      %214 = arith.truncf %213 : vector<2x32xf32> to vector<2x32xbf16>
      %c0_77 = arith.constant 0 : index
      %c0_78 = arith.constant 0 : index
      %215 = vector.load %arg11[%c0_77, %c0_78] : memref<32x128xbf16, #tpu.memory_space<vmem>>, vector<32x128xbf16>
      %cst_79 = arith.constant dense<0.000000e+00> : vector<2x128xf32>
      %216 = tpu.matmul %214, %215, %cst_79 {dimension_numbers = #tpu.dot_dimension_numbers<[1], [0], [0], [1], [0, 0, 1, 1], [], []>} : vector<2x32xbf16>, vector<32x128xbf16>, vector<2x128xf32> -> vector<2x128xf32>
      %c0_80 = arith.constant 0 : index
      %c0_81 = arith.constant 0 : index
      %217 = vector.load %arg12[%c0_80, %c0_81] : memref<1x128xf32, #tpu.memory_space<vmem>>, vector<1x128xf32>
      %218 = vector.broadcast %217 : vector<1x128xf32> to vector<2x128xf32>
      %219 = arith.addf %216, %218 : vector<2x128xf32>
      %c0_82 = arith.constant 0 : index
      %c0_83 = arith.constant 0 : index
      %220 = vector.load %arg13[%c0_82, %c0_83] : memref<2x128xf32, #tpu.memory_space<vmem>>, vector<2x128xf32>
      tpu.vector_store %arg13[%c0_82, %c0_83], %219 {strides = array<i32>} : memref<2x128xf32, #tpu.memory_space<vmem>>, vector<2x128xf32>,
    } else {
    }
    return
  }
  func.func @transform_0(%arg0: i32) -> (i32, i32) {
    %c0_i32 = arith.constant 0 : i32
    %c0_i32_0 = arith.constant 0 : i32
    %c0_i32_1 = arith.constant 0 : i32
    return %c0_i32, %c0_i32_0 : i32, i32
  }
  func.func @transform_1(%arg0: i32) -> (i32, i32) {
    %c0_i32 = arith.constant 0 : i32
    %c0_i32_0 = arith.constant 0 : i32
    %c0_i32_1 = arith.constant 0 : i32
    return %c0_i32, %c0_i32_0 : i32, i32
  }
  func.func @transform_2(%arg0: i32) -> (i32, i32) {
    %c0_i32 = arith.constant 0 : i32
    %c0_i32_0 = arith.constant 0 : i32
    %c0_i32_1 = arith.constant 0 : i32
    return %c0_i32, %c0_i32_0 : i32, i32
  }
  func.func @transform_3(%arg0: i32) -> (i32, i32) {
    %c0_i32 = arith.constant 0 : i32
    %c0_i32_0 = arith.constant 0 : i32
    %c0_i32_1 = arith.constant 0 : i32
    return %c0_i32, %c0_i32_0 : i32, i32
  }
  func.func @transform_4(%arg0: i32) -> (i32, i32, i32) {
    %c0_i32 = arith.constant 0 : i32
    %c0_i32_0 = arith.constant 0 : i32
    %c0_i32_1 = arith.constant 0 : i32
    return %arg0, %c0_i32, %c0_i32_0 : i32, i32, i32
  }
  func.func @transform_5(%arg0: i32) -> (i32, i32, i32) {
    %c0_i32 = arith.constant 0 : i32
    %c0_i32_0 = arith.constant 0 : i32
    %c0_i32_1 = arith.constant 0 : i32
    return %arg0, %c0_i32, %c0_i32_0 : i32, i32, i32
  }
  func.func @transform_6(%arg0: i32) -> (i32, i32, i32) {
    %c0_i32 = arith.constant 0 : i32
    %c0_i32_0 = arith.constant 0 : i32
    %c0_i32_1 = arith.constant 0 : i32
    return %arg0, %c0_i32, %c0_i32_0 : i32, i32, i32
  }
  func.func @transform_7(%arg0: i32) -> (i32, i32, i32) {
    %c0_i32 = arith.constant 0 : i32
    %c0_i32_0 = arith.constant 0 : i32
    %c0_i32_1 = arith.constant 0 : i32
    return %arg0, %c0_i32, %c0_i32_0 : i32, i32, i32
  }
  func.func @transform_8(%arg0: i32) -> (i32, i32, i32) {
    %c0_i32 = arith.constant 0 : i32
    %c0_i32_0 = arith.constant 0 : i32
    %c0_i32_1 = arith.constant 0 : i32
    return %arg0, %c0_i32, %c0_i32_0 : i32, i32, i32
  }
  func.func @transform_9(%arg0: i32) -> (i32, i32, i32) {
    %c0_i32 = arith.constant 0 : i32
    %c0_i32_0 = arith.constant 0 : i32
    %c0_i32_1 = arith.constant 0 : i32
    return %arg0, %c0_i32, %c0_i32_0 : i32, i32, i32
  }
  func.func @transform_10(%arg0: i32) -> (i32, i32) {
    %c0_i32 = arith.constant 0 : i32
    %c0_i32_0 = arith.constant 0 : i32
    %c0_i32_1 = arith.constant 0 : i32
    return %c0_i32, %c0_i32_0 : i32, i32
  }
  func.func @transform_11(%arg0: i32) -> (i32, i32) {
    %c0_i32 = arith.constant 0 : i32
    %c0_i32_0 = arith.constant 0 : i32
    %c0_i32_1 = arith.constant 0 : i32
    return %c0_i32, %c0_i32_0 : i32, i32
  }
  func.func @transform_12(%arg0: i32) -> (i32, i32) {
    %c0_i32 = arith.constant 0 : i32
    %c0_i32_0 = arith.constant 0 : i32
    %c0_i32_1 = arith.constant 0 : i32
    return %c0_i32, %c0_i32_0 : i32, i32
  }
}

</mosaic_0001>

<bundles_post_ra>
// kernel: forward.1
= control target key start
LH: loop header
LB: loop body
LE: loop exit
PB: predicated region body
PF: predicated region fallthrough
CT: control target
= control target key end

     0   :  { %s11020_s0 = inlined_call_operand.vmem [shape: bf16[2048,32], index: 0, kind: input, shape index: {}]   ;;  %s11021_s1 = inlined_call_operand.vmem [shape: bf16[32,32], index: 1, kind: input, shape index: {}]   ;;  %s11022_s2 = inlined_call_operand.vmem [shape: bf16[8,2048], index: 2, kind: input, shape index: {}]   ;;  %s11023_s3 = inlined_call_operand.vmem [shape: f32[6,32], index: 3, kind: input, shape index: {}]   ;;  %s11024_s4 = inlined_call_operand.vmem [shape: bf16[2,32,96], index: 4, kind: input, shape index: {}]   ;;  %s11025_s5 = inlined_call_operand.vmem [shape: bf16[2,32,32], index: 5, kind: input, shape index: {}]   ;;  %s11026_s6 = inlined_call_operand.vmem [shape: bf16[2,32,2048], index: 6, kind: input, shape index: {}]   ;;  %s11027_s7 = inlined_call_operand.vmem [shape: f32[2,1,2048], index: 7, kind: input, shape index: {}]   ;;  %s11028_s8 = inlined_call_operand.vmem [shape: bf16[2,2048,32], index: 8, kind: input, shape index: {}]   ;;  %s11029_s9 = inlined_call_operand.vmem [shape: f32[2,9,32], index: 9, kind: input, shape index: {}]   ;;  %s11030_s10 = inlined_call_operand.vmem [shape: bf16[32,128], index: 10, kind: input, shape index: {}]   ;;  %s11031_s11 = inlined_call_operand.vmem [shape: f32[1,128], index: 11, kind: input, shape index: {}]   ;;  %s11032_s12 = inlined_call_operand.hbm [shape: f32[2,128], index: 12, kind: output, shape index: {}]  }
   0x1   :  { %11034 = sst [smem:[#allocation9_spill]] %s11024_s4 }
   0x2   :  { %17 = vsyncpa [#allocation4], 0  ;;  %s9385_s21 = smov 0  }
   0x3 LB: > { %11035 = sst [smem:[#allocation6_spill]] %s9297_s21  ;;  %s9391_s22 = sadd.s32 4294967295, %s9297_s21   ;;  %s9297_s21 = sphi %s9385_s21, %s23_s21  }
   0x4   : > { %p7487_p0 = scmp.ge.s32.totalorder %s9297_s21, 1  ;;  %p407_p1 = scmp.lt.s32.totalorder %s9297_s21, 3 }
   0x6   : > { %p408_p2 = pnand %p7487_p0, %p407_p1 }
   0x7   : > { %p468_p3 = scmp.lt.s32.totalorder (!%p408_p2), %s9391_s22, 1  ;;  %s11036_s4 = sld [smem:[#allocation9_spill]] (!%p408_p2) }
   0x8   : > { %411 = sbr.rel (%p408_p2) target bundleno = 5398 (0x1516), region = 68  ;;  %p7499_p4 = scmp.ne.s32.totalorder (!%p408_p2), %s9391_s22, 0 }
   0xf   : > { %s469_s23 = scalar_select %p468_p3, %s9391_s22, 1 }
  0x10   : > { %501 = sbr.rel (%p7499_p4) target bundleno = 925 (0x39d), region = 72 }
  0x11   : > { %s7991_s24 = sshll.u32 %s469_s23, 4  ;;  %s7993_s25 = sshll.u32 %s469_s23, 8 }
  0x12   : > { %s9400_s28 = scalar_lea.vmem %s11036_s4, %s7991_s24  ;;  %s9405_s13 = scalar_lea.vmem %s11025_s5, %s7991_s24 }
  0x13   : > { %s9410_s16 = scalar_lea.vmem %s11026_s6, %s7993_s25  ;;  %s9415_s19 = scalar_lea.vmem %s11027_s7, %s7991_s24 }
  0x14   : > { %s7994_s20 = sshll.u32 %s469_s23, 10  ;;  %s9420_s27 = scalar_lea.vmem %s11029_s9, %s7991_s24 }
  0x15   : > { %s9425_s30 = scalar_lea.vmem %s11028_s8, %s7994_s20 }
  0x17   : > { %v8922_v0 = vld [vmem:[%s11021_s1] sm:$0xff]   ;;  %v8923_v1 = vld [vmem:[%s11021_s1 + $0x8] sm:$0xff]   ;;  %vm1419_vm0 = vcmask 261120   ;;  %v8926_v4 = vld [vmem:[%s11020_s0 + $0x10] sm:$0xff]   ;;  %vm3642_vm1 = vcmask 1040384   ;;  %vm3644_vm2 = vcmask 1044480  }
  0x18   : > { %8519 = vmatprep.subr.bf16.mxu0 %v8922_v0  ;;  %v8924_v2 = vld [vmem:[%s11020_s0] sm:$0xff]   ;;  %8883 = vmatprep.subr.bf16.mxu1 %v8922_v0  ;;  %v8925_v3 = vld [vmem:[%s11020_s0 + $0x8] sm:$0xff]   ;;  %v8927_v5 = vld [vmem:[%s11020_s0 + $0x18] sm:$0xff]  }
  0x19   : > { %8520 = vmatpush3.bf16.msra.mxu0 %v8922_v0  ;;  %8885 = vmatpush3.bf16.msra.mxu1 %v8922_v0  ;;  %v8928_v6 = vld [vmem:[%s11020_s0 + $0x20] sm:$0xff]   ;;  %v8929_v7 = vld [vmem:[%s11020_s0 + $0x28] sm:$0xff]   ;;  %v8930_v8 = vld [vmem:[%s11020_s0 + $0x30] sm:$0xff]  }
  0x1a   : > { %8521 = vmatprep.subr.bf16.mxu0 %v8923_v1  ;;  %8523 = vmatprep.mubr.msk.bf16.mxu0 %vm1419_vm0, %v8924_v2  ;;  %v8931_v9 = vld [vmem:[%s11020_s0 + $0x38] sm:$0xff]   ;;  %v8932_v10 = vld [vmem:[%s11020_s0 + $0x40] sm:$0xff]   ;;  %v8933_v11 = vld [vmem:[%s11020_s0 + $0x48] sm:$0xff]  }
  0x1b   : > { %8884 = vmatprep.subr.bf16.mxu1 %v8923_v1  ;;  %v8934_v12 = vld [vmem:[%s11020_s0 + $0x50] sm:$0xff]   ;;  %v8935_v13 = vld [vmem:[%s11020_s0 + $0x58] sm:$0xff]   ;;  %v8936_v14 = vld [vmem:[%s11020_s0 + $0x60] sm:$0xff]  }
  0x1c   : > { %v8937_v15 = vld [vmem:[%s11020_s0 + $0x68] sm:$0xff]   ;;  %v8938_v16 = vld [vmem:[%s11020_s0 + $0x70] sm:$0xff]   ;;  %v8971_v18 = vld [vmem:[%s11020_s0 + $0x2f8] sm:$0xff]  }
  0x1d   : > { %8522 = vmatpush3.bf16.msra.mxu0 %v8923_v1  ;;  %8886 = vmatpush3.bf16.msra.mxu1 %v8923_v1  ;;  %v8970_v17 = vld [vmem:[%s11020_s0 + $0x2f0] sm:$0xff]   ;;  %v8939_v19 = vld [vmem:[%s11020_s0 + $0x78] sm:$0xff]   ;;  %v8940_v20 = vld [vmem:[%s11020_s0 + $0x80] sm:$0xff]  }
  0x1e   : > { %8711 = vmatprep.mubr.msk.bf16.mxu1 %vm1419_vm0, %v8970_v17  ;;  %v8974_v21 = vld [vmem:[%s11020_s0 + $0x300] sm:$0xff]   ;;  %v8975_v22 = vld [vmem:[%s11020_s0 + $0x308] sm:$0xff]   ;;  %v8942_v24 = vld [vmem:[%s11020_s0 + $0x90] sm:$0xff]  }
  0x1f   : > { %v8941_v23 = vld [vmem:[%s11020_s0 + $0x88] sm:$0xff]   ;;  %v8978_v25 = vld [vmem:[%s11020_s0 + $0x310] sm:$0xff]   ;;  %v8979_v26 = vld [vmem:[%s11020_s0 + $0x318] sm:$0xff]  }
  0x20   : > { %8524 = vmatmul.mubr.msk.bf16.vlgmr.msra.gmra.mrb[0].mxu0 %vm1419_vm0, %v8925_v3  ;;  %8712 = vmatmul.mubr.msk.bf16.vlgmr.msra.gmra.mrb[0].mxu1 %vm1419_vm0, %v8971_v18  ;;  %v8943_v27 = vld [vmem:[%s11020_s0 + $0x98] sm:$0xff]   ;;  %v8944_v28 = vld [vmem:[%s11020_s0 + $0xa0] sm:$0xff]   ;;  %v8983_v30 = vld [vmem:[%s11020_s0 + $0x328] sm:$0xff]  }
  0x21   : > { %8527 = vmatprep.mubr.msk.bf16.mxu0 %vm1419_vm0, %v8926_v4  ;;  %8715 = vmatprep.mubr.msk.bf16.mxu1 %vm1419_vm0, %v8974_v21  ;;  %v8982_v29 = vld [vmem:[%s11020_s0 + $0x320] sm:$0xff]   ;;  %v8945_v31 = vld [vmem:[%s11020_s0 + $0xa8] sm:$0xff]   ;;  %v8946_v32 = vld [vmem:[%s11020_s0 + $0xb0] sm:$0xff]  }
  0x22   : > { %v8947_v33 = vld [vmem:[%s11020_s0 + $0xb8] sm:$0xff]   ;;  %v8986_v34 = vld [vmem:[%s11020_s0 + $0x330] sm:$0xff]   ;;  %v8948_v36 = vld [vmem:[%s11020_s0 + $0xc0] sm:$0xff]  }
  0x23   : > { %v8987_v35 = vld [vmem:[%s11020_s0 + $0x338] sm:$0xff]   ;;  %v8949_v37 = vld [vmem:[%s11020_s0 + $0xc8] sm:$0xff]   ;;  %v8990_v38 = vld [vmem:[%s11020_s0 + $0x340] sm:$0xff]  }
  0x24   : > { %v8991_v39 = vld [vmem:[%s11020_s0 + $0x348] sm:$0xff]   ;;  %v8950_v40 = vld [vmem:[%s11020_s0 + $0xd0] sm:$0xff]   ;;  %v8951_v41 = vld [vmem:[%s11020_s0 + $0xd8] sm:$0xff]  }
  0x25   : > { %v8994_v42 = vld [vmem:[%s11020_s0 + $0x350] sm:$0xff]   ;;  %v8995_v43 = vld [vmem:[%s11020_s0 + $0x358] sm:$0xff]   ;;  %v8952_v44 = vld [vmem:[%s11020_s0 + $0xe0] sm:$0xff]  }
  0x26   : > { %v8998_v45 = vld [vmem:[%s11020_s0 + $0x360] sm:$0xff]   ;;  %v8953_v46 = vld [vmem:[%s11020_s0 + $0xe8] sm:$0xff]   ;;  %v8954_v48 = vld [vmem:[%s11020_s0 + $0xf0] sm:$0xff]  }
  0x27   : > { %v8999_v47 = vld [vmem:[%s11020_s0 + $0x368] sm:$0xff]   ;;  %v9002_v49 = vld [vmem:[%s11020_s0 + $0x370] sm:$0xff]   ;;  %v8955_v50 = vld [vmem:[%s11020_s0 + $0xf8] sm:$0xff]  }
  0x28   : > { %8528 = vmatmul.mubr.msk.bf16.gmra.mrb[4].mxu0 %vm1419_vm0, %v8927_v5  ;;  %8716 = vmatmul.mubr.msk.bf16.gmra.mrb[4].mxu1 %vm1419_vm0, %v8975_v22  ;;  %v9003_v51 = vld [vmem:[%s11020_s0 + $0x378] sm:$0xff]   ;;  %v8956_v52 = vld [vmem:[%s11020_s0 + $0x100] sm:$0xff]   ;;  %v8957_v54 = vld [vmem:[%s11020_s0 + $0x108] sm:$0xff]  }
  0x29   : > { %8531 = vmatprep.mubr.msk.bf16.mxu0 %vm1419_vm0, %v8928_v6  ;;  %8719 = vmatprep.mubr.msk.bf16.mxu1 %vm1419_vm0, %v8978_v25  ;;  %v9006_v53 = vld [vmem:[%s11020_s0 + $0x380] sm:$0xff]   ;;  %v9007_v55 = vld [vmem:[%s11020_s0 + $0x388] sm:$0xff]   ;;  %v8958_v56 = vld [vmem:[%s11020_s0 + $0x110] sm:$0xff]  }
  0x2a   : > { %v9010_v57 = vld [vmem:[%s11020_s0 + $0x390] sm:$0xff]   ;;  %v8959_v58 = vld [vmem:[%s11020_s0 + $0x118] sm:$0xff]   ;;  %v8960_v60 = vld [vmem:[%s11020_s0 + $0x120] sm:$0xff]  }
  0x2b   : > { %v9011_v59 = vld [vmem:[%s11020_s0 + $0x398] sm:$0xff]   ;;  %v9014_v61 = vld [vmem:[%s11020_s0 + $0x3a0] sm:$0xff]   ;;  %v8961_v62 = vld [vmem:[%s11020_s0 + $0x128] sm:$0xff]  }
  0x2c   : > { %v9015_v63 = vld [vmem:[%s11020_s0 + $0x3a8] sm:$0xff]   ;;  %v8962_v0 = vld [vmem:[%s11020_s0 + $0x130] sm:$0xff]   ;;  %v8963_v2 = vld [vmem:[%s11020_s0 + $0x138] sm:$0xff]  }
  0x2d   : > { %v9018_v1 = vld [vmem:[%s11020_s0 + $0x3b0] sm:$0xff]   ;;  %v9019_v3 = vld [vmem:[%s11020_s0 + $0x3b8] sm:$0xff]   ;;  %v8964_v4 = vld [vmem:[%s11020_s0 + $0x140] sm:$0xff]  }
  0x2e   : > { %v9022_v5 = vld [vmem:[%s11020_s0 + $0x3c0] sm:$0xff]   ;;  %v8965_v6 = vld [vmem:[%s11020_s0 + $0x148] sm:$0xff]   ;;  %v9034_v17 = vld [vmem:[%s11020_s0 + $0x3f0] sm:$0xff]  }
  0x2f   : > { %v8973_v18 = vld [vmem:[%s11020_s0 + $0x178] sm:$0xff]   ;;  %v9769_v21 = vld [vmem:[%s11022_s2] sm:$0xff] }
  0x30   : > { %8532 = vmatmul.mubr.msk.bf16.gmra.mrb[8].mxu0 %vm1419_vm0, %v8929_v7  ;;  %8720 = vmatmul.mubr.msk.bf16.gmra.mrb[8].mxu1 %vm1419_vm0, %v8979_v26  ;;  %v9023_v7 = vld [vmem:[%s11020_s0 + $0x3c8] sm:$0xff]   ;;  %v7760_v22 = vcombine.high %v9769_v21, %v9769_v21  ;;  %v8981_v25 = vld [vmem:[%s11020_s0 + $0x198] sm:$0xff]   ;;  %v8984_v26 = vld [vmem:[%s11020_s0 + $0x1a0] sm:$0xff]  }
  0x31   : > { %8535 = vmatprep.mubr.msk.bf16.mxu0 %vm1419_vm0, %v8930_v8  ;;  %8723 = vmatprep.mubr.msk.bf16.mxu1 %vm1419_vm0, %v8982_v29  ;;  %v8966_v8 = vld [vmem:[%s11020_s0 + $0x150] sm:$0xff]   ;;  %v9799_v29 = vld [vmem:[%s11023_s3] ss:$0 sm:$0xff] }
  0x38   : > { %8536 = vmatmul.mubr.msk.bf16.gmra.mrb[12].mxu0 %vm1419_vm0, %v8931_v9  ;;  %8724 = vmatmul.mubr.msk.bf16.gmra.mrb[12].mxu1 %vm1419_vm0, %v8983_v30  ;;  %v9026_v9 = vld [vmem:[%s11020_s0 + $0x3d0] sm:$0xff]  }
  0x39   : > { %8539 = vmatprep.mubr.msk.bf16.mxu0 %vm1419_vm0, %v8932_v10  ;;  %8727 = vmatprep.mubr.msk.bf16.mxu1 %vm1419_vm0, %v8986_v34  ;;  %v8967_v10 = vld [vmem:[%s11020_s0 + $0x158] sm:$0xff]  }
  0x40   : > { %8540 = vmatmul.mubr.msk.bf16.gmra.mrb[16].mxu0 %vm1419_vm0, %v8933_v11  ;;  %8728 = vmatmul.mubr.msk.bf16.gmra.mrb[16].mxu1 %vm1419_vm0, %v8987_v35  ;;  %v9027_v11 = vld [vmem:[%s11020_s0 + $0x3d8] sm:$0xff]  }
  0x41   : > { %8543 = vmatprep.mubr.msk.bf16.mxu0 %vm1419_vm0, %v8934_v12  ;;  %8731 = vmatprep.mubr.msk.bf16.mxu1 %vm1419_vm0, %v8990_v38  ;;  %v8968_v12 = vld [vmem:[%s11020_s0 + $0x160] sm:$0xff]  }
  0x48   : > { %8544 = vmatmul.mubr.msk.bf16.gmra.mrb[20].mxu0 %vm1419_vm0, %v8935_v13  ;;  %8732 = vmatmul.mubr.msk.bf16.gmra.mrb[20].mxu1 %vm1419_vm0, %v8991_v39  ;;  %v9030_v13 = vld [vmem:[%s11020_s0 + $0x3e0] sm:$0xff]  }
  0x49   : > { %8547 = vmatprep.mubr.msk.bf16.mxu0 %vm1419_vm0, %v8936_v14  ;;  %8735 = vmatprep.mubr.msk.bf16.mxu1 %vm1419_vm0, %v8994_v42  ;;  %v8969_v14 = vld [vmem:[%s11020_s0 + $0x168] sm:$0xff]  }
  0x50   : > { %8548 = vmatmul.mubr.msk.bf16.gmra.mrb[24].mxu0 %vm1419_vm0, %v8937_v15  ;;  %8736 = vmatmul.mubr.msk.bf16.gmra.mrb[24].mxu1 %vm1419_vm0, %v8995_v43  ;;  %v9031_v15 = vld [vmem:[%s11020_s0 + $0x3e8] sm:$0xff]  }
  0x51   : > { %8551 = vmatprep.mubr.msk.bf16.mxu0 %vm1419_vm0, %v8938_v16  ;;  %8739 = vmatprep.mubr.msk.bf16.mxu1 %vm1419_vm0, %v8998_v45  ;;  %v8972_v16 = vld [vmem:[%s11020_s0 + $0x170] sm:$0xff]  }
  0x58   : > { %8552 = vmatmul.mubr.msk.bf16.gmra.mrb[28].mxu0 %vm1419_vm0, %v8939_v19  ;;  %8740 = vmatmul.mubr.msk.bf16.gmra.mrb[28].mxu1 %vm1419_vm0, %v8999_v47  ;;  %v9035_v19 = vld [vmem:[%s11020_s0 + $0x3f8] sm:$0xff]  }
  0x59   : > { %8555 = vmatprep.mubr.msk.bf16.mxu0 %vm1419_vm0, %v8940_v20  ;;  %8743 = vmatprep.mubr.msk.bf16.mxu1 %vm1419_vm0, %v9002_v49  ;;  %v8976_v20 = vld [vmem:[%s11020_s0 + $0x180] sm:$0xff]   ;;  %v8993_v49 = vld [vmem:[%s11020_s0 + $0x1c8] sm:$0xff]  }
  0x60   : > { %8556 = vmatmul.mubr.msk.bf16.gmra.mrb[32].mxu0 %vm1419_vm0, %v8941_v23  ;;  %8744 = vmatmul.mubr.msk.bf16.gmra.mrb[32].mxu1 %vm1419_vm0, %v9003_v51  ;;  %v8977_v23 = vld [vmem:[%s11020_s0 + $0x188] sm:$0xff]  }
  0x61   : > { %8559 = vmatprep.mubr.msk.bf16.mxu0 %vm1419_vm0, %v8942_v24  ;;  %8747 = vmatprep.mubr.msk.bf16.mxu1 %vm1419_vm0, %v9006_v53  ;;  %v8980_v24 = vld [vmem:[%s11020_s0 + $0x190] sm:$0xff]  }
  0x68   : > { %8560 = vmatmul.mubr.msk.bf16.gmra.mrb[36].mxu0 %vm1419_vm0, %v8943_v27  ;;  %8748 = vmatmul.mubr.msk.bf16.gmra.mrb[36].mxu1 %vm1419_vm0, %v9007_v55  ;;  %v8985_v27 = vld [vmem:[%s11020_s0 + $0x1a8] sm:$0xff]  }
  0x69   : > { %8563 = vmatprep.mubr.msk.bf16.mxu0 %vm1419_vm0, %v8944_v28  ;;  %8751 = vmatprep.mubr.msk.bf16.mxu1 %vm1419_vm0, %v9010_v57  ;;  %v8988_v28 = vld [vmem:[%s11020_s0 + $0x1b0] sm:$0xff]  }
  0x70   : > { %8564 = vmatmul.mubr.msk.bf16.gmra.mrb[40].mxu0 %vm1419_vm0, %v8945_v31  ;;  %8752 = vmatmul.mubr.msk.bf16.gmra.mrb[40].mxu1 %vm1419_vm0, %v9011_v59 }
  0x71   : > { %8567 = vmatprep.mubr.msk.bf16.mxu0 %vm1419_vm0, %v8946_v32  ;;  %8755 = vmatprep.mubr.msk.bf16.mxu1 %vm1419_vm0, %v9014_v61 }
  0x78   : > { %8568 = vmatmul.mubr.msk.bf16.gmra.mrb[44].mxu0 %vm1419_vm0, %v8947_v33  ;;  %8756 = vmatmul.mubr.msk.bf16.gmra.mrb[44].mxu1 %vm1419_vm0, %v9015_v63  ;;  %v8989_v33 = vld [vmem:[%s11020_s0 + $0x1b8] sm:$0xff]  }
  0x79   : > { %8571 = vmatprep.mubr.msk.bf16.mxu0 %vm1419_vm0, %v8948_v36  ;;  %8759 = vmatprep.mubr.msk.bf16.mxu1 %vm1419_vm0, %v9018_v1  ;;  %v8992_v36 = vld [vmem:[%s11020_s0 + $0x1c0] sm:$0xff]   ;;  %v8997_v1 = vld [vmem:[%s11020_s0 + $0x1d8] sm:$0xff]  }
  0x80   : > { %8572 = vmatmul.mubr.msk.bf16.gmra.mrb[48].mxu0 %vm1419_vm0, %v8949_v37  ;;  %8760 = vmatmul.mubr.msk.bf16.gmra.mrb[48].mxu1 %vm1419_vm0, %v9019_v3 }
  0x81   : > { %8575 = vmatprep.mubr.msk.bf16.mxu0 %vm1419_vm0, %v8950_v40  ;;  %8763 = vmatprep.mubr.msk.bf16.mxu1 %vm1419_vm0, %v9022_v5 }
  0x88   : > { %8576 = vmatmul.mubr.msk.bf16.gmra.mrb[52].mxu0 %vm1419_vm0, %v8951_v41  ;;  %8764 = vmatmul.mubr.msk.bf16.gmra.mrb[52].mxu1 %vm1419_vm0, %v9023_v7 }
  0x89   : > { %8579 = vmatprep.mubr.msk.bf16.mxu0 %vm1419_vm0, %v8952_v44  ;;  %8767 = vmatprep.mubr.msk.bf16.mxu1 %vm1419_vm0, %v9026_v9 }
  0x90   : > { %8580 = vmatmul.mubr.msk.bf16.gmra.mrb[56].mxu0 %vm1419_vm0, %v8953_v46  ;;  %8768 = vmatmul.mubr.msk.bf16.gmra.mrb[56].mxu1 %vm1419_vm0, %v9027_v11 }
  0x91   : > { %8583 = vmatprep.mubr.msk.bf16.mxu0 %vm1419_vm0, %v8954_v48  ;;  %8771 = vmatprep.mubr.msk.bf16.mxu1 %vm1419_vm0, %v9030_v13 }
  0x98   : > { %8584 = vmatmul.mubr.msk.bf16.gmra.mrb[60].mxu0 %vm1419_vm0, %v8955_v50  ;;  %8772 = vmatmul.mubr.msk.bf16.gmra.mrb[60].mxu1 %vm1419_vm0, %v9031_v15 }
  0x99   : > { %8587 = vmatprep.mubr.msk.bf16.mxu0 %vm1419_vm0, %v8956_v52  ;;  %8775 = vmatprep.mubr.msk.bf16.mxu1 %vm1419_vm0, %v9034_v17  ;;  %v8996_v52 = vld [vmem:[%s11020_s0 + $0x1d0] sm:$0xff]   ;;  %v9001_v17 = vld [vmem:[%s11020_s0 + $0x1e8] sm:$0xff]  }
  0xa0   : > { %8588 = vmatmul.mubr.msk.bf16.gmra.mrb[64].mxu0 %vm1419_vm0, %v8957_v54  ;;  %8776 = vmatmul.mubr.msk.bf16.gmra.mrb[64].mxu1 %vm1419_vm0, %v9035_v19 }
  0xa1   : > { %8591 = vmatprep.mubr.msk.bf16.mxu0 %vm1419_vm0, %v8958_v56  ;;  %3341 = vmatprep.mubr.bf16.mxu1 %v7760_v22 }
  0xa8   : > { %8592 = vmatmul.mubr.msk.bf16.gmra.mrb[68].mxu0 %vm1419_vm0, %v8959_v58 }
  0xa9   : > { %8595 = vmatprep.mubr.msk.bf16.mxu0 %vm1419_vm0, %v8960_v60 }
  0xb0   : > { %8596 = vmatmul.mubr.msk.bf16.gmra.mrb[72].mxu0 %vm1419_vm0, %v8961_v62 }
  0xb1   : > { %8599 = vmatprep.mubr.msk.bf16.mxu0 %vm1419_vm0, %v8962_v0 }
  0xb8   : > { %8600 = vmatmul.mubr.msk.bf16.gmra.mrb[76].mxu0 %vm1419_vm0, %v8963_v2 }
  0xb9   : > { %8603 = vmatprep.mubr.msk.bf16.mxu0 %vm1419_vm0, %v8964_v4  ;;  %v9000_v4 = vld [vmem:[%s11020_s0 + $0x1e0] sm:$0xff]  }
  0xc0   : > { %8604 = vmatmul.mubr.msk.bf16.gmra.mrb[80].mxu0 %vm1419_vm0, %v8965_v6 }
  0xc1   : > { %8607 = vmatprep.mubr.msk.bf16.mxu0 %vm1419_vm0, %v8966_v8 }
  0xc8   : > { %8608 = vmatmul.mubr.msk.bf16.gmra.mrb[84].mxu0 %vm1419_vm0, %v8967_v10 }
  0xc9   : > { %8611 = vmatprep.mubr.msk.bf16.mxu0 %vm1419_vm0, %v8968_v12 }
  0xd0   : > { %8612 = vmatmul.mubr.msk.bf16.gmra.mrb[88].mxu0 %vm1419_vm0, %v8969_v14 }
  0xd1   : > { %8615 = vmatprep.mubr.msk.bf16.mxu0 %vm1419_vm0, %v8972_v16 }
  0xd8   : > { %8616 = vmatmul.mubr.msk.bf16.gmra.mrb[92].mxu0 %vm1419_vm0, %v8973_v18 }
  0xd9   : > { %8619 = vmatprep.mubr.msk.bf16.mxu0 %vm1419_vm0, %v8976_v20  ;;  %v9004_v20 = vld [vmem:[%s11020_s0 + $0x1f0] sm:$0xff]  }
  0xe0   : > { %8620 = vmatmul.mubr.msk.bf16.gmra.mrb[96].mxu0 %vm1419_vm0, %v8977_v23 }
  0xe1   : > { %8623 = vmatprep.mubr.msk.bf16.mxu0 %vm1419_vm0, %v8980_v24 }
  0xe8   : > { %8624 = vmatmul.mubr.msk.bf16.gmra.mrb[100].mxu0 %vm1419_vm0, %v8981_v25 }
  0xe9   : > { %8627 = vmatprep.mubr.msk.bf16.mxu0 %vm1419_vm0, %v8984_v26 }
  0xf0   : > { %8628 = vmatmul.mubr.msk.bf16.gmra.mrb[104].mxu0 %vm1419_vm0, %v8985_v27 }
  0xf1   : > { %8631 = vmatprep.mubr.msk.bf16.mxu0 %vm1419_vm0, %v8988_v28 }
  0xf3   : > { %v8525_v30 = vpop.f32.mrb[0].mxu0 }
  0xf4   : > { %v1847_v31 = vadd.f32 %v8525_v30, %v9799_v29  ;;  %v1838_v32 = vpop.f32.mrb[1].mxu0 }
  0xf5   : > { %v1839_v34 = vadd.f32 %v9799_v29, %v1838_v32  ;;  %v8526_v35 = vpop.f32.mrb[2].mxu0 }
  0xf6   : > { %v1850_v37 = vadd.f32 %v8526_v35, %v9799_v29  ;;  %v1841_v38 = vpop.f32.mrb[3].mxu0  ;;  %v2863_v40 = vmax.f32 %v1847_v31, 0.0  ;;  %v9005_v35 = vld [vmem:[%s11020_s0 + $0x1f8] sm:$0xff]  }
  0xf7   : > { %v1842_v39 = vadd.f32 %v9799_v29, %v1841_v38  ;;  %v2861_v42 = vmax.f32 %v1839_v34, 0.0  ;;  %v9008_v38 = vld [vmem:[%s11020_s0 + $0x200] sm:$0xff]  }
  0xf8   : > { %v2864_v41 = vmax.f32 %v1850_v37, 0.0  ;;  %8632 = vmatmul.mubr.msk.bf16.gmra.mrb[108].mxu0 %vm1419_vm0, %v8989_v33 }
  0xf9   : > { %v2862_v43 = vmax.f32 %v1842_v39, 0.0  ;;  %8635 = vmatprep.mubr.msk.bf16.mxu0 %vm1419_vm0, %v8992_v36 }
  0xfa   : > { %v9814_v44 = vpack.c.bf16 %v2864_v41, %v2863_v40 }
  0xfb   : > { %v9816_v45 = vpack.c.bf16 %v2862_v43, %v2861_v42  ;;  %v8529_v46 = vpop.f32.mrb[4].mxu0 }
  0xfc   : > { %v1863_v47 = vadd.f32 %v8529_v46, %v9799_v29  ;;  %v1854_v48 = vpop.f32.mrb[5].mxu0 }
  0xfd   : > { %v1855_v50 = vadd.f32 %v9799_v29, %v1854_v48  ;;  %v8530_v51 = vpop.f32.mrb[6].mxu0 }
  0xfe   : > { %v1866_v53 = vadd.f32 %v8530_v51, %v9799_v29  ;;  %v1857_v54 = vpop.f32.mrb[7].mxu0  ;;  %v2867_v56 = vmax.f32 %v1863_v47, 0.0 }
  0xff   : > { %v1858_v55 = vadd.f32 %v9799_v29, %v1857_v54  ;;  %v2865_v58 = vmax.f32 %v1855_v50, 0.0 }
 0x100   : > { %v2868_v57 = vmax.f32 %v1866_v53, 0.0  ;;  %8636 = vmatmul.mubr.msk.bf16.gmra.mrb[112].mxu0 %vm1419_vm0, %v8993_v49  ;;  %v9009_v53 = vld [vmem:[%s11020_s0 + $0x208] sm:$0xff]  }
 0x101   : > { %v2866_v59 = vmax.f32 %v1858_v55, 0.0  ;;  %8639 = vmatprep.mubr.msk.bf16.mxu0 %vm1419_vm0, %v8996_v52 }
 0x102   : > { %v9830_v60 = vpack.c.bf16 %v2868_v57, %v2867_v56  ;;  %v9012_v56 = vld [vmem:[%s11020_s0 + $0x210] sm:$0xff]  }
 0x103   : > { %v9832_v61 = vpack.c.bf16 %v2866_v59, %v2865_v58  ;;  %v8533_v62 = vpop.f32.mrb[8].mxu0 }
 0x104   : > { %v1879_v63 = vadd.f32 %v8533_v62, %v9799_v29  ;;  %v1870_v0 = vpop.f32.mrb[9].mxu0 }
 0x105   : > { %v1871_v2 = vadd.f32 %v9799_v29, %v1870_v0  ;;  %v8534_v3 = vpop.f32.mrb[10].mxu0 }
 0x106   : > { %v1882_v5 = vadd.f32 %v8534_v3, %v9799_v29  ;;  %v1873_v6 = vpop.f32.mrb[11].mxu0  ;;  %v2871_v8 = vmax.f32 %v1879_v63, 0.0 }
 0x107   : > { %v1874_v7 = vadd.f32 %v9799_v29, %v1873_v6  ;;  %v2869_v10 = vmax.f32 %v1871_v2, 0.0 }
 0x108   : > { %v2872_v9 = vmax.f32 %v1882_v5, 0.0  ;;  %8640 = vmatmul.mubr.msk.bf16.gmra.mrb[116].mxu0 %vm1419_vm0, %v8997_v1 }
 0x109   : > { %v2870_v11 = vmax.f32 %v1874_v7, 0.0  ;;  %8643 = vmatprep.mubr.msk.bf16.mxu0 %vm1419_vm0, %v9000_v4 }
 0x10a   : > { %v9846_v12 = vpack.c.bf16 %v2872_v9, %v2871_v8  ;;  %v9016_v9 = vld [vmem:[%s11020_s0 + $0x220] sm:$0xff]  }
 0x10b   : > { %v9848_v13 = vpack.c.bf16 %v2870_v11, %v2869_v10  ;;  %v8537_v14 = vpop.f32.mrb[12].mxu0 }
 0x10c   : > { %v1895_v15 = vadd.f32 %v8537_v14, %v9799_v29  ;;  %v1886_v16 = vpop.f32.mrb[13].mxu0 }
 0x10d   : > { %v1887_v18 = vadd.f32 %v9799_v29, %v1886_v16  ;;  %v8538_v19 = vpop.f32.mrb[14].mxu0 }
 0x10e   : > { %v1898_v22 = vadd.f32 %v8538_v19, %v9799_v29  ;;  %v1889_v23 = vpop.f32.mrb[15].mxu0  ;;  %v2875_v25 = vmax.f32 %v1895_v15, 0.0 }
 0x10f   : > { %v1890_v24 = vadd.f32 %v9799_v29, %v1889_v23  ;;  %v2873_v27 = vmax.f32 %v1887_v18, 0.0 }
 0x110   : > { %v2876_v26 = vmax.f32 %v1898_v22, 0.0  ;;  %8644 = vmatmul.mubr.msk.bf16.gmra.mrb[120].mxu0 %vm1419_vm0, %v9001_v17 }
 0x111   : > { %v2874_v28 = vmax.f32 %v1890_v24, 0.0  ;;  %8647 = vmatprep.mubr.msk.bf16.mxu0 %vm1419_vm0, %v9004_v20 }
 0x112   : > { %v9862_v30 = vpack.c.bf16 %v2876_v26, %v2875_v25  ;;  %v9020_v26 = vld [vmem:[%s11020_s0 + $0x230] sm:$0xff]  }
 0x113   : > { %v9864_v31 = vpack.c.bf16 %v2874_v28, %v2873_v27  ;;  %v8541_v32 = vpop.f32.mrb[16].mxu0 }
 0x114   : > { %v1911_v33 = vadd.f32 %v8541_v32, %v9799_v29  ;;  %v1902_v34 = vpop.f32.mrb[17].mxu0 }
 0x115   : > { %v1903_v36 = vadd.f32 %v9799_v29, %v1902_v34  ;;  %v8542_v37 = vpop.f32.mrb[18].mxu0 }
 0x116   : > { %v1914_v39 = vadd.f32 %v8542_v37, %v9799_v29  ;;  %v1905_v40 = vpop.f32.mrb[19].mxu0  ;;  %v2879_v42 = vmax.f32 %v1911_v33, 0.0 }
 0x117   : > { %v1906_v41 = vadd.f32 %v9799_v29, %v1905_v40  ;;  %v2877_v46 = vmax.f32 %v1903_v36, 0.0 }
 0x118   : > { %v2880_v43 = vmax.f32 %v1914_v39, 0.0  ;;  %8648 = vmatmul.mubr.msk.bf16.gmra.mrb[124].mxu0 %vm1419_vm0, %v9005_v35 }
 0x119   : > { %v2878_v47 = vmax.f32 %v1906_v41, 0.0  ;;  %8651 = vmatprep.mubr.msk.bf16.mxu0 %vm1419_vm0, %v9008_v38 }
 0x11a   : > { %v3134_v48 = vpack.c.bf16 %v2880_v43, %v2879_v42  ;;  %v9024_v43 = vld [vmem:[%s11020_s0 + $0x240] sm:$0xff]  }
 0x11b   : > { %v3133_v49 = vpack.c.bf16 %v2878_v47, %v2877_v46  ;;  %v8545_v50 = vpop.f32.mrb[20].mxu0 }
 0x11c   : > { %v1927_v51 = vadd.f32 %v8545_v50, %v9799_v29  ;;  %v1918_v52 = vpop.f32.mrb[21].mxu0 }
 0x11d   : > { %v1919_v54 = vadd.f32 %v9799_v29, %v1918_v52  ;;  %v8546_v55 = vpop.f32.mrb[22].mxu0  ;;  %8126 = vmatprep.subr.bf16.mxu1 %v3133_v49 }
 0x11e   : > { %v1930_v57 = vadd.f32 %v8546_v55, %v9799_v29  ;;  %v1921_v58 = vpop.f32.mrb[23].mxu0  ;;  %8127 = vmatpush3.bf16.msra.mxu1 %v9816_v45  ;;  %v2883_v62 = vmax.f32 %v1927_v51, 0.0  ;;  %v9013_v45 = vld [vmem:[%s11020_s0 + $0x218] sm:$0xff]  }
 0x11f   : > { %v1922_v59 = vadd.f32 %v9799_v29, %v1921_v58  ;;  %8128 = vmatprep.subr.bf16.mxu1 %v3134_v48  ;;  %v2881_v0 = vmax.f32 %v1919_v54, 0.0  ;;  %v9934_v48 = vld [vmem:[%s11022_s2 + $0x8] sm:$0xff] }
 0x120   : > { %v2884_v63 = vmax.f32 %v1930_v57, 0.0  ;;  %8652 = vmatmul.mubr.msk.bf16.gmra.mrb[128].mxu0 %vm1419_vm0, %v9009_v53  ;;  %v7759_v53 = vcombine.low %v9769_v21, %v9769_v21  ;;  %v7762_v54 = vcombine.high %v9934_v48, %v9934_v48 }
 0x121   : > { %v2882_v1 = vmax.f32 %v1922_v59, 0.0  ;;  %8655 = vmatprep.mubr.msk.bf16.mxu0 %vm1419_vm0, %v9012_v56  ;;  %v9025_v59 = vld [vmem:[%s11020_s0 + $0x248] sm:$0xff]  }
 0x122   : > { %v3136_v2 = vpack.c.bf16 %v2884_v63, %v2883_v62  ;;  %8129 = vmatpush3.bf16.msra.mxu1 %v9814_v44 }
 0x123   : > { %v3135_v3 = vpack.c.bf16 %v2882_v1, %v2881_v0  ;;  %v8549_v4 = vpop.f32.mrb[24].mxu0 }
 0x124   : > { %v1943_v5 = vadd.f32 %v8549_v4, %v9799_v29  ;;  %v1934_v6 = vpop.f32.mrb[25].mxu0 }
 0x125   : > { %v1935_v7 = vadd.f32 %v9799_v29, %v1934_v6  ;;  %v8550_v8 = vpop.f32.mrb[26].mxu0  ;;  %8130 = vmatprep.subr.bf16.mxu1 %v3135_v3 }
 0x126   : > { %v1946_v10 = vadd.f32 %v8550_v8, %v9799_v29  ;;  %v1937_v44 = vpop.f32.mrb[27].mxu0  ;;  %8131 = vmatpush3.bf16.msra.mxu1 %v9832_v61  ;;  %v2887_v14 = vmax.f32 %v1943_v5, 0.0  ;;  %v9017_v61 = vld [vmem:[%s11020_s0 + $0x228] sm:$0xff]  }
 0x127   : > { %v1938_v11 = vadd.f32 %v9799_v29, %v1937_v44  ;;  %8132 = vmatprep.subr.bf16.mxu1 %v3136_v2  ;;  %v2885_v16 = vmax.f32 %v1935_v7, 0.0 }
 0x128   : > { %v2888_v15 = vmax.f32 %v1946_v10, 0.0  ;;  %8656 = vmatmul.mubr.msk.bf16.gmra.mrb[132].mxu0 %vm1419_vm0, %v9013_v45  ;;  %v9029_v10 = vld [vmem:[%s11020_s0 + $0x258] sm:$0xff]  }
 0x129   : > { %v2886_v17 = vmax.f32 %v1938_v11, 0.0  ;;  %8659 = vmatprep.mubr.msk.bf16.mxu0 %vm1419_vm0, %v9016_v9 }
 0x12a   : > { %v3138_v18 = vpack.c.bf16 %v2888_v15, %v2887_v14  ;;  %8133 = vmatpush3.bf16.msra.mxu1 %v9830_v60  ;;  %v9032_v14 = vld [vmem:[%s11020_s0 + $0x260] sm:$0xff]  }
 0x12b   : > { %v3137_v19 = vpack.c.bf16 %v2886_v17, %v2885_v16  ;;  %v8553_v20 = vpop.f32.mrb[28].mxu0 }
 0x12c   : > { %v1959_v22 = vadd.f32 %v8553_v20, %v9799_v29  ;;  %v1950_v23 = vpop.f32.mrb[29].mxu0 }
 0x12d   : > { %v1951_v24 = vadd.f32 %v9799_v29, %v1950_v23  ;;  %v8554_v25 = vpop.f32.mrb[30].mxu0  ;;  %8134 = vmatprep.subr.bf16.mxu1 %v3137_v19 }
 0x12e   : > { %v1962_v27 = vadd.f32 %v8554_v25, %v9799_v29  ;;  %v1953_v60 = vpop.f32.mrb[31].mxu0  ;;  %8135 = vmatpush3.bf16.msra.mxu1 %v9848_v13  ;;  %v2891_v32 = vmax.f32 %v1959_v22, 0.0  ;;  %v9021_v13 = vld [vmem:[%s11020_s0 + $0x238] sm:$0xff]  }
 0x12f   : > { %v1954_v28 = vadd.f32 %v9799_v29, %v1953_v60  ;;  %8136 = vmatprep.subr.bf16.mxu1 %v3138_v18  ;;  %v2889_v34 = vmax.f32 %v1951_v24, 0.0 }
 0x130   : > { %v2892_v33 = vmax.f32 %v1962_v27, 0.0  ;;  %8660 = vmatmul.mubr.msk.bf16.gmra.mrb[136].mxu0 %vm1419_vm0, %v9017_v61  ;;  %v9033_v27 = vld [vmem:[%s11020_s0 + $0x268] sm:$0xff]  }
 0x131   : > { %v2890_v35 = vmax.f32 %v1954_v28, 0.0  ;;  %8663 = vmatprep.mubr.msk.bf16.mxu0 %vm1419_vm0, %v9020_v26 }
 0x132   : > { %v3140_v36 = vpack.c.bf16 %v2892_v33, %v2891_v32  ;;  %8137 = vmatpush3.bf16.msra.mxu1 %v9846_v12  ;;  %v9036_v32 = vld [vmem:[%s11020_s0 + $0x270] sm:$0xff]  }
 0x133   : > { %v3139_v37 = vpack.c.bf16 %v2890_v35, %v2889_v34  ;;  %v8557_v38 = vpop.f32.mrb[32].mxu0 }
 0x134   : > { %v1975_v39 = vadd.f32 %v8557_v38, %v9799_v29  ;;  %v1966_v40 = vpop.f32.mrb[33].mxu0 }
 0x135   : > { %v1967_v41 = vadd.f32 %v9799_v29, %v1966_v40  ;;  %v8558_v42 = vpop.f32.mrb[34].mxu0  ;;  %8138 = vmatprep.subr.bf16.mxu1 %v3139_v37 }
 0x136   : > { %v1978_v46 = vadd.f32 %v8558_v42, %v9799_v29  ;;  %v1969_v12 = vpop.f32.mrb[35].mxu0  ;;  %8139 = vmatpush3.bf16.msra.mxu1 %v9864_v31  ;;  %v2895_v49 = vmax.f32 %v1975_v39, 0.0 }
 0x137   : > { %v1970_v47 = vadd.f32 %v9799_v29, %v1969_v12  ;;  %8140 = vmatprep.subr.bf16.mxu1 %v3140_v36  ;;  %v2893_v51 = vmax.f32 %v1967_v41, 0.0 }
 0x138   : > { %v2896_v50 = vmax.f32 %v1978_v46, 0.0  ;;  %8664 = vmatmul.mubr.msk.bf16.gmra.mrb[140].mxu0 %vm1419_vm0, %v9021_v13  ;;  %v9037_v46 = vld [vmem:[%s11020_s0 + $0x278] sm:$0xff]  }
 0x139   : > { %v2894_v52 = vmax.f32 %v1970_v47, 0.0  ;;  %8667 = vmatprep.mubr.msk.bf16.mxu0 %vm1419_vm0, %v9024_v43 }
 0x13a   : > { %v9940_v31 = vpack.c.bf16 %v2896_v50, %v2895_v49  ;;  %8141 = vmatpush3.bf16.msra.mxu1 %v9862_v30  ;;  %v9028_v30 = vld [vmem:[%s11020_s0 + $0x250] sm:$0xff]   ;;  %v9040_v49 = vld [vmem:[%s11020_s0 + $0x280] sm:$0xff]  }
 0x13b   : > { %v9945_v55 = vpack.c.bf16 %v2894_v52, %v2893_v51  ;;  %v8561_v56 = vpop.f32.mrb[36].mxu0 }
 0x13c   : > { %v1991_v57 = vadd.f32 %v8561_v56, %v9799_v29  ;;  %v1982_v58 = vpop.f32.mrb[37].mxu0 }
 0x13d   : > { %v1983_v62 = vadd.f32 %v9799_v29, %v1982_v58  ;;  %v8562_v21 = vpop.f32.mrb[38].mxu0  ;;  %3342 = vmatmul.mubr.bf16.vlgmr.msra.gmra.mrb[68].mxu1 %v7759_v53 }
 0x13e   : > { %v1994_v63 = vadd.f32 %v8562_v21, %v9799_v29  ;;  %v1985_v0 = vpop.f32.mrb[39].mxu0  ;;  %3381 = vmatprep.mubr.bf16.mxu1 %v7762_v54  ;;  %v2899_v2 = vmax.f32 %v1991_v57, 0.0 }
 0x13f   : > { %v1986_v1 = vadd.f32 %v9799_v29, %v1985_v0  ;;  %v2897_v4 = vmax.f32 %v1983_v62, 0.0 }
 0x140   : > { %v2900_v3 = vmax.f32 %v1994_v63, 0.0  ;;  %8668 = vmatmul.mubr.msk.bf16.gmra.mrb[144].mxu0 %vm1419_vm0, %v9025_v59  ;;  %v9041_v63 = vld [vmem:[%s11020_s0 + $0x288] sm:$0xff]  }
 0x141   : > { %v2898_v5 = vmax.f32 %v1986_v1, 0.0  ;;  %8671 = vmatprep.mubr.msk.bf16.mxu0 %vm1419_vm0, %v9028_v30 }
 0x142   : > { %v9959_v6 = vpack.c.bf16 %v2900_v3, %v2899_v2  ;;  %v9042_v2 = vld [vmem:[%s11020_s0 + $0x290] sm:$0xff]  }
 0x143   : > { %v9961_v45 = vpack.c.bf16 %v2898_v5, %v2897_v4  ;;  %v8565_v7 = vpop.f32.mrb[40].mxu0 }
 0x144   : > { %v2007_v8 = vadd.f32 %v8565_v7, %v9799_v29  ;;  %v1998_v9 = vpop.f32.mrb[41].mxu0 }
 0x145   : > { %v1999_v44 = vadd.f32 %v9799_v29, %v1998_v9  ;;  %v8566_v11 = vpop.f32.mrb[42].mxu0 }
 0x146   : > { %v2010_v15 = vadd.f32 %v8566_v11, %v9799_v29  ;;  %v2001_v16 = vpop.f32.mrb[43].mxu0  ;;  %v2903_v18 = vmax.f32 %v2007_v8, 0.0 }
 0x147   : > { %v2002_v17 = vadd.f32 %v9799_v29, %v2001_v16  ;;  %v2901_v20 = vmax.f32 %v1999_v44, 0.0 }
 0x148   : > { %v2904_v19 = vmax.f32 %v2010_v15, 0.0  ;;  %8672 = vmatmul.mubr.msk.bf16.gmra.mrb[148].mxu0 %vm1419_vm0, %v9029_v10 }
 0x149   : > { %v2902_v22 = vmax.f32 %v2002_v17, 0.0  ;;  %8675 = vmatprep.mubr.msk.bf16.mxu0 %vm1419_vm0, %v9032_v14 }
 0x14a   : > { %v9975_v23 = vpack.c.bf16 %v2904_v19, %v2903_v18  ;;  %v9044_v19 = vld [vmem:[%s11020_s0 + $0x2a0] sm:$0xff]  }
 0x14b   : > { %v9977_v61 = vpack.c.bf16 %v2902_v22, %v2901_v20  ;;  %v8569_v24 = vpop.f32.mrb[44].mxu0 }
 0x14c   : > { %v2023_v25 = vadd.f32 %v8569_v24, %v9799_v29  ;;  %v2014_v26 = vpop.f32.mrb[45].mxu0 }
 0x14d   : > { %v2015_v60 = vadd.f32 %v9799_v29, %v2014_v26  ;;  %v8570_v28 = vpop.f32.mrb[46].mxu0 }
 0x14e   : > { %v2026_v33 = vadd.f32 %v8570_v28, %v9799_v29  ;;  %v2017_v34 = vpop.f32.mrb[47].mxu0  ;;  %v2907_v36 = vmax.f32 %v2023_v25, 0.0 }
 0x14f   : > { %v2018_v35 = vadd.f32 %v9799_v29, %v2017_v34  ;;  %v2905_v38 = vmax.f32 %v2015_v60, 0.0 }
 0x150   : > { %v2908_v37 = vmax.f32 %v2026_v33, 0.0  ;;  %8676 = vmatmul.mubr.msk.bf16.gmra.mrb[152].mxu0 %vm1419_vm0, %v9033_v27 }
 0x151   : > { %v2906_v39 = vmax.f32 %v2018_v35, 0.0  ;;  %8679 = vmatprep.mubr.msk.bf16.mxu0 %vm1419_vm0, %v9036_v32 }
 0x152   : > { %v9991_v40 = vpack.c.bf16 %v2908_v37, %v2907_v36  ;;  %v9046_v37 = vld [vmem:[%s11020_s0 + $0x2b0] sm:$0xff]  }
 0x153   : > { %v9993_v13 = vpack.c.bf16 %v2906_v39, %v2905_v38  ;;  %v8573_v41 = vpop.f32.mrb[48].mxu0 }
 0x154   : > { %v2039_v42 = vadd.f32 %v8573_v41, %v9799_v29  ;;  %v2030_v43 = vpop.f32.mrb[49].mxu0 }
 0x155   : > { %v2031_v12 = vadd.f32 %v9799_v29, %v2030_v43  ;;  %v8574_v47 = vpop.f32.mrb[50].mxu0 }
 0x156   : > { %v2042_v50 = vadd.f32 %v8574_v47, %v9799_v29  ;;  %v2033_v51 = vpop.f32.mrb[51].mxu0  ;;  %v2911_v53 = vmax.f32 %v2039_v42, 0.0 }
 0x157   : > { %v2034_v52 = vadd.f32 %v9799_v29, %v2033_v51  ;;  %v2909_v56 = vmax.f32 %v2031_v12, 0.0 }
 0x158   : > { %v2912_v54 = vmax.f32 %v2042_v50, 0.0  ;;  %8680 = vmatmul.mubr.msk.bf16.gmra.mrb[156].mxu0 %vm1419_vm0, %v9037_v46 }
 0x159   : > { %v2910_v57 = vmax.f32 %v2034_v52, 0.0  ;;  %8683 = vmatprep.mubr.msk.bf16.mxu0 %vm1419_vm0, %v9040_v49 }
 0x15a   : > { %v3150_v58 = vpack.c.bf16 %v2912_v54, %v2911_v53  ;;  %v9048_v54 = vld [vmem:[%s11020_s0 + $0x2c0] sm:$0xff]  }
 0x15b   : > { %v3149_v59 = vpack.c.bf16 %v2910_v57, %v2909_v56  ;;  %v8577_v62 = vpop.f32.mrb[52].mxu0 }
 0x15c   : > { %v2055_v21 = vadd.f32 %v8577_v62, %v9799_v29  ;;  %v2046_v30 = vpop.f32.mrb[53].mxu0 }
 0x15d   : > { %v2047_v0 = vadd.f32 %v9799_v29, %v2046_v30  ;;  %v8578_v1 = vpop.f32.mrb[54].mxu0  ;;  %8148 = vmatprep.subr.bf16.mxu1 %v3149_v59 }
 0x15e   : > { %v2058_v3 = vadd.f32 %v8578_v1, %v9799_v29  ;;  %v2049_v4 = vpop.f32.mrb[55].mxu0  ;;  %8149 = vmatpush3.bf16.msra.mxu1 %v9945_v55  ;;  %v2915_v7 = vmax.f32 %v2055_v21, 0.0  ;;  %v9043_v55 = vld [vmem:[%s11020_s0 + $0x298] sm:$0xff]  }
 0x15f   : > { %v2050_v5 = vadd.f32 %v9799_v29, %v2049_v4  ;;  %8150 = vmatprep.subr.bf16.mxu1 %v3150_v58  ;;  %v2913_v9 = vmax.f32 %v2047_v0, 0.0  ;;  %v10063_v58 = vld [vmem:[%s11022_s2 + $0x10] sm:$0xff] }
 0x160   : > { %v2916_v8 = vmax.f32 %v2058_v3, 0.0  ;;  %8684 = vmatmul.mubr.msk.bf16.gmra.mrb[160].mxu0 %vm1419_vm0, %v9041_v63  ;;  %v7761_v63 = vcombine.low %v9934_v48, %v9934_v48  ;;  %v7764_v0 = vcombine.high %v10063_v58, %v10063_v58 }
 0x161   : > { %v2914_v10 = vmax.f32 %v2050_v5, 0.0  ;;  %8687 = vmatprep.mubr.msk.bf16.mxu0 %vm1419_vm0, %v9042_v2  ;;  %v9049_v5 = vld [vmem:[%s11020_s0 + $0x2c8] sm:$0xff]  }
 0x162   : > { %v3152_v44 = vpack.c.bf16 %v2916_v8, %v2915_v7  ;;  %8151 = vmatpush3.bf16.msra.mxu1 %v9940_v31 }
 0x163   : > { %v3151_v11 = vpack.c.bf16 %v2914_v10, %v2913_v9  ;;  %v8581_v14 = vpop.f32.mrb[56].mxu0 }
 0x164   : > { %v2071_v15 = vadd.f32 %v8581_v14, %v9799_v29  ;;  %v2062_v16 = vpop.f32.mrb[57].mxu0 }
 0x165   : > { %v2063_v17 = vadd.f32 %v9799_v29, %v2062_v16  ;;  %v8582_v18 = vpop.f32.mrb[58].mxu0  ;;  %8152 = vmatprep.subr.bf16.mxu1 %v3151_v11 }
 0x166   : > { %v2074_v20 = vadd.f32 %v8582_v18, %v9799_v29  ;;  %v2065_v31 = vpop.f32.mrb[59].mxu0  ;;  %8153 = vmatpush3.bf16.msra.mxu1 %v9961_v45  ;;  %v2919_v24 = vmax.f32 %v2071_v15, 0.0  ;;  %v9045_v45 = vld [vmem:[%s11020_s0 + $0x2a8] sm:$0xff]  }
 0x167   : > { %v2066_v22 = vadd.f32 %v9799_v29, %v2065_v31  ;;  %8154 = vmatprep.subr.bf16.mxu1 %v3152_v44  ;;  %v2917_v26 = vmax.f32 %v2063_v17, 0.0 }
 0x168   : > { %v2920_v25 = vmax.f32 %v2074_v20, 0.0  ;;  %8688 = vmatmul.mubr.msk.bf16.gmra.mrb[164].mxu0 %vm1419_vm0, %v9043_v55  ;;  %v9051_v20 = vld [vmem:[%s11020_s0 + $0x2d8] sm:$0xff]  }
 0x169   : > { %v2918_v27 = vmax.f32 %v2066_v22, 0.0  ;;  %8691 = vmatprep.mubr.msk.bf16.mxu0 %vm1419_vm0, %v9044_v19 }
 0x16a   : > { %v3154_v60 = vpack.c.bf16 %v2920_v25, %v2919_v24  ;;  %8155 = vmatpush3.bf16.msra.mxu1 %v9959_v6  ;;  %v9052_v24 = vld [vmem:[%s11020_s0 + $0x2e0] sm:$0xff]  }
 0x16b   : > { %v3153_v28 = vpack.c.bf16 %v2918_v27, %v2917_v26  ;;  %v8585_v32 = vpop.f32.mrb[60].mxu0 }
 0x16c   : > { %v2087_v33 = vadd.f32 %v8585_v32, %v9799_v29  ;;  %v2078_v34 = vpop.f32.mrb[61].mxu0 }
 0x16d   : > { %v2079_v35 = vadd.f32 %v9799_v29, %v2078_v34  ;;  %v8586_v36 = vpop.f32.mrb[62].mxu0  ;;  %8156 = vmatprep.subr.bf16.mxu1 %v3153_v28 }
 0x16e   : > { %v2090_v38 = vadd.f32 %v8586_v36, %v9799_v29  ;;  %v2081_v6 = vpop.f32.mrb[63].mxu0  ;;  %8157 = vmatpush3.bf16.msra.mxu1 %v9977_v61  ;;  %v2923_v41 = vmax.f32 %v2087_v33, 0.0  ;;  %v9047_v61 = vld [vmem:[%s11020_s0 + $0x2b8] sm:$0xff]  }
 0x16f   : > { %v2082_v39 = vadd.f32 %v9799_v29, %v2081_v6  ;;  %8158 = vmatprep.subr.bf16.mxu1 %v3154_v60  ;;  %v2921_v43 = vmax.f32 %v2079_v35, 0.0 }
 0x170   : > { %v2924_v42 = vmax.f32 %v2090_v38, 0.0  ;;  %8692 = vmatmul.mubr.msk.bf16.gmra.mrb[168].mxu0 %vm1419_vm0, %v9045_v45  ;;  %v9053_v38 = vld [vmem:[%s11020_s0 + $0x2e8] sm:$0xff]  }
 0x171   : > { %v2922_v46 = vmax.f32 %v2082_v39, 0.0  ;;  %8695 = vmatprep.mubr.msk.bf16.mxu0 %vm1419_vm0, %v9046_v37 }
 0x172   : > { %v3156_v12 = vpack.c.bf16 %v2924_v42, %v2923_v41  ;;  %8159 = vmatpush3.bf16.msra.mxu1 %v9975_v23 }
 0x173   : > { %v3155_v47 = vpack.c.bf16 %v2922_v46, %v2921_v43  ;;  %v8589_v49 = vpop.f32.mrb[64].mxu0 }
 0x174   : > { %v2103_v50 = vadd.f32 %v8589_v49, %v9799_v29  ;;  %v2094_v51 = vpop.f32.mrb[65].mxu0 }
 0x175   : > { %v2095_v52 = vadd.f32 %v9799_v29, %v2094_v51  ;;  %v8590_v53 = vpop.f32.mrb[66].mxu0  ;;  %8160 = vmatprep.subr.bf16.mxu1 %v3155_v47 }
 0x176   : > { %v2106_v56 = vadd.f32 %v8590_v53, %v9799_v29  ;;  %v2097_v23 = vpop.f32.mrb[67].mxu0  ;;  %8161 = vmatpush3.bf16.msra.mxu1 %v9993_v13  ;;  %v2927_v59 = vmax.f32 %v2103_v50, 0.0 }
 0x177   : > { %v2098_v57 = vadd.f32 %v9799_v29, %v2097_v23  ;;  %8162 = vmatprep.subr.bf16.mxu1 %v3156_v12  ;;  %v2925_v21 = vmax.f32 %v2095_v52, 0.0 }
 0x178   : > { %v2928_v62 = vmax.f32 %v2106_v56, 0.0  ;;  %8696 = vmatmul.mubr.msk.bf16.gmra.mrb[172].mxu0 %vm1419_vm0, %v9047_v61 }
 0x179   : > { %v2926_v30 = vmax.f32 %v2098_v57, 0.0  ;;  %8699 = vmatprep.mubr.msk.bf16.mxu0 %vm1419_vm0, %v9048_v54 }
 0x17a   : > { %v10069_v13 = vpack.c.bf16 %v2928_v62, %v2927_v59  ;;  %8163 = vmatpush3.bf16.msra.mxu1 %v9991_v40  ;;  %v9050_v40 = vld [vmem:[%s11020_s0 + $0x2d0] sm:$0xff]  }
 0x17b   : > { %v10074_v1 = vpack.c.bf16 %v2926_v30, %v2925_v21  ;;  %v8593_v2 = vpop.f32.mrb[68].mxu0 }
 0x17c   : > { %v2119_v3 = vadd.f32 %v8593_v2, %v9799_v29  ;;  %v2110_v4 = vpop.f32.mrb[69].mxu0 }
 0x17d   : > { %v2111_v7 = vadd.f32 %v9799_v29, %v2110_v4  ;;  %v8594_v48 = vpop.f32.mrb[70].mxu0  ;;  %3382 = vmatmul.mubr.bf16.vlgmr.msra.gmra.mrb[72].mxu1 %v7761_v63 }
 0x17e   : > { %v2122_v8 = vadd.f32 %v8594_v48, %v9799_v29  ;;  %v2113_v9 = vpop.f32.mrb[71].mxu0  ;;  %3421 = vmatprep.mubr.bf16.mxu1 %v7764_v0  ;;  %v2931_v44 = vmax.f32 %v2119_v3, 0.0 }
 0x17f   : > { %v2114_v10 = vadd.f32 %v9799_v29, %v2113_v9  ;;  %v2929_v14 = vmax.f32 %v2111_v7, 0.0 }
 0x180   : > { %v2932_v11 = vmax.f32 %v2122_v8, 0.0  ;;  %8700 = vmatmul.mubr.msk.bf16.gmra.mrb[176].mxu0 %vm1419_vm0, %v9049_v5 }
 0x181   : > { %v2930_v15 = vmax.f32 %v2114_v10, 0.0  ;;  %8703 = vmatprep.mubr.msk.bf16.mxu0 %vm1419_vm0, %v9050_v40 }
 0x182   : > { %v10088_v16 = vpack.c.bf16 %v2932_v11, %v2931_v44 }
 0x183   : > { %v10090_v55 = vpack.c.bf16 %v2930_v15, %v2929_v14  ;;  %v8597_v17 = vpop.f32.mrb[72].mxu0 }
 0x184   : > { %v2135_v18 = vadd.f32 %v8597_v17, %v9799_v29  ;;  %v2126_v19 = vpop.f32.mrb[73].mxu0 }
 0x185   : > { %v2127_v31 = vadd.f32 %v9799_v29, %v2126_v19  ;;  %v8598_v22 = vpop.f32.mrb[74].mxu0 }
 0x186   : > { %v2138_v25 = vadd.f32 %v8598_v22, %v9799_v29  ;;  %v2129_v26 = vpop.f32.mrb[75].mxu0  ;;  %v2935_v60 = vmax.f32 %v2135_v18, 0.0 }
 0x187   : > { %v2130_v27 = vadd.f32 %v9799_v29, %v2129_v26  ;;  %v2933_v32 = vmax.f32 %v2127_v31, 0.0 }
 0x188   : > { %v2936_v28 = vmax.f32 %v2138_v25, 0.0  ;;  %8704 = vmatmul.mubr.msk.bf16.gmra.mrb[180].mxu0 %vm1419_vm0, %v9051_v20  ;;  %v8713_v25 = vpop.f32.mrb[0].mxu1 }
 0x189   : > { %v2934_v33 = vmax.f32 %v2130_v27, 0.0  ;;  %8707 = vmatprep.mubr.msk.bf16.mxu0 %vm1419_vm0, %v9052_v24  ;;  %v2590_v27 = vpop.f32.mrb[1].mxu1 }
 0x18a   : > { %v10104_v34 = vpack.c.bf16 %v2936_v28, %v2935_v60  ;;  %v8714_v28 = vpop.f32.mrb[2].mxu1 }
 0x18b   : > { %v10106_v45 = vpack.c.bf16 %v2934_v33, %v2933_v32  ;;  %v8601_v35 = vpop.f32.mrb[76].mxu0 }
 0x18c   : > { %v2151_v36 = vadd.f32 %v8601_v35, %v9799_v29  ;;  %v2142_v37 = vpop.f32.mrb[77].mxu0  ;;  %v2593_v35 = vpop.f32.mrb[3].mxu1 }
 0x18d   : > { %v2143_v6 = vadd.f32 %v9799_v29, %v2142_v37  ;;  %v8602_v39 = vpop.f32.mrb[78].mxu0  ;;  %v2599_v37 = vadd.f32 %v8713_v25, %v9799_v29 }
 0x18e   : > { %v2154_v41 = vadd.f32 %v8602_v39, %v9799_v29  ;;  %v2145_v42 = vpop.f32.mrb[79].mxu0  ;;  %v2939_v46 = vmax.f32 %v2151_v36, 0.0 }
 0x18f   : > { %v2146_v43 = vadd.f32 %v9799_v29, %v2145_v42  ;;  %v2937_v47 = vmax.f32 %v2143_v6, 0.0 }
 0x190   : > { %v2940_v12 = vmax.f32 %v2154_v41, 0.0  ;;  %8708 = vmatmul.mubr.msk.bf16.gmra.mrb[184].mxu0 %vm1419_vm0, %v9053_v38  ;;  %v2591_v38 = vadd.f32 %v9799_v29, %v2590_v27  ;;  %v2594_v41 = vadd.f32 %v9799_v29, %v2593_v35 }
 0x191   : > { %v2938_v49 = vmax.f32 %v2146_v43, 0.0 }
 0x192   : > { %v10116_v50 = vpack.c.bf16 %v2940_v12, %v2939_v46  ;;  %v3051_v46 = vmax.f32 %v2599_v37, 0.0  ;;  %v3049_v12 = vmax.f32 %v2591_v38, 0.0 }
 0x193   : > { %v10118_v51 = vpack.c.bf16 %v2938_v49, %v2937_v47  ;;  %v8605_v61 = vpop.f32.mrb[80].mxu0 }
 0x194   : > { %v2167_v52 = vadd.f32 %v8605_v61, %v9799_v29  ;;  %v2158_v53 = vpop.f32.mrb[81].mxu0 }
 0x195   : > { %v2159_v54 = vadd.f32 %v9799_v29, %v2158_v53  ;;  %v8606_v56 = vpop.f32.mrb[82].mxu0 }
 0x196   : > { %v2170_v23 = vadd.f32 %v8606_v56, %v9799_v29  ;;  %v2161_v57 = vpop.f32.mrb[83].mxu0  ;;  %v2943_v62 = vmax.f32 %v2167_v52, 0.0  ;;  %v8717_v56 = vpop.f32.mrb[4].mxu1 }
 0x197   : > { %v2162_v59 = vadd.f32 %v9799_v29, %v2161_v57  ;;  %v2941_v30 = vmax.f32 %v2159_v54, 0.0 }
 0x198   : > { %v2944_v21 = vmax.f32 %v2170_v23, 0.0 }
 0x199   : > { %v2942_v63 = vmax.f32 %v2162_v59, 0.0  ;;  %v2606_v59 = vpop.f32.mrb[5].mxu1 }
 0x19a   : > { %v3166_v0 = vpack.c.bf16 %v2944_v21, %v2943_v62 }
 0x19b   : > { %v3165_v2 = vpack.c.bf16 %v2942_v63, %v2941_v30  ;;  %v8609_v3 = vpop.f32.mrb[84].mxu0  ;;  %v8718_v30 = vpop.f32.mrb[6].mxu1 }
 0x19c   : > { %v2183_v4 = vadd.f32 %v8609_v3, %v9799_v29  ;;  %v2174_v5 = vpop.f32.mrb[85].mxu0 }
 0x19d   : > { %v2175_v7 = vadd.f32 %v9799_v29, %v2174_v5  ;;  %v8610_v48 = vpop.f32.mrb[86].mxu0  ;;  %8170 = vmatprep.subr.bf16.mxu1 %v3165_v2  ;;  %v2609_v2 = vpop.f32.mrb[7].mxu1  ;;  %v2618_v5 = vadd.f32 %v8718_v30, %v9799_v29 }
 0x19e   : > { %v2186_v40 = vadd.f32 %v8610_v48, %v9799_v29  ;;  %v2177_v8 = vpop.f32.mrb[87].mxu0  ;;  %8171 = vmatpush3.bf16.msra.mxu1 %v10074_v1  ;;  %v2947_v10 = vmax.f32 %v2183_v4, 0.0  ;;  %v2607_v4 = vadd.f32 %v9799_v29, %v2606_v59 }
 0x19f   : > { %v2178_v9 = vadd.f32 %v9799_v29, %v2177_v8  ;;  %8172 = vmatprep.subr.bf16.mxu1 %v3166_v0  ;;  %v2945_v11 = vmax.f32 %v2175_v7, 0.0 }
 0x1a0   : > { %v2948_v44 = vmax.f32 %v2186_v40, 0.0  ;;  %v2610_v40 = vadd.f32 %v9799_v29, %v2609_v2 }
 0x1a1   : > { %v2946_v14 = vmax.f32 %v2178_v9, 0.0 }
 0x1a2   : > { %v3168_v15 = vpack.c.bf16 %v2948_v44, %v2947_v10  ;;  %8173 = vmatpush3.bf16.msra.mxu1 %v10069_v13  ;;  %v3053_v44 = vmax.f32 %v2607_v4, 0.0 }
 0x1a3   : > { %v3167_v17 = vpack.c.bf16 %v2946_v14, %v2945_v11  ;;  %v8613_v18 = vpop.f32.mrb[88].mxu0  ;;  %v3056_v11 = vmax.f32 %v2618_v5, 0.0 }
 0x1a4   : > { %v2199_v19 = vadd.f32 %v8613_v18, %v9799_v29  ;;  %v2190_v20 = vpop.f32.mrb[89].mxu0 }
 0x1a5   : > { %v2191_v31 = vadd.f32 %v9799_v29, %v2190_v20  ;;  %v8614_v22 = vpop.f32.mrb[90].mxu0  ;;  %8174 = vmatprep.subr.bf16.mxu1 %v3167_v17 }
 0x1a6   : > { %v2202_v1 = vadd.f32 %v8614_v22, %v9799_v29  ;;  %v2193_v24 = vpop.f32.mrb[91].mxu0  ;;  %8175 = vmatpush3.bf16.msra.mxu1 %v10090_v55  ;;  %v2951_v13 = vmax.f32 %v2199_v19, 0.0  ;;  %v2602_v55 = vadd.f32 %v8714_v28, %v9799_v29  ;;  %v10161_v19 = vld [vmem:[%s11022_s2 + $0x18] sm:$0xff] }
 0x1a7   : > { %v2194_v26 = vadd.f32 %v9799_v29, %v2193_v24  ;;  %8176 = vmatprep.subr.bf16.mxu1 %v3168_v15  ;;  %v2949_v32 = vmax.f32 %v2191_v31, 0.0  ;;  %v8721_v31 = vpop.f32.mrb[8].mxu1  ;;  %v7766_v28 = vcombine.high %v10161_v19, %v10161_v19 }
 0x1a8   : > { %v2952_v60 = vmax.f32 %v2202_v1, 0.0  ;;  %v3052_v47 = vmax.f32 %v2602_v55, 0.0  ;;  %v2622_v24 = vpop.f32.mrb[9].mxu1 }
 0x1a9   : > { %v2950_v33 = vmax.f32 %v2194_v26, 0.0  ;;  %v8722_v27 = vpop.f32.mrb[10].mxu1 }
 0x1aa   : > { %v3170_v36 = vpack.c.bf16 %v2952_v60, %v2951_v13  ;;  %8177 = vmatpush3.bf16.msra.mxu1 %v10088_v16  ;;  %v3050_v16 = vmax.f32 %v2594_v41, 0.0  ;;  %v10144_v54 = vpack.c.bf16 %v3052_v47, %v3051_v46 }
 0x1ab   : > { %v3169_v6 = vpack.c.bf16 %v2950_v33, %v2949_v32  ;;  %v8617_v39 = vpop.f32.mrb[92].mxu0  ;;  %v2625_v32 = vpop.f32.mrb[11].mxu1 }
 0x1ac   : > { %v2215_v42 = vadd.f32 %v8617_v39, %v9799_v29  ;;  %v2206_v43 = vpop.f32.mrb[93].mxu0  ;;  %v10147_v57 = vpack.c.bf16 %v3050_v16, %v3049_v12  ;;  %v8725_v16 = vpop.f32.mrb[12].mxu1 }
 0x1ad   : > { %v2207_v49 = vadd.f32 %v9799_v29, %v2206_v43  ;;  %v8618_v61 = vpop.f32.mrb[94].mxu0  ;;  %8178 = vmatprep.subr.bf16.mxu1 %v3169_v6 }
 0x1ae   : > { %v2218_v52 = vadd.f32 %v8618_v61, %v9799_v29  ;;  %v2209_v53 = vpop.f32.mrb[95].mxu0  ;;  %8179 = vmatpush3.bf16.msra.mxu1 %v10106_v45  ;;  %v2955_v62 = vmax.f32 %v2215_v42, 0.0  ;;  %v2615_v45 = vadd.f32 %v8717_v56, %v9799_v29  ;;  %v2638_v56 = vpop.f32.mrb[13].mxu1 }
 0x1af   : > { %v2210_v23 = vadd.f32 %v9799_v29, %v2209_v53  ;;  %8180 = vmatprep.subr.bf16.mxu1 %v3170_v36  ;;  %v2953_v63 = vmax.f32 %v2207_v49, 0.0 }
 0x1b0   : > { %v2956_v21 = vmax.f32 %v2218_v52, 0.0  ;;  %v3055_v10 = vmax.f32 %v2615_v45, 0.0 }
 0x1b1   : > { %v2954_v0 = vmax.f32 %v2210_v23, 0.0 }
 0x1b2   : > { %v3172_v3 = vpack.c.bf16 %v2956_v21, %v2955_v62  ;;  %8181 = vmatpush3.bf16.msra.mxu1 %v10104_v34  ;;  %v3054_v34 = vmax.f32 %v2610_v40, 0.0  ;;  %v10163_v20 = vpack.c.bf16 %v3056_v11, %v3055_v10  ;;  %v8726_v62 = vpop.f32.mrb[14].mxu1 }
 0x1b3   : > { %v3171_v7 = vpack.c.bf16 %v2954_v0, %v2953_v63  ;;  %v8621_v48 = vpop.f32.mrb[96].mxu0  ;;  %v2641_v63 = vpop.f32.mrb[15].mxu1 }
 0x1b4   : > { %v2231_v8 = vadd.f32 %v8621_v48, %v9799_v29  ;;  %v2222_v9 = vpop.f32.mrb[97].mxu0  ;;  %v10166_v1 = vpack.c.bf16 %v3054_v34, %v3053_v44 }
 0x1b5   : > { %v2223_v14 = vadd.f32 %v9799_v29, %v2222_v9  ;;  %v8622_v15 = vpop.f32.mrb[98].mxu0  ;;  %8182 = vmatprep.subr.bf16.mxu1 %v3171_v7 }
 0x1b6   : > { %v2234_v17 = vadd.f32 %v8622_v15, %v9799_v29  ;;  %v2225_v18 = vpop.f32.mrb[99].mxu0  ;;  %8183 = vmatpush3.bf16.msra.mxu1 %v10118_v51  ;;  %v2959_v25 = vmax.f32 %v2231_v8, 0.0  ;;  %v7763_v51 = vcombine.low %v10063_v58, %v10063_v58 }
 0x1b7   : > { %v2226_v22 = vadd.f32 %v9799_v29, %v2225_v18  ;;  %8184 = vmatprep.subr.bf16.mxu1 %v3172_v3  ;;  %v2957_v13 = vmax.f32 %v2223_v14, 0.0  ;;  %v10178_v29 = vld [vmem:[%s11023_s3] ss:$0 sm:$0xff]  ;;  %v8729_v18 = vpop.f32.mrb[16].mxu1 }
 0x1b8   : > { %v2960_v26 = vmax.f32 %v2234_v17, 0.0  ;;  %v2631_v35 = vadd.f32 %v10178_v29, %v8721_v31  ;;  %v2623_v36 = vadd.f32 %v10178_v29, %v2622_v24  ;;  %v2634_v37 = vadd.f32 %v10178_v29, %v8722_v27  ;;  %v2654_v24 = vpop.f32.mrb[17].mxu1 }
 0x1b9   : > { %v2958_v60 = vmax.f32 %v2226_v22, 0.0  ;;  %v2626_v55 = vadd.f32 %v10178_v29, %v2625_v32  ;;  %v2647_v2 = vadd.f32 %v10178_v29, %v8725_v16  ;;  %v2639_v3 = vadd.f32 %v10178_v29, %v2638_v56  ;;  %v8730_v27 = vpop.f32.mrb[18].mxu1 }
 0x1ba   : > { %v10172_v33 = vpack.c.bf16 %v2960_v26, %v2959_v25  ;;  %8185 = vmatpush3.bf16.msra.mxu1 %v10116_v50  ;;  %v3059_v50 = vmax.f32 %v2631_v35, 0.0  ;;  %v3057_v41 = vmax.f32 %v2623_v36, 0.0  ;;  %v3060_v42 = vmax.f32 %v2634_v37, 0.0 }
 0x1bb   : > { %v10183_v58 = vpack.c.bf16 %v2958_v60, %v2957_v13  ;;  %v8625_v38 = vpop.f32.mrb[100].mxu0  ;;  %v3058_v12 = vmax.f32 %v2626_v55, 0.0  ;;  %v2650_v45 = vadd.f32 %v10178_v29, %v8726_v62  ;;  %v2642_v7 = vadd.f32 %v10178_v29, %v2641_v63 }
 0x1bc   : > { %v2247_v6 = vadd.f32 %v10178_v29, %v8625_v38  ;;  %v2238_v39 = vpop.f32.mrb[101].mxu0  ;;  %v10189_v61 = vpack.c.bf16 %v3060_v42, %v3059_v50  ;;  %v3063_v8 = vmax.f32 %v2647_v2, 0.0  ;;  %v3061_v9 = vmax.f32 %v2639_v3, 0.0 }
 0x1bd   : > { %v2239_v43 = vadd.f32 %v10178_v29, %v2238_v39  ;;  %v8626_v46 = vpop.f32.mrb[102].mxu0  ;;  %3422 = vmatmul.mubr.bf16.vlgmr.msra.gmra.mrb[76].mxu1 %v7763_v51  ;;  %v10192_v53 = vpack.c.bf16 %v3058_v12, %v3057_v41  ;;  %v3064_v10 = vmax.f32 %v2650_v45, 0.0  ;;  %v3062_v14 = vmax.f32 %v2642_v7, 0.0  ;;  %v2657_v51 = vpop.f32.mrb[19].mxu1 }
 0x1be   : > { %v2250_v47 = vadd.f32 %v10178_v29, %v8626_v46  ;;  %v2241_v49 = vpop.f32.mrb[103].mxu0  ;;  %3461 = vmatprep.mubr.bf16.mxu1 %v7766_v28  ;;  %v2963_v23 = vmax.f32 %v2247_v6, 0.0  ;;  %v2663_v32 = vadd.f32 %v10178_v29, %v8729_v18  ;;  %v2655_v35 = vadd.f32 %v10178_v29, %v2654_v24 }
 0x1bf   : > { %v2242_v52 = vadd.f32 %v10178_v29, %v2241_v49  ;;  %v2961_v21 = vmax.f32 %v2239_v43, 0.0  ;;  %v10205_v17 = vpack.c.bf16 %v3064_v10, %v3063_v8  ;;  %v10208_v22 = vpack.c.bf16 %v3062_v14, %v3061_v9 }
 0x1c0   : > { %v2964_v59 = vmax.f32 %v2250_v47, 0.0  ;;  %v2666_v36 = vadd.f32 %v10178_v29, %v8730_v27  ;;  %v2658_v55 = vadd.f32 %v10178_v29, %v2657_v51  ;;  %v3067_v50 = vmax.f32 %v2663_v32, 0.0 }
 0x1c1   : > { %v2962_v30 = vmax.f32 %v2242_v52, 0.0  ;;  %v3065_v41 = vmax.f32 %v2655_v35, 0.0  ;;  %v8733_v52 = vpop.f32.mrb[20].mxu1 }
 0x1c2   : > { %v10194_v0 = vpack.c.bf16 %v2964_v59, %v2963_v23  ;;  %v3068_v42 = vmax.f32 %v2666_v36, 0.0  ;;  %v3066_v12 = vmax.f32 %v2658_v55, 0.0  ;;  %v2670_v59 = vpop.f32.mrb[21].mxu1 }
 0x1c3   : > { %v10199_v4 = vpack.c.bf16 %v2962_v30, %v2961_v21  ;;  %v8629_v5 = vpop.f32.mrb[104].mxu0  ;;  %v8734_v30 = vpop.f32.mrb[22].mxu1  ;;  %v2671_v7 = vadd.f32 %v10178_v29, %v2670_v59 }
 0x1c4   : > { %v2263_v48 = vadd.f32 %v10178_v29, %v8629_v5  ;;  %v2254_v40 = vpop.f32.mrb[105].mxu0  ;;  %v10221_v16 = vpack.c.bf16 %v3068_v42, %v3067_v50  ;;  %v10224_v23 = vpack.c.bf16 %v3066_v12, %v3065_v41  ;;  %v2673_v3 = vpop.f32.mrb[23].mxu1  ;;  %v2679_v5 = vadd.f32 %v10178_v29, %v8733_v52 }
 0x1c5   : > { %v2255_v44 = vadd.f32 %v10178_v29, %v2254_v40  ;;  %v8630_v11 = vpop.f32.mrb[106].mxu0  ;;  %v2674_v9 = vadd.f32 %v10178_v29, %v2673_v3  ;;  %v3069_v14 = vmax.f32 %v2671_v7, 0.0  ;;  %v8737_v27 = vpop.f32.mrb[24].mxu1 }
 0x1c6   : > { %v2266_v15 = vadd.f32 %v10178_v29, %v8630_v11  ;;  %v2257_v34 = vpop.f32.mrb[107].mxu0  ;;  %v2967_v25 = vmax.f32 %v2263_v48, 0.0  ;;  %v2682_v48 = vadd.f32 %v10178_v29, %v8734_v30  ;;  %v3071_v11 = vmax.f32 %v2679_v5, 0.0  ;;  %v2686_v51 = vpop.f32.mrb[25].mxu1 }
 0x1c7   : > { %v2258_v31 = vadd.f32 %v10178_v29, %v2257_v34  ;;  %v2965_v13 = vmax.f32 %v2255_v44, 0.0  ;;  %v8738_v36 = vpop.f32.mrb[26].mxu1  ;;  %v2695_v50 = vadd.f32 %v10178_v29, %v8737_v27  ;;  %v2687_v41 = vadd.f32 %v10178_v29, %v2686_v51 }
 0x1c8   : > { %v2968_v26 = vmax.f32 %v2266_v15, 0.0  ;;  %v3072_v15 = vmax.f32 %v2682_v48, 0.0  ;;  %v2698_v42 = vadd.f32 %v10178_v29, %v8738_v36 }
 0x1c9   : > { %v2966_v60 = vmax.f32 %v2258_v31, 0.0  ;;  %v3070_v31 = vmax.f32 %v2674_v9, 0.0  ;;  %v3075_v52 = vmax.f32 %v2695_v50, 0.0 }
 0x1ca   : > { %v10210_v28 = vpack.c.bf16 %v2968_v26, %v2967_v25  ;;  %v10237_v26 = vpack.c.bf16 %v3072_v15, %v3071_v11  ;;  %v3076_v59 = vmax.f32 %v2698_v42, 0.0 }
 0x1cb   : > { %v10215_v37 = vpack.c.bf16 %v2966_v60, %v2965_v13  ;;  %v8633_v38 = vpop.f32.mrb[108].mxu0  ;;  %v10240_v60 = vpack.c.bf16 %v3070_v31, %v3069_v14 }
 0x1cc   : > { %v2279_v6 = vadd.f32 %v10178_v29, %v8633_v38  ;;  %v2270_v39 = vpop.f32.mrb[109].mxu0  ;;  %v10250_v3 = vpack.c.bf16 %v3076_v59, %v3075_v52 }
 0x1cd   : > { %v2271_v43 = vadd.f32 %v10178_v29, %v2270_v39  ;;  %v8634_v46 = vpop.f32.mrb[110].mxu0 }
 0x1ce   : > { %v2282_v47 = vadd.f32 %v10178_v29, %v8634_v46  ;;  %v2273_v49 = vpop.f32.mrb[111].mxu0  ;;  %v2971_v62 = vmax.f32 %v2279_v6, 0.0  ;;  %v2689_v6 = vpop.f32.mrb[27].mxu1 }
 0x1cf   : > { %v2274_v56 = vadd.f32 %v10178_v29, %v2273_v49  ;;  %v2969_v63 = vmax.f32 %v2271_v43, 0.0  ;;  %v2690_v12 = vadd.f32 %v10178_v29, %v2689_v6  ;;  %v8741_v5 = vpop.f32.mrb[28].mxu1 }
 0x1d0   : > { %v2972_v21 = vmax.f32 %v2282_v47, 0.0 }
 0x1d1   : > { %v2970_v2 = vmax.f32 %v2274_v56, 0.0  ;;  %v3073_v56 = vmax.f32 %v2687_v41, 0.0  ;;  %v3074_v30 = vmax.f32 %v2690_v12, 0.0 }
 0x1d2   : > { %v10226_v45 = vpack.c.bf16 %v2972_v21, %v2971_v62 }
 0x1d3   : > { %v10231_v40 = vpack.c.bf16 %v2970_v2, %v2969_v63  ;;  %v8637_v8 = vpop.f32.mrb[112].mxu0  ;;  %v10253_v48 = vpack.c.bf16 %v3074_v30, %v3073_v56 }
 0x1d4   : > { %v2295_v10 = vadd.f32 %v10178_v29, %v8637_v8  ;;  %v2286_v44 = vpop.f32.mrb[113].mxu0  ;;  %v2702_v8 = vpop.f32.mrb[29].mxu1 }
 0x1d5   : > { %v2287_v34 = vadd.f32 %v10178_v29, %v2286_v44  ;;  %v8638_v18 = vpop.f32.mrb[114].mxu0  ;;  %v8742_v44 = vpop.f32.mrb[30].mxu1 }
 0x1d6   : > { %v2298_v24 = vadd.f32 %v10178_v29, %v8638_v18  ;;  %v2289_v25 = vpop.f32.mrb[115].mxu0  ;;  %v2975_v32 = vmax.f32 %v2295_v10, 0.0  ;;  %v2705_v15 = vpop.f32.mrb[31].mxu1  ;;  %v2703_v18 = vadd.f32 %v10178_v29, %v2702_v8  ;;  %v2714_v31 = vadd.f32 %v10178_v29, %v8742_v44 }
 0x1d7   : > { %v2290_v13 = vadd.f32 %v10178_v29, %v2289_v25  ;;  %v2973_v38 = vmax.f32 %v2287_v34, 0.0  ;;  %v2706_v27 = vadd.f32 %v10178_v29, %v2705_v15  ;;  %v8745_v41 = vpop.f32.mrb[32].mxu1 }
 0x1d8   : > { %v2976_v35 = vmax.f32 %v2298_v24, 0.0  ;;  %v3080_v36 = vmax.f32 %v2714_v31, 0.0 }
 0x1d9   : > { %v2974_v55 = vmax.f32 %v2290_v13, 0.0 }
 0x1da   : > { %v3182_v39 = vpack.c.bf16 %v2976_v35, %v2975_v32  ;;  %v3077_v35 = vmax.f32 %v2703_v18, 0.0 }
 0x1db   : > { %v3181_v43 = vpack.c.bf16 %v2974_v55, %v2973_v38  ;;  %v8641_v46 = vpop.f32.mrb[116].mxu0 }
 0x1dc   : > { %v2311_v47 = vadd.f32 %v10178_v29, %v8641_v46  ;;  %v2302_v49 = vpop.f32.mrb[117].mxu0  ;;  %v2718_v46 = vpop.f32.mrb[33].mxu1 }
 0x1dd   : > { %v2303_v62 = vadd.f32 %v10178_v29, %v2302_v49  ;;  %v8642_v21 = vpop.f32.mrb[118].mxu0  ;;  %8192 = vmatprep.subr.bf16.mxu1 %v3181_v43  ;;  %v8746_v49 = vpop.f32.mrb[34].mxu1 }
 0x1de   : > { %v2314_v63 = vadd.f32 %v10178_v29, %v8642_v21  ;;  %v2305_v2 = vpop.f32.mrb[119].mxu0  ;;  %8193 = vmatpush3.bf16.msra.mxu1 %v10183_v58  ;;  %v2979_v9 = vmax.f32 %v2311_v47, 0.0  ;;  %v2711_v58 = vadd.f32 %v10178_v29, %v8741_v5  ;;  %v2721_v59 = vpop.f32.mrb[35].mxu1  ;;  %v2719_v21 = vadd.f32 %v10178_v29, %v2718_v46 }
 0x1df   : > { %v2306_v7 = vadd.f32 %v10178_v29, %v2305_v2  ;;  %8194 = vmatprep.subr.bf16.mxu1 %v3182_v39  ;;  %v2977_v11 = vmax.f32 %v2303_v62, 0.0  ;;  %v2730_v30 = vadd.f32 %v10178_v29, %v8746_v49  ;;  %v2722_v5 = vadd.f32 %v10178_v29, %v2721_v59  ;;  %v8749_v15 = vpop.f32.mrb[36].mxu1 }
 0x1e0   : > { %v2980_v10 = vmax.f32 %v2314_v63, 0.0  ;;  %v3079_v32 = vmax.f32 %v2711_v58, 0.0  ;;  %v2743_v31 = vadd.f32 %v10178_v29, %v8749_v15 }
 0x1e1   : > { %v2978_v14 = vmax.f32 %v2306_v7, 0.0  ;;  %v3084_v44 = vmax.f32 %v2730_v30, 0.0 }
 0x1e2   : > { %v3184_v34 = vpack.c.bf16 %v2980_v10, %v2979_v9  ;;  %8195 = vmatpush3.bf16.msra.mxu1 %v10172_v33  ;;  %v3078_v33 = vmax.f32 %v2706_v27, 0.0  ;;  %v10264_v50 = vpack.c.bf16 %v3080_v36, %v3079_v32  ;;  %v3081_v10 = vmax.f32 %v2719_v21, 0.0 }
 0x1e3   : > { %v3183_v24 = vpack.c.bf16 %v2978_v14, %v2977_v11  ;;  %v8645_v25 = vpop.f32.mrb[120].mxu0  ;;  %v3087_v36 = vmax.f32 %v2743_v31, 0.0 }
 0x1e4   : > { %v2327_v13 = vadd.f32 %v10178_v29, %v8645_v25  ;;  %v2318_v51 = vpop.f32.mrb[121].mxu0  ;;  %v10267_v43 = vpack.c.bf16 %v3078_v33, %v3077_v35 }
 0x1e5   : > { %v2319_v38 = vadd.f32 %v10178_v29, %v2318_v51  ;;  %v8646_v55 = vpop.f32.mrb[122].mxu0  ;;  %8196 = vmatprep.subr.bf16.mxu1 %v3183_v24  ;;  %v2734_v24 = vpop.f32.mrb[37].mxu1 }
 0x1e6   : > { %v2330_v6 = vadd.f32 %v10178_v29, %v8646_v55  ;;  %v2321_v39 = vpop.f32.mrb[123].mxu0  ;;  %8197 = vmatpush3.bf16.msra.mxu1 %v10199_v4  ;;  %v2983_v12 = vmax.f32 %v2327_v13, 0.0  ;;  %v2727_v4 = vadd.f32 %v10178_v29, %v8745_v41  ;;  %v2735_v13 = vadd.f32 %v10178_v29, %v2734_v24  ;;  %v8750_v51 = vpop.f32.mrb[38].mxu1 }
 0x1e7   : > { %v2322_v42 = vadd.f32 %v10178_v29, %v2321_v39  ;;  %8198 = vmatprep.subr.bf16.mxu1 %v3184_v34  ;;  %v2981_v52 = vmax.f32 %v2319_v38, 0.0  ;;  %v2746_v38 = vadd.f32 %v10178_v29, %v8750_v51  ;;  %v2737_v55 = vpop.f32.mrb[39].mxu1 }
 0x1e8   : > { %v2984_v47 = vmax.f32 %v2330_v6, 0.0  ;;  %v3083_v9 = vmax.f32 %v2727_v4, 0.0  ;;  %v3085_v6 = vmax.f32 %v2735_v13, 0.0  ;;  %v2738_v39 = vadd.f32 %v10178_v29, %v2737_v55  ;;  %v8753_v49 = vpop.f32.mrb[40].mxu1 }
 0x1e9   : > { %v2982_v56 = vmax.f32 %v2322_v42, 0.0  ;;  %v3088_v42 = vmax.f32 %v2746_v38, 0.0 }
 0x1ea   : > { %v3186_v62 = vpack.c.bf16 %v2984_v47, %v2983_v12  ;;  %8199 = vmatpush3.bf16.msra.mxu1 %v10194_v0  ;;  %v3082_v0 = vmax.f32 %v2722_v5, 0.0  ;;  %v10278_v18 = vpack.c.bf16 %v3084_v44, %v3083_v9  ;;  %v3086_v47 = vmax.f32 %v2738_v39, 0.0 }
 0x1eb   : > { %v3185_v63 = vpack.c.bf16 %v2982_v56, %v2981_v52  ;;  %v8649_v2 = vpop.f32.mrb[124].mxu0  ;;  %v10289_v59 = vpack.c.bf16 %v3088_v42, %v3087_v36 }
 0x1ec   : > { %v2343_v7 = vadd.f32 %v10178_v29, %v8649_v2  ;;  %v2334_v8 = vpop.f32.mrb[125].mxu0  ;;  %v10282_v27 = vpack.c.bf16 %v3082_v0, %v3081_v10  ;;  %v10293_v30 = vpack.c.bf16 %v3086_v47, %v3085_v6  ;;  %v2750_v2 = vpop.f32.mrb[41].mxu1 }
 0x1ed   : > { %v2335_v11 = vadd.f32 %v10178_v29, %v2334_v8  ;;  %v8650_v14 = vpop.f32.mrb[126].mxu0  ;;  %8200 = vmatprep.subr.bf16.mxu1 %v3185_v63  ;;  %v10303_v8 = vld [vmem:[%s11022_s2 + $0x20] sm:$0xff]  ;;  %v2751_v9 = vadd.f32 %v10178_v29, %v2750_v2  ;;  %v8754_v10 = vpop.f32.mrb[42].mxu1 }
 0x1ee   : > { %v2346_v34 = vadd.f32 %v10178_v29, %v8650_v14  ;;  %v2337_v58 = vpop.f32.mrb[127].mxu0  ;;  %8201 = vmatpush3.bf16.msra.mxu1 %v10215_v37  ;;  %v2987_v32 = vmax.f32 %v2343_v7, 0.0  ;;  %v7765_v7 = vcombine.low %v10161_v19, %v10161_v19  ;;  %v2753_v0 = vpop.f32.mrb[43].mxu1  ;;  %v7768_v24 = vcombine.high %v10303_v8, %v10303_v8 }
 0x1ef   : > { %v2338_v25 = vadd.f32 %v10178_v29, %v2337_v58  ;;  %8202 = vmatprep.subr.bf16.mxu1 %v3186_v62  ;;  %v2985_v37 = vmax.f32 %v2335_v11, 0.0  ;;  %v2759_v62 = vadd.f32 %v10178_v29, %v8753_v49  ;;  %v3089_v58 = vmax.f32 %v2751_v9, 0.0 }
 0x1f0   : > { %v2988_v35 = vmax.f32 %v2346_v34, 0.0  ;;  %v2754_v31 = vadd.f32 %v10178_v29, %v2753_v0 }
 0x1f1   : > { %v2986_v33 = vmax.f32 %v2338_v25, 0.0  ;;  %v3091_v14 = vmax.f32 %v2759_v62, 0.0 }
 0x1f2   : > { %v3188_v41 = vpack.c.bf16 %v2988_v35, %v2987_v32  ;;  %8203 = vmatpush3.bf16.msra.mxu1 %v10210_v28  ;;  %v3090_v32 = vmax.f32 %v2754_v31, 0.0 }
 0x1f3   : > { %v3187_v46 = vpack.c.bf16 %v2986_v33, %v2985_v37  ;;  %v8653_v12 = vpop.f32.mrb[128].mxu0 }
 0x1f4   : > { %v2359_v52 = vadd.f32 %v10178_v29, %v8653_v12  ;;  %v2350_v56 = vpop.f32.mrb[129].mxu0  ;;  %v10319_v33 = vpack.c.bf16 %v3090_v32, %v3089_v58 }
 0x1f5   : > { %v2351_v4 = vadd.f32 %v10178_v29, %v2350_v56  ;;  %v8654_v21 = vpop.f32.mrb[130].mxu0  ;;  %8204 = vmatprep.subr.bf16.mxu1 %v3187_v46 }
 0x1f6   : > { %v2362_v28 = vadd.f32 %v10178_v29, %v8654_v21  ;;  %v2353_v63 = vpop.f32.mrb[131].mxu0  ;;  %8205 = vmatpush3.bf16.msra.mxu1 %v10231_v40  ;;  %v2991_v44 = vmax.f32 %v2359_v52, 0.0  ;;  %v2762_v40 = vadd.f32 %v10178_v29, %v8754_v10 }
 0x1f7   : > { %v2354_v5 = vadd.f32 %v10178_v29, %v2353_v63  ;;  %8206 = vmatprep.subr.bf16.mxu1 %v3188_v41  ;;  %v2989_v15 = vmax.f32 %v2351_v4, 0.0 }
 0x1f8   : > { %v2992_v11 = vmax.f32 %v2362_v28, 0.0  ;;  %v3092_v25 = vmax.f32 %v2762_v40, 0.0 }
 0x1f9   : > { %v2990_v34 = vmax.f32 %v2354_v5, 0.0 }
 0x1fa   : > { %v10308_v19 = vpack.c.bf16 %v2992_v11, %v2991_v44  ;;  %8207 = vmatpush3.bf16.msra.mxu1 %v10226_v45  ;;  %v10316_v38 = vpack.c.bf16 %v3092_v25, %v3091_v14  ;;  %v8757_v45 = vpop.f32.mrb[44].mxu1 }
 0x1fb   : > { %v10313_v13 = vpack.c.bf16 %v2990_v34, %v2989_v15  ;;  %v8657_v51 = vpop.f32.mrb[132].mxu0  ;;  %v2775_v41 = vadd.f32 %v10178_v29, %v8757_v45  ;;  %v2766_v42 = vpop.f32.mrb[45].mxu1 }
 0x1fc   : > { %v2375_v35 = vadd.f32 %v10178_v29, %v8657_v51  ;;  %v2366_v36 = vpop.f32.mrb[133].mxu0  ;;  %v2767_v12 = vadd.f32 %v10178_v29, %v2766_v42  ;;  %v8758_v47 = vpop.f32.mrb[46].mxu1 }
 0x1fd   : > { %v2367_v55 = vadd.f32 %v10178_v29, %v2366_v36  ;;  %v8658_v37 = vpop.f32.mrb[134].mxu0  ;;  %3462 = vmatmul.mubr.bf16.vlgmr.msra.gmra.mrb[80].mxu1 %v7765_v7  ;;  %v3095_v56 = vmax.f32 %v2775_v41, 0.0  ;;  %v2778_v62 = vadd.f32 %v10178_v29, %v8758_v47  ;;  %v2769_v4 = vpop.f32.mrb[47].mxu1 }
 0x1fe   : > { %v2378_v6 = vadd.f32 %v10178_v29, %v8658_v37  ;;  %v2369_v39 = vpop.f32.mrb[135].mxu0  ;;  %3501 = vmatprep.mubr.bf16.mxu1 %v7768_v24  ;;  %v2995_v49 = vmax.f32 %v2375_v35, 0.0  ;;  %v3093_v63 = vmax.f32 %v2767_v12, 0.0  ;;  %v2770_v2 = vadd.f32 %v10178_v29, %v2769_v4  ;;  %v8761_v11 = vpop.f32.mrb[48].mxu1 }
 0x1ff   : > { %v2370_v46 = vadd.f32 %v10178_v29, %v2369_v39  ;;  %v2993_v21 = vmax.f32 %v2367_v55, 0.0  ;;  %v3096_v7 = vmax.f32 %v2778_v62, 0.0  ;;  %v2791_v15 = vadd.f32 %v10178_v29, %v8761_v11  ;;  %v2782_v51 = vpop.f32.mrb[49].mxu1 }
 0x200   : > { %v2996_v52 = vmax.f32 %v2378_v6, 0.0  ;;  %v3094_v44 = vmax.f32 %v2770_v2, 0.0  ;;  %v2783_v35 = vadd.f32 %v10178_v29, %v2782_v51  ;;  %v8762_v36 = vpop.f32.mrb[50].mxu1 }
 0x201   : > { %v2994_v28 = vmax.f32 %v2370_v46, 0.0  ;;  %v10332_v0 = vpack.c.bf16 %v3096_v7, %v3095_v56  ;;  %v3099_v45 = vmax.f32 %v2791_v15, 0.0  ;;  %v2794_v6 = vadd.f32 %v10178_v29, %v8762_v36  ;;  %v2785_v39 = vpop.f32.mrb[51].mxu1 }
 0x202   : > { %v10327_v5 = vpack.c.bf16 %v2996_v52, %v2995_v49  ;;  %v10336_v31 = vpack.c.bf16 %v3094_v44, %v3093_v63  ;;  %v3097_v46 = vmax.f32 %v2783_v35, 0.0  ;;  %v2786_v12 = vadd.f32 %v10178_v29, %v2785_v39  ;;  %v8765_v4 = vpop.f32.mrb[52].mxu1 }
 0x203   : > { %v10329_v9 = vpack.c.bf16 %v2994_v28, %v2993_v21  ;;  %v8661_v10 = vpop.f32.mrb[136].mxu0  ;;  %v3100_v49 = vmax.f32 %v2794_v6, 0.0  ;;  %v2807_v2 = vadd.f32 %v10178_v29, %v8765_v4 }
 0x204   : > { %v2391_v14 = vadd.f32 %v10178_v29, %v8661_v10  ;;  %v2382_v40 = vpop.f32.mrb[137].mxu0  ;;  %v3098_v62 = vmax.f32 %v2786_v12, 0.0 }
 0x205   : > { %v2383_v34 = vadd.f32 %v10178_v29, %v2382_v40  ;;  %v8662_v58 = vpop.f32.mrb[138].mxu0  ;;  %v10348_v63 = vpack.c.bf16 %v3100_v49, %v3099_v45  ;;  %v2798_v40 = vpop.f32.mrb[53].mxu1  ;;  %v3103_v51 = vmax.f32 %v2807_v2, 0.0 }
 0x206   : > { %v2394_v24 = vadd.f32 %v10178_v29, %v8662_v58  ;;  %v2385_v25 = vpop.f32.mrb[139].mxu0  ;;  %v2999_v55 = vmax.f32 %v2391_v14, 0.0  ;;  %v10352_v44 = vpack.c.bf16 %v3098_v62, %v3097_v46  ;;  %v8766_v58 = vpop.f32.mrb[54].mxu1 }
 0x207   : > { %v2386_v32 = vadd.f32 %v10178_v29, %v2385_v25  ;;  %v2997_v41 = vmax.f32 %v2383_v34, 0.0  ;;  %11037 = vst [vmem:[#allocation7_spill] sm:$0xff] %v10348_v63  ;;  %v2799_v34 = vadd.f32 %v10178_v29, %v2798_v40  ;;  %v2801_v35 = vpop.f32.mrb[55].mxu1 }
 0x208   : > { %v3000_v37 = vmax.f32 %v2394_v24, 0.0  ;;  %v2802_v45 = vadd.f32 %v10178_v29, %v2801_v35  ;;  %v8769_v12 = vpop.f32.mrb[56].mxu1 }
 0x209   : > { %v2998_v42 = vmax.f32 %v2386_v32, 0.0  ;;  %v2810_v32 = vadd.f32 %v10178_v29, %v8766_v58  ;;  %v2823_v4 = vadd.f32 %v10178_v29, %v8769_v12 }
 0x20a   : > { %v10343_v47 = vpack.c.bf16 %v3000_v37, %v2999_v55  ;;  %v3101_v37 = vmax.f32 %v2799_v34, 0.0  ;;  %v3102_v46 = vmax.f32 %v2802_v45, 0.0 }
 0x20b   : > { %v10345_v52 = vpack.c.bf16 %v2998_v42, %v2997_v41  ;;  %v8665_v56 = vpop.f32.mrb[140].mxu0  ;;  %v3104_v39 = vmax.f32 %v2810_v32, 0.0 }
 0x20c   : > { %v2407_v21 = vadd.f32 %v10178_v29, %v8665_v56  ;;  %v2398_v28 = vpop.f32.mrb[141].mxu0  ;;  %v10368_v2 = vpack.c.bf16 %v3102_v46, %v3101_v37 }
 0x20d   : > { %v2399_v7 = vadd.f32 %v10178_v29, %v2398_v28  ;;  %v8666_v10 = vpop.f32.mrb[142].mxu0  ;;  %v10364_v62 = vpack.c.bf16 %v3104_v39, %v3103_v51 }
 0x20e   : > { %v2410_v11 = vadd.f32 %v10178_v29, %v8666_v10  ;;  %v2401_v14 = vpop.f32.mrb[143].mxu0  ;;  %v3003_v24 = vmax.f32 %v2407_v21, 0.0 }
 0x20f   : > { %v2402_v15 = vadd.f32 %v10178_v29, %v2401_v14  ;;  %v3001_v36 = vmax.f32 %v2399_v7, 0.0 }
 0x210   : > { %v3004_v25 = vmax.f32 %v2410_v11, 0.0  ;;  %v2814_v11 = vpop.f32.mrb[57].mxu1 }
 0x211   : > { %v3002_v55 = vmax.f32 %v2402_v15, 0.0  ;;  %v2815_v40 = vadd.f32 %v10178_v29, %v2814_v11  ;;  %v8770_v15 = vpop.f32.mrb[58].mxu1 }
 0x212   : > { %v10359_v6 = vpack.c.bf16 %v3004_v25, %v3003_v24  ;;  %v3107_v24 = vmax.f32 %v2823_v4, 0.0  ;;  %v2826_v25 = vadd.f32 %v10178_v29, %v8770_v15  ;;  %v2817_v51 = vpop.f32.mrb[59].mxu1 }
 0x213   : > { %v10361_v41 = vpack.c.bf16 %v3002_v55, %v3001_v36  ;;  %v8669_v42 = vpop.f32.mrb[144].mxu0  ;;  %v3105_v36 = vmax.f32 %v2815_v40, 0.0  ;;  %v2818_v55 = vadd.f32 %v10178_v29, %v2817_v51 }
 0x214   : > { %v2423_v49 = vadd.f32 %v10178_v29, %v8669_v42  ;;  %v2414_v56 = vpop.f32.mrb[145].mxu0  ;;  %v3108_v45 = vmax.f32 %v2826_v25, 0.0 }
 0x215   : > { %v2415_v21 = vadd.f32 %v10178_v29, %v2414_v56  ;;  %v8670_v28 = vpop.f32.mrb[146].mxu0  ;;  %v3106_v46 = vmax.f32 %v2818_v55, 0.0 }
 0x216   : > { %v2426_v7 = vadd.f32 %v10178_v29, %v8670_v28  ;;  %v2417_v10 = vpop.f32.mrb[147].mxu0  ;;  %v3007_v34 = vmax.f32 %v2423_v49, 0.0  ;;  %v10376_v28 = vpack.c.bf16 %v3108_v45, %v3107_v24 }
 0x217   : > { %v2418_v14 = vadd.f32 %v10178_v29, %v2417_v10  ;;  %v3005_v32 = vmax.f32 %v2415_v21, 0.0  ;;  %v8773_v21 = vpop.f32.mrb[60].mxu1 }
 0x218   : > { %v3008_v58 = vmax.f32 %v2426_v7, 0.0  ;;  %v10379_v7 = vpack.c.bf16 %v3106_v46, %v3105_v36  ;;  %v2830_v40 = vpop.f32.mrb[61].mxu1 }
 0x219   : > { %v3006_v35 = vmax.f32 %v2418_v14, 0.0  ;;  %v2839_v14 = vadd.f32 %v10178_v29, %v8773_v21 }
 0x21a   : > { %v3198_v37 = vpack.c.bf16 %v3008_v58, %v3007_v34  ;;  %v2831_v34 = vadd.f32 %v10178_v29, %v2830_v40  ;;  %v8774_v58 = vpop.f32.mrb[62].mxu1 }
 0x21b   : > { %v3197_v39 = vpack.c.bf16 %v3006_v35, %v3005_v32  ;;  %v8673_v42 = vpop.f32.mrb[148].mxu0  ;;  %v3111_v51 = vmax.f32 %v2839_v14, 0.0  ;;  %v2842_v32 = vadd.f32 %v10178_v29, %v8774_v58  ;;  %v2833_v35 = vpop.f32.mrb[63].mxu1 }
 0x21c   : > { %v2439_v12 = vadd.f32 %v10178_v29, %v8673_v42  ;;  %v2430_v56 = vpop.f32.mrb[149].mxu0  ;;  %v3109_v45 = vmax.f32 %v2831_v34, 0.0 }
 0x21d   : > { %v2431_v49 = vadd.f32 %v10178_v29, %v2430_v56  ;;  %v8674_v4 = vpop.f32.mrb[150].mxu0  ;;  %8214 = vmatprep.subr.bf16.mxu1 %v3197_v39  ;;  %v3112_v42 = vmax.f32 %v2842_v32, 0.0 }
 0x21e   : > { %v2442_v10 = vadd.f32 %v10178_v29, %v8674_v4  ;;  %v2433_v11 = vpop.f32.mrb[151].mxu0  ;;  %8215 = vmatpush3.bf16.msra.mxu1 %v10313_v13  ;;  %v3011_v24 = vmax.f32 %v2439_v12, 0.0  ;;  %v2834_v13 = vadd.f32 %v10178_v29, %v2833_v35  ;;  %v8777_v4 = vpop.f32.mrb[64].mxu1 }
 0x21f   : > { %v2434_v15 = vadd.f32 %v10178_v29, %v2433_v11  ;;  %8216 = vmatprep.subr.bf16.mxu1 %v3198_v37  ;;  %v3009_v36 = vmax.f32 %v2431_v49, 0.0  ;;  %v2855_v11 = vadd.f32 %v10178_v29, %v8777_v4  ;;  %v2846_v34 = vpop.f32.mrb[65].mxu1 }
 0x220   : > { %v3012_v25 = vmax.f32 %v2442_v10, 0.0  ;;  %v3110_v56 = vmax.f32 %v2834_v13, 0.0  ;;  %v10390_v10 = vpack.c.bf16 %v3112_v42, %v3111_v51 }
 0x221   : > { %v3010_v55 = vmax.f32 %v2434_v15, 0.0  ;;  %v3115_v35 = vmax.f32 %v2855_v11, 0.0 }
 0x222   : > { %v3200_v39 = vpack.c.bf16 %v3012_v25, %v3011_v24  ;;  %8217 = vmatpush3.bf16.msra.mxu1 %v10308_v19  ;;  %v10394_v40 = vpack.c.bf16 %v3110_v56, %v3109_v45  ;;  %v2847_v24 = vadd.f32 %v10178_v29, %v2846_v34  ;;  %v8778_v25 = vpop.f32.mrb[66].mxu1 }
 0x223   : > { %v3199_v46 = vpack.c.bf16 %v3010_v55, %v3009_v36  ;;  %v8677_v37 = vpop.f32.mrb[152].mxu0  ;;  %v2858_v36 = vadd.f32 %v10178_v29, %v8778_v25  ;;  %v2849_v55 = vpop.f32.mrb[67].mxu1 }
 0x224   : > { %v2455_v12 = vadd.f32 %v10178_v29, %v8677_v37  ;;  %v2446_v21 = vpop.f32.mrb[153].mxu0  ;;  %v3113_v42 = vmax.f32 %v2847_v24, 0.0  ;;  %v8142_v37 = vpop.f32.mrb[68].mxu1 }
 0x225   : > { %v2447_v49 = vadd.f32 %v10178_v29, %v2446_v21  ;;  %v8678_v14 = vpop.f32.mrb[154].mxu0  ;;  %8218 = vmatprep.subr.bf16.mxu1 %v3199_v46  ;;  %v2850_v46 = vadd.f32 %v10178_v29, %v2849_v55  ;;  %v3116_v56 = vmax.f32 %v2858_v36, 0.0 }
 0x226   : > { %v2458_v19 = vadd.f32 %v10178_v29, %v8678_v14  ;;  %v2449_v15 = vpop.f32.mrb[155].mxu0  ;;  %8219 = vmatpush3.bf16.msra.mxu1 %v10329_v9  ;;  %v3015_v51 = vmax.f32 %v2455_v12, 0.0 }
 0x227   : > { %v2450_v58 = vadd.f32 %v10178_v29, %v2449_v15  ;;  %8220 = vmatprep.subr.bf16.mxu1 %v3200_v39  ;;  %v3013_v45 = vmax.f32 %v2447_v49, 0.0  ;;  %v8143_v39 = vpop.f32.mrb[69].mxu1  ;;  %v3114_v14 = vmax.f32 %v2850_v46, 0.0  ;;  %v10406_v49 = vpack.c.bf16 %v3116_v56, %v3115_v35 }
 0x228   : > { %v3016_v32 = vmax.f32 %v2458_v19, 0.0  ;;  %v10403_v12 = vadd.f32 %v8143_v39, %v8142_v37  ;;  %v8145_v11 = vpop.f32.mrb[70].mxu1 }
 0x229   : > { %v3014_v13 = vmax.f32 %v2450_v58, 0.0  ;;  %11038 = vst [vmem:[#allocation8_spill] sm:$0xff] %v10406_v49  ;;  %v8146_v34 = vpop.f32.mrb[71].mxu1  ;;  %v10409_v25 = vpack.c.bf16 %v3114_v14, %v3113_v42 }
 0x22a   : > { %v3202_v9 = vpack.c.bf16 %v3016_v32, %v3015_v51  ;;  %8221 = vmatpush3.bf16.msra.mxu1 %v10327_v5  ;;  %v7767_v34 = vcombine.low %v10303_v8, %v10303_v8 }
 0x22b   : > { %v3201_v4 = vpack.c.bf16 %v3014_v13, %v3013_v45  ;;  %v8681_v21 = vpop.f32.mrb[156].mxu0 }
 0x22c   : > { %v2471_v19 = vadd.f32 %v10178_v29, %v8681_v21  ;;  %v2462_v15 = vpop.f32.mrb[157].mxu0 }
 0x22d   : > { %v2463_v58 = vadd.f32 %v10178_v29, %v2462_v15  ;;  %v8682_v24 = vpop.f32.mrb[158].mxu0  ;;  %8222 = vmatprep.subr.bf16.mxu1 %v3201_v4 }
 0x22e   : > { %v2474_v5 = vadd.f32 %v10178_v29, %v8682_v24  ;;  %v2465_v51 = vpop.f32.mrb[159].mxu0  ;;  %8223 = vmatpush3.bf16.msra.mxu1 %v10345_v52  ;;  %v3019_v36 = vmax.f32 %v2471_v19, 0.0 }
 0x22f   : > { %v2466_v32 = vadd.f32 %v10178_v29, %v2465_v51  ;;  %8224 = vmatprep.subr.bf16.mxu1 %v3202_v9  ;;  %v3017_v45 = vmax.f32 %v2463_v58, 0.0 }
 0x230   : > { %v3020_v55 = vmax.f32 %v2474_v5, 0.0 }
 0x231   : > { %v3018_v35 = vmax.f32 %v2466_v32, 0.0 }
 0x232   : > { %v3204_v13 = vpack.c.bf16 %v3020_v55, %v3019_v36  ;;  %8225 = vmatpush3.bf16.msra.mxu1 %v10343_v47  ;;  %v10423_v47 = vld [vmem:[%s11022_s2 + $0x28] sm:$0xff] }
 0x233   : > { %v3203_v46 = vpack.c.bf16 %v3018_v35, %v3017_v45  ;;  %v8685_v37 = vpop.f32.mrb[160].mxu0 }
 0x234   : > { %v2487_v42 = vadd.f32 %v10178_v29, %v8685_v37  ;;  %v2478_v56 = vpop.f32.mrb[161].mxu0 }
 0x235   : > { %v2479_v39 = vadd.f32 %v10178_v29, %v2478_v56  ;;  %v8686_v4 = vpop.f32.mrb[162].mxu0  ;;  %8226 = vmatprep.subr.bf16.mxu1 %v3203_v46 }
 0x236   : > { %v2490_v52 = vadd.f32 %v10178_v29, %v8686_v4  ;;  %v2481_v21 = vpop.f32.mrb[163].mxu0  ;;  %8227 = vmatpush3.bf16.msra.mxu1 %v10361_v41  ;;  %v3023_v14 = vmax.f32 %v2487_v42, 0.0  ;;  %v7770_v41 = vcombine.high %v10423_v47, %v10423_v47 }
 0x237   : > { %v2482_v9 = vadd.f32 %v10178_v29, %v2481_v21  ;;  %8228 = vmatprep.subr.bf16.mxu1 %v3204_v13  ;;  %v3021_v19 = vmax.f32 %v2479_v39, 0.0 }
 0x238   : > { %v3024_v11 = vmax.f32 %v2490_v52, 0.0 }
 0x239   : > { %v3022_v15 = vmax.f32 %v2482_v9, 0.0 }
 0x23a   : > { %v10427_v58 = vpack.c.bf16 %v3024_v11, %v3023_v14  ;;  %8229 = vmatpush3.bf16.msra.mxu1 %v10359_v6 }
 0x23b   : > { %v10432_v24 = vpack.c.bf16 %v3022_v15, %v3021_v19  ;;  %v8689_v5 = vpop.f32.mrb[164].mxu0 }
 0x23c   : > { %v2503_v51 = vadd.f32 %v10178_v29, %v8689_v5  ;;  %v2494_v32 = vpop.f32.mrb[165].mxu0 }
 0x23d   : > { %v2495_v36 = vadd.f32 %v10178_v29, %v2494_v32  ;;  %v8690_v55 = vpop.f32.mrb[166].mxu0  ;;  %3502 = vmatmul.mubr.bf16.vlgmr.msra.gmra.mrb[84].mxu1 %v7767_v34 }
 0x23e   : > { %v2506_v45 = vadd.f32 %v10178_v29, %v8690_v55  ;;  %v2497_v8 = vpop.f32.mrb[167].mxu0  ;;  %3541 = vmatprep.mubr.bf16.mxu1 %v7770_v41  ;;  %v3027_v6 = vmax.f32 %v2503_v51, 0.0 }
 0x23f   : > { %v2498_v35 = vadd.f32 %v10178_v29, %v2497_v8  ;;  %v3025_v46 = vmax.f32 %v2495_v36, 0.0 }
 0x240   : > { %v3028_v13 = vmax.f32 %v2506_v45, 0.0 }
 0x241   : > { %v3026_v37 = vmax.f32 %v2498_v35, 0.0 }
 0x242   : > { %v10438_v42 = vpack.c.bf16 %v3028_v13, %v3027_v6  ;;  %v9069_v6 = vld [vmem:[%s11023_s3] ss:$0 sm:$0xff] }
 0x243   : > { %v10440_v56 = vpack.c.bf16 %v3026_v37, %v3025_v46  ;;  %v8693_v39 = vpop.f32.mrb[168].mxu0 }
 0x244   : > { %v2519_v4 = vadd.f32 %v10178_v29, %v8693_v39  ;;  %v2510_v52 = vpop.f32.mrb[169].mxu0 }
 0x245   : > { %v2511_v21 = vadd.f32 %v10178_v29, %v2510_v52  ;;  %v8694_v9 = vpop.f32.mrb[170].mxu0 }
 0x246   : > { %v2522_v14 = vadd.f32 %v10178_v29, %v8694_v9  ;;  %v2513_v11 = vpop.f32.mrb[171].mxu0  ;;  %v3031_v15 = vmax.f32 %v2519_v4, 0.0 }
 0x247   : > { %v2514_v19 = vadd.f32 %v10178_v29, %v2513_v11  ;;  %v3029_v41 = vmax.f32 %v2511_v21, 0.0 }
 0x248   : > { %v3032_v34 = vmax.f32 %v2522_v14, 0.0 }
 0x249   : > { %v3030_v5 = vmax.f32 %v2514_v19, 0.0 }
 0x24a   : > { %v10446_v51 = vpack.c.bf16 %v3032_v34, %v3031_v15 }
 0x24b   : > { %v10448_v32 = vpack.c.bf16 %v3030_v5, %v3029_v41  ;;  %v8697_v36 = vpop.f32.mrb[172].mxu0 }
 0x24c   : > { %v2535_v55 = vadd.f32 %v10178_v29, %v8697_v36  ;;  %v2526_v45 = vpop.f32.mrb[173].mxu0 }
 0x24d   : > { %v2527_v8 = vadd.f32 %v10178_v29, %v2526_v45  ;;  %v8698_v35 = vpop.f32.mrb[174].mxu0 }
 0x24e   : > { %v2538_v13 = vadd.f32 %v9069_v6, %v8698_v35  ;;  %v2529_v46 = vpop.f32.mrb[175].mxu0  ;;  %v3035_v39 = vmax.f32 %v2535_v55, 0.0 }
 0x24f   : > { %v2530_v37 = vadd.f32 %v9069_v6, %v2529_v46  ;;  %v3033_v21 = vmax.f32 %v2527_v8, 0.0 }
 0x250   : > { %v3036_v4 = vmax.f32 %v2538_v13, 0.0  ;;  %v8164_v52 = vpop.f32.mrb[72].mxu1 }
 0x251   : > { %v3034_v9 = vmax.f32 %v2530_v37, 0.0  ;;  %v8165_v14 = vpop.f32.mrb[73].mxu1 }
 0x252   : > { %v10455_v11 = vpack.c.bf16 %v3036_v4, %v3035_v39  ;;  %v8166_v19 = vadd.f32 %v8165_v14, %v8164_v52  ;;  %v8167_v15 = vpop.f32.mrb[74].mxu1 }
 0x253   : > { %v3211_v34 = vpack.c.bf16 %v3034_v9, %v3033_v21  ;;  %v8701_v29 = vpop.f32.mrb[176].mxu0  ;;  %v8168_v41 = vpop.f32.mrb[75].mxu1 }
 0x254   : > { %v2551_v5 = vadd.f32 %v9069_v6, %v8701_v29  ;;  %v2542_v36 = vpop.f32.mrb[177].mxu0  ;;  %v10458_v45 = vadd.f32 %v8166_v19, %v10403_v12 }
 0x255   : > { %v2543_v35 = vadd.f32 %v9069_v6, %v2542_v36  ;;  %v8702_v46 = vpop.f32.mrb[178].mxu0 }
 0x256   : > { %v2554_v55 = vadd.f32 %v9069_v6, %v8702_v46  ;;  %v2545_v13 = vpop.f32.mrb[179].mxu0  ;;  %v3039_v8 = vmax.f32 %v2551_v5, 0.0 }
 0x257   : > { %v2546_v63 = vadd.f32 %v9069_v6, %v2545_v13  ;;  %v3037_v49 = vmax.f32 %v2543_v35, 0.0 }
 0x258   : > { %v3040_v37 = vmax.f32 %v2554_v55, 0.0 }
 0x259   : > { %v3038_v39 = vmax.f32 %v2546_v63, 0.0 }
 0x25a   : > { %v3214_v4 = vpack.c.bf16 %v3040_v37, %v3039_v8 }
 0x25b   : > { %v3213_v52 = vpack.c.bf16 %v3038_v39, %v3037_v49  ;;  %v8705_v14 = vpop.f32.mrb[180].mxu0 }
 0x25c   : > { %v2567_v21 = vadd.f32 %v9069_v6, %v8705_v14  ;;  %v2558_v9 = vpop.f32.mrb[181].mxu0 }
 0x25d   : > { %v2559_v15 = vadd.f32 %v9069_v6, %v2558_v9  ;;  %v8706_v29 = vpop.f32.mrb[182].mxu0  ;;  %8236 = vmatprep.subr.bf16.mxu1 %v3213_v52 }
 0x25e   : > { %v2570_v41 = vadd.f32 %v9069_v6, %v8706_v29  ;;  %v2561_v12 = vpop.f32.mrb[183].mxu0  ;;  %8237 = vmatpush3.bf16.msra.mxu1 %v10432_v24  ;;  %v3043_v36 = vmax.f32 %v2567_v21, 0.0 }
 0x25f   : > { %v2562_v19 = vadd.f32 %v9069_v6, %v2561_v12  ;;  %8238 = vmatprep.subr.bf16.mxu1 %v3214_v4  ;;  %v3041_v5 = vmax.f32 %v2559_v15, 0.0 }
 0x260   : > { %v3044_v46 = vmax.f32 %v2570_v41, 0.0 }
 0x261   : > { %v3042_v55 = vmax.f32 %v2562_v19, 0.0 }
 0x262   : > { %v3216_v35 = vpack.c.bf16 %v3044_v46, %v3043_v36  ;;  %8239 = vmatpush3.bf16.msra.mxu1 %v10427_v58 }
 0x263   : > { %v3215_v63 = vpack.c.bf16 %v3042_v55, %v3041_v5  ;;  %v8709_v49 = vpop.f32.mrb[184].mxu0 }
 0x264   : > { %v2583_v13 = vadd.f32 %v9069_v6, %v8709_v49  ;;  %v2574_v8 = vpop.f32.mrb[185].mxu0 }
 0x265   : > { %v2575_v37 = vadd.f32 %v9069_v6, %v2574_v8  ;;  %v8710_v39 = vpop.f32.mrb[186].mxu0  ;;  %8240 = vmatprep.subr.bf16.mxu1 %v3215_v63  ;;  %v3629_v63 = vld [vmem:[%s11023_s3 + $0x1] sm:$0x1] }
 0x266   : > { %v2586_v52 = vadd.f32 %v9069_v6, %v8710_v39  ;;  %v2577_v14 = vpop.f32.mrb[187].mxu0  ;;  %8241 = vmatpush3.bf16.msra.mxu1 %v10440_v56  ;;  %v3047_v4 = vmax.f32 %v2583_v13, 0.0  ;;  %v3123_v56 = vld [vmem:[%s11022_s2 + $0x30] sm:$0xff] }
 0x267   : > { %v2578_v24 = vadd.f32 %v9069_v6, %v2577_v14  ;;  %8242 = vmatprep.subr.bf16.mxu1 %v3216_v35  ;;  %v3045_v9 = vmax.f32 %v2575_v37, 0.0  ;;  %v7769_v6 = vcombine.low %v10423_v47, %v10423_v47 }
 0x268   : > { %v3048_v21 = vmax.f32 %v2586_v52, 0.0 }
 0x269   : > { %v3046_v15 = vmax.f32 %v2578_v24, 0.0 }
 0x26a   : > { %v3218_v29 = vpack.c.bf16 %v3048_v21, %v3047_v4  ;;  %8243 = vmatpush3.bf16.msra.mxu1 %v10438_v42  ;;  %v7772_v42 = vcombine.high %v3123_v56, %v3123_v56 }
 0x26b   : > { %v3217_v58 = vpack.c.bf16 %v3046_v15, %v3045_v9 }
 0x26d   : > { %8244 = vmatprep.subr.bf16.mxu1 %v3217_v58 }
 0x26e   : > { %8245 = vmatpush3.bf16.msra.mxu1 %v10448_v32 }
 0x26f   : > { %8246 = vmatprep.subr.bf16.mxu1 %v3218_v29 }
 0x272   : > { %8247 = vmatpush3.bf16.msra.mxu1 %v10446_v51 }
 0x273   : > { %8248 = vmatprep.subr.bf16.mxu1 %v10147_v57 }
 0x276   : > { %8249 = vmatpush3.bf16.msra.mxu1 %v3211_v34  ;;  %v3630_v34 = vld [vmem:[%s11023_s3 + $0x2] sm:$0xf] }
 0x277   : > { %8250 = vmatprep.subr.bf16.mxu1 %v10144_v54  ;;  %v3633_v19 = vrot.slane %v3630_v34, 4 }
 0x27a   : > { %8251 = vmatpush3.bf16.msra.mxu1 %v10455_v11 }
 0x27b   : > { %8258 = vmatprep.subr.bf16.mxu1 %v10240_v60 }
 0x27d   : > { %3542 = vmatmul.mubr.bf16.vlgmr.msra.gmra.mrb[88].mxu1 %v7769_v6 }
 0x27e   : > { %8259 = vmatpush3.bf16.msra.mxu1 %v10166_v1  ;;  %3581 = vmatprep.mubr.bf16.mxu1 %v7772_v42 }
 0x27f   : > { %8260 = vmatprep.subr.bf16.mxu1 %v10237_v26 }
 0x282   : > { %8261 = vmatpush3.bf16.msra.mxu1 %v10163_v20 }
 0x283   : > { %8262 = vmatprep.subr.bf16.mxu1 %v10253_v48 }
 0x286   : > { %8263 = vmatpush3.bf16.msra.mxu1 %v10192_v53 }
 0x287   : > { %8264 = vmatprep.subr.bf16.mxu1 %v10250_v3 }
 0x28a   : > { %8265 = vmatpush3.bf16.msra.mxu1 %v10189_v61  ;;  %v3124_v61 = vld [vmem:[%s11022_s2 + $0x38] sm:$0xff] }
 0x28b   : > { %8266 = vmatprep.subr.bf16.mxu1 %v10267_v43  ;;  %v7774_v60 = vcombine.high %v3124_v61, %v3124_v61 }
 0x28e   : > { %8267 = vmatpush3.bf16.msra.mxu1 %v10208_v22  ;;  %v7771_v22 = vcombine.low %v3123_v56, %v3123_v56 }
 0x28f   : > { %8268 = vmatprep.subr.bf16.mxu1 %v10264_v50 }
 0x290   : > { %v8186_v54 = vpop.f32.mrb[76].mxu1 }
 0x291   : > { %v8187_v57 = vpop.f32.mrb[77].mxu1 }
 0x292   : > { %8269 = vmatpush3.bf16.msra.mxu1 %v10205_v17  ;;  %v8188_v1 = vadd.f32 %v8187_v57, %v8186_v54  ;;  %v8189_v20 = vpop.f32.mrb[78].mxu1  ;;  %v11039_v17 = vld [vmem:[#allocation8_spill] sm:$0xff] }
 0x293   : > { %8270 = vmatprep.subr.bf16.mxu1 %v10282_v27  ;;  %v8190_v26 = vpop.f32.mrb[79].mxu1 }
 0x294   : > { %v3424_v53 = vadd.f32 %v8188_v1, %v10458_v45 }
 0x296   : > { %8271 = vmatpush3.bf16.msra.mxu1 %v10224_v23  ;;  %v11040_v23 = vld [vmem:[#allocation7_spill] sm:$0xff] }
 0x297   : > { %8272 = vmatprep.subr.bf16.mxu1 %v10278_v18 }
 0x29a   : > { %8273 = vmatpush3.bf16.msra.mxu1 %v10221_v16  ;;  %v7773_v16 = vcombine.low %v3124_v61, %v3124_v61 }
 0x29b   : > { %8280 = vmatprep.subr.bf16.mxu1 %v10368_v2 }
 0x29d   : > { %3582 = vmatmul.mubr.bf16.vlgmr.msra.gmra.mrb[92].mxu1 %v7771_v22 }
 0x29e   : > { %8281 = vmatpush3.bf16.msra.mxu1 %v10293_v30  ;;  %3621 = vmatprep.mubr.bf16.mxu1 %v7774_v60 }
 0x29f   : > { %8282 = vmatprep.subr.bf16.mxu1 %v10364_v62 }
 0x2a2   : > { %8283 = vmatpush3.bf16.msra.mxu1 %v10289_v59 }
 0x2a3   : > { %8284 = vmatprep.subr.bf16.mxu1 %v10379_v7 }
 0x2a6   : > { %8285 = vmatpush3.bf16.msra.mxu1 %v10319_v33 }
 0x2a7   : > { %8286 = vmatprep.subr.bf16.mxu1 %v10376_v28 }
 0x2aa   : > { %8287 = vmatpush3.bf16.msra.mxu1 %v10316_v38 }
 0x2ab   : > { %8288 = vmatprep.subr.bf16.mxu1 %v10394_v40 }
 0x2ae   : > { %8289 = vmatpush3.bf16.msra.mxu1 %v10336_v31 }
 0x2af   : > { %8290 = vmatprep.subr.bf16.mxu1 %v10390_v10 }
 0x2b2   : > { %8291 = vmatpush3.bf16.msra.mxu1 %v10332_v0 }
 0x2b3   : > { %8292 = vmatprep.subr.bf16.mxu1 %v10409_v25 }
 0x2b6   : > { %8293 = vmatpush3.bf16.msra.mxu1 %v10352_v44 }
 0x2b7   : > { %8294 = vmatprep.subr.bf16.mxu1 %v11039_v17 }
 0x2ba   : > { %8295 = vmatpush3.bf16.msra.mxu1 %v11040_v23 }
 0x2bd   : > { %3622 = vmatmul.mubr.bf16.vlgmr.msra.gmra.mrb[96].mxu1 %v7773_v16 }
 0x2d0   : > { %v8208_v3 = vpop.f32.mrb[80].mxu1 }
 0x2d1   : > { %v8209_v48 = vpop.f32.mrb[81].mxu1 }
 0x2d2   : > { %v8210_v50 = vadd.f32 %v8209_v48, %v8208_v3  ;;  %v8211_v43 = vpop.f32.mrb[82].mxu1 }
 0x2d3   : > { %v8212_v18 = vpop.f32.mrb[83].mxu1 }
 0x2d4   : > { %v3464_v27 = vadd.f32 %v8210_v50, %v3424_v53 }
 0x310   : > { %v8230_v59 = vpop.f32.mrb[84].mxu1 }
 0x311   : > { %v8231_v30 = vpop.f32.mrb[85].mxu1 }
 0x312   : > { %v8232_v38 = vadd.f32 %v8231_v30, %v8230_v59  ;;  %v8233_v33 = vpop.f32.mrb[86].mxu1 }
 0x313   : > { %v8234_v0 = vpop.f32.mrb[87].mxu1 }
 0x314   : > { %v3504_v31 = vadd.f32 %v8232_v38, %v3464_v27 }
 0x350   : > { %v8252_v62 = vpop.f32.mrb[88].mxu1 }
 0x351   : > { %v8253_v44 = vpop.f32.mrb[89].mxu1 }
 0x352   : > { %v8254_v2 = vadd.f32 %v8253_v44, %v8252_v62  ;;  %v8255_v28 = vpop.f32.mrb[90].mxu1 }
 0x353   : > { %v8256_v7 = vpop.f32.mrb[91].mxu1 }
 0x354   : > { %v3544_v10 = vadd.f32 %v8254_v2, %v3504_v31 }
 0x370   : > { %v8274_v40 = vpop.f32.mrb[92].mxu1 }
 0x371   : > { %v8275_v25 = vpop.f32.mrb[93].mxu1 }
 0x372   : > { %v8276_v47 = vadd.f32 %v8275_v25, %v8274_v40  ;;  %v8277_v51 = vpop.f32.mrb[94].mxu1 }
 0x373   : > { %v8278_v32 = vpop.f32.mrb[95].mxu1 }
 0x374   : > { %v3584_v11 = vadd.f32 %v8276_v47, %v3544_v10 }
 0x390   : > { %v8296_v45 = vpop.f32.mrb[96].mxu1 }
 0x391   : > { %v8297_v41 = vpop.f32.mrb[97].mxu1 }
 0x392   : > { %v8298_v12 = vadd.f32 %v8297_v41, %v8296_v45  ;;  %v8299_v36 = vpop.f32.mrb[98].mxu1 }
 0x393   : > { %v8300_v46 = vpop.f32.mrb[99].mxu1 }
 0x394   : > { %v3624_v5 = vadd.f32 %v8298_v12, %v3584_v11 }
 0x396   : > { %v3631_v55 = vadd.f32 %v3630_v34, %v3624_v5  ;;  %v3635_v35 = vadd.f32 %v3633_v19, %v3624_v5 }
 0x398   : > { %v3637_v49 = vrot.slane %v3631_v55, 7  ;;  %v3640_v13 = vrot.slane %v3635_v35, 3 }
 0x39a   : > { %v3643_v8 = vsel %vm3642_vm1, %v3629_v63, %v3637_v49  ;;  %v3646_v37 = vsel %vm3642_vm1, %v3629_v63, %v3640_v13 }
 0x39b   : > { %v3645_v39 = vsel %vm3644_vm2, %v3643_v8, 0.0  ;;  %v3647_v52 = vsel %vm3644_vm2, %v3646_v37, 0.0 }
 0x39c   : > { %3648 = vst.msk [vmem:[#allocation2] sm:$0xff] %vm1419_vm0, %v3645_v39  ;;  %3649 = vst.msk [vmem:[#allocation2 + $0x8] sm:$0xff] %vm1419_vm0, %v3647_v52 }
 0x39d PF: > { %v9085_v14 = vld [vmem:[%s9400_s28] sm:$0xff]   ;;  %v9299_v24 = vmov 0.0   ;;  %v9086_v4 = vld [vmem:[%s9400_s28 + $0x8] sm:$0xff]   ;;  %vm9300_vm3 = vmmov 0   ;;  %vm3669_vm4 = vcmask 261120   ;;  %s9301_s26 = smov 32   ;;  %v3743_v60 = vlaneseq }
 0x39e   : > { %8779 = vmatprep.subr.bf16.mxu0 %v9299_v24  ;;  %8787 = vmatprep.subr.mxu1 %v9299_v24  ;;  %v7779_v15 = vld [vmem:[%s9420_s27 + $0x1] ss:$0 sm:$0xff]  ;;  %s9302_s28 = smov 96   ;;  %vm3749_vm5 = vcmask 64512   ;;  %v7778_v20 = vld [vmem:[%s9420_s27] ss:$0 sm:$0xff] }
 0x39f   : > { %8780 = vmatpush3.bf16.msra.mxu0 %v9085_v14  ;;  %8783 = vmatprep.mubr.msk.bf16.mxu0 %vm9300_vm3, %v9299_v24  ;;  %v10556_v17 = vand.u32 127, %v3743_v60  ;;  %v7780_v38 = vld [vmem:[%s9420_s27 + $0x2] ss:$0 sm:$0xff]  ;;  %s9303_s29 = smov 64   ;;  %s9304_s25 = smov 88   ;;  %vm5113_vm7 = vcmask 130048  }
 0x3a0   : > { %8781 = vmatprep.subr.bf16.mxu0 %v9299_v24  ;;  %3727 = vrot.lane.b32.xlu0 %v7779_v15, %s9301_s26  ;;  %s9305_s14 = smov 120   ;;  %s9306_s15 = smov 56   ;;  %vm5116_vm8 = vcmask 195584  }
 0x3a1   : > { %8789 = vmatprep.mubr.msk.f32.mxu1 %vm9300_vm3, %v9299_v24  ;;  %vm3745_vm6 = vcmp.lt.s32.totalorder %v10556_v17, 5  ;;  %s9307_s17 = smov 80   ;;  %s9308_s21 = smov 112  }
 0x3a2   : > { %s9309_s23 = smov 48   ;;  %s9310_s4 = smov 72  }
 0x3a3   : > { %v3650_v21 = vld [vmem:[#allocation2] sm:$0xff]  ;;  %v3651_v9 = vld [vmem:[#allocation2 + $0x8] sm:$0xff]  ;;  %8782 = vmatpush3.bf16.msra.mxu0 %v9086_v4  ;;  %s9311_s24 = smov 104   ;;  %s9312_s18 = smov 40  }
 0x3a4   : > { %v3652_v29 = vpack.c.bf16 %v3651_v9, %v3650_v21  ;;  %8802 = vmatprep.subr.mxu0 %v9299_v24  ;;  %s9313_s20 = smov 8   ;;  %s9314_s26 = smov 16  }
 0x3a5   : > { %p7982_p5 = scmp.ne.s32.totalorder %s9391_s22, 1 }
 0x3a6   : > { %8784 = vmatmul.mubr.msk.bf16.vlgmr.msra.gmra.mrb[0].mxu0 %vm3669_vm4, %v3652_v29  ;;  %vm9318_vm9 = vmmov (!%p7982_p5), 0   ;;  %vm7308_vm10 = vcmask (!%p7982_p5), 1040384  }
 0x3a7   : > { %8804 = vmatprep.mubr.msk.f32.mxu0 %vm9300_vm3, %v9299_v24 }
 0x412   : > { %v3728_v58 = vpop.permute.xlu0 %3727 }
 0x479   : > { %v3707_v56 = vpop.f32.mrb[0].mxu0 }
 0x47a   : > { %v10532_v6 = vadd.f32 %v3728_v58, %v3707_v56  ;;  %v8785_v42 = vpop.f32.mrb[1].mxu0  ;;  %v10540_v53 = vadd.f32 %v7778_v20, %v3707_v56 }
 0x47b   : > { %v3710_v54 = vpop.f32.mrb[2].mxu0 }
 0x47c   : > { %v10534_v57 = vadd.f32 %v3728_v58, %v3710_v54  ;;  %3747 = vrot.lane.b32.xlu0 %v10532_v6, %s9302_s28  ;;  %v8786_v1 = vpop.f32.mrb[3].mxu0  ;;  %v10548_v22 = vadd.f32 %v7778_v20, %v3710_v54 }
 0x47e   : > { %3826 = vrot.lane.b32.xlu1 %v10534_v57, %s9302_s28  ;;  %s9315_s28 = smov 24  }
 0x4ee   : > { %v3748_v26 = vpop.permute.xlu0 %3747 }
 0x4ef   : > { %8788 = vmatpush3.xpose.msk.msra.mxu1 %vm3749_vm5, %v3748_v26 }
 0x4f0   : > { %8792 = vmatprep.subr.mxu1 %v9299_v24  ;;  %v3827_v61 = vpop.permute.xlu1 %3826 }
 0x4f2   : > { %8790 = vmatmul.mubr.msk.f32.vlgmr.msra.gmra.mrb[0].mxu1 %vm3749_vm5, %v10540_v53 }
 0x4f3   : > { %8793 = vmatpush3.xpose.msk.msra.mxu1 %vm3749_vm5, %v3827_v61  ;;  %8794 = vmatprep.mubr.msk.f32.mxu1 %vm9300_vm3, %v9299_v24 }
 0x4f4   : > { %8797 = vmatprep.subr.mxu1 %v9299_v24 }
 0x4f6   : > { %8795 = vmatmul.mubr.msk.f32.vlgmr.msra.gmra.mrb[2].mxu1 %vm3749_vm5, %v10548_v22 }
 0x4f7   : > { %8799 = vmatprep.mubr.msk.f32.mxu1 %vm9300_vm3, %v9299_v24 }
 0x5c5   : > { %v3821_v16 = vpop.f32.mrb[0].mxu1 }
 0x5c6   : > { %v3903_v23 = vmul.f32 0.35355338, %v3821_v16  ;;  %v8791_v3 = vpop.f32.mrb[1].mxu1 }
 0x5c8   : > { %v3907_v48 = vsel %vm3745_vm6, %v3903_v23, -1e+30 }
 0x5c9   : > { %v3899_v50 = vpop.f32.mrb[2].mxu1  ;;  %v3909_v43 = vsel %vm3749_vm5, %v3907_v48, -inf }
 0x5ca   : > { %v3904_v18 = vmul.f32 0.35355338, %v3899_v50  ;;  %3910 = vmax.xlane.f32.xlu1 %v3909_v43  ;;  %v8796_v27 = vpop.f32.mrb[3].mxu1 }
 0x5cc   : > { %v3908_v59 = vsel %vm3745_vm6, %v3904_v18, -1e+30 }
 0x5cd   : > { %v3912_v30 = vsel %vm3749_vm5, %v3908_v59, -inf }
 0x5ce   : > { %3913 = vmax.xlane.f32.xlu0 %v3912_v30 }
 0x5e4   : > { %3738 = vrot.lane.b32.xlu0 %v7780_v38, %s9303_s29 }
 0x657   : > { %v3911_v44 = vpop.xlane.xlu1 %3910 }
 0x658   : > { %v3915_v2 = vsub.f32 %v3907_v48, %v3911_v44 }
 0x65a   : > { %v3917_v28 = vmul.f32 1.442695, %v3915_v2 }
 0x65b   : > { %v3914_v33 = vpop.xlane.xlu0 %3913 }
 0x65c   : > { %v3916_v7 = vsub.f32 %v3908_v59, %v3914_v33  ;;  %9217 = vpow2.f32 %v3917_v28 }
 0x65e   : > { %v3919_v10 = vmul.f32 1.442695, %v3916_v7 }
 0x65f   : > { %v3739_v0 = vpop.permute.xlu0 %3738 }
 0x660   : > { %v10566_v31 = vadd.f32 %v3739_v0, %v3707_v56  ;;  %v10568_v62 = vadd.f32 %v3739_v0, %v3710_v54  ;;  %9219 = vpow2.f32 %v3919_v10 }
 0x662   : > { %4009 = vrot.lane.b32.xlu0 %v10568_v62, %s9303_s29  ;;  %3932 = vrot.lane.b32.xlu1 %v10566_v31, %s9303_s29 }
 0x666   : > { %4087 = vrot.lane.b32.xlu0 %v10532_v6, %s9304_s25  ;;  %4165 = vrot.lane.b32.xlu1 %v10534_v57, %s9304_s25  ;;  %v9218_v40 = vpop.eup %9217 }
 0x667   : > { %v3921_v25 = vsel %vm3749_vm5, %v9218_v40, 0.0 }
 0x66a   : > { %4085 = vrot.lane.b32.xlu0 %v10540_v53, %s9305_s14  ;;  %v9220_v47 = vpop.eup %9219 }
 0x66b   : > { %v3924_v51 = vsel %vm3749_vm5, %v9220_v47, 0.0 }
 0x68a   : > { %3922 = vadd.xlane.f32.xlu1 %v3921_v25 }
 0x68e   : > { %3925 = vadd.xlane.f32.xlu1 %v3924_v51 }
 0x69f   : > { %4163 = vrot.lane.b32.xlu1 %v10548_v22, %s9305_s14 }
 0x6d4   : > { %v4010_v32 = vpop.permute.xlu0 %4009  ;;  %v3933_v11 = vpop.permute.xlu1 %3932 }
 0x6d5   : > { %8798 = vmatpush3.msra.mxu1 %v3933_v11  ;;  %8803 = vmatpush3.msra.mxu0 %v4010_v32 }
 0x6d6   : > { %8807 = vmatprep.subr.mxu1 %v9299_v24  ;;  %8812 = vmatprep.subr.mxu0 %v9299_v24 }
 0x6d8   : > { %v4166_v34 = vpop.permute.xlu1 %4165  ;;  %v4088_v19 = vpop.permute.xlu0 %4087 }
 0x6dc   : > { %v4086_v55 = vpop.permute.xlu0 %4085 }
 0x717   : > { %v3923_v45 = vpop.xlane.xlu1 %3922 }
 0x718   : > { %9221 = vrcp.f32 %v3923_v45 }
 0x71b   : > { %v3926_v41 = vpop.xlane.xlu1 %3925 }
 0x71c   : > { %9223 = vrcp.f32 %v3926_v41 }
 0x71f   : > { %v4164_v35 = vpop.permute.xlu1 %4163 }
 0x722   : > { %v9222_v12 = vpop.eup %9221 }
 0x723   : > { %v3929_v36 = vmul.f32 %v9222_v12, %v9218_v40 }
 0x725   : > { %8800 = vmatmul.mubr.msk.f32.vlgmr.msra.gmra.mrb[4].mxu1 %vm3749_vm5, %v3929_v36 }
 0x726   : > { %v9224_v46 = vpop.eup %9223  ;;  %8808 = vmatpush3.xpose.msk.msra.mxu1 %vm3749_vm5, %v4088_v19  ;;  %8809 = vmatprep.mubr.msk.f32.mxu1 %vm9300_vm3, %v9299_v24 }
 0x727   : > { %v3930_v5 = vmul.f32 %v9224_v46, %v9220_v47  ;;  %8817 = vmatprep.subr.mxu1 %v9299_v24 }
 0x729   : > { %8805 = vmatmul.mubr.msk.f32.vlgmr.msra.gmra.mrb[4].mxu0 %vm3749_vm5, %v3930_v5  ;;  %8810 = vmatmul.mubr.msk.f32.vlgmr.msra.gmra.mrb[6].mxu1 %vm3749_vm5, %v4086_v55 }
 0x72a   : > { %8813 = vmatpush3.xpose.msk.msra.mxu0 %vm3749_vm5, %v4166_v34  ;;  %8814 = vmatprep.mubr.msk.f32.mxu0 %vm9300_vm3, %v9299_v24 }
 0x72b   : > { %8822 = vmatprep.subr.mxu0 %v9299_v24  ;;  %8819 = vmatprep.mubr.msk.f32.mxu1 %vm9300_vm3, %v9299_v24 }
 0x72d   : > { %8815 = vmatmul.mubr.msk.f32.vlgmr.msra.gmra.mrb[6].mxu0 %vm3749_vm5, %v4164_v35 }
 0x72e   : > { %8824 = vmatprep.mubr.msk.f32.mxu0 %vm9300_vm3, %v9299_v24 }
 0x7f8   : > { %v10596_v63 = vpop.f32.mrb[4].mxu1 }
 0x7f9   : > { %v8801_v49 = vpop.f32.mrb[5].mxu1 }
 0x7fc   : > { %v10598_v13 = vpop.f32.mrb[4].mxu0  ;;  %v4159_v8 = vpop.f32.mrb[6].mxu1 }
 0x7fd   : > { %v4241_v37 = vmul.f32 0.35355338, %v4159_v8  ;;  %v8806_v39 = vpop.f32.mrb[5].mxu0  ;;  %v8811_v52 = vpop.f32.mrb[7].mxu1 }
 0x7ff   : > { %v4243_v14 = vsel %vm3745_vm6, %v4241_v37, -1e+30 }
 0x800   : > { %v4237_v4 = vpop.f32.mrb[6].mxu0  ;;  %v4245_v21 = vsel %vm3749_vm5, %v4243_v14, -inf }
 0x801   : > { %v4242_v9 = vmul.f32 0.35355338, %v4237_v4  ;;  %4246 = vmax.xlane.f32.xlu0 %v4245_v21  ;;  %v8816_v15 = vpop.f32.mrb[7].mxu0 }
 0x803   : > { %v4244_v29 = vsel %vm3745_vm6, %v4242_v9, -1e+30 }
 0x804   : > { %v4248_v58 = vsel %vm3749_vm5, %v4244_v29, -inf }
 0x805   : > { %4249 = vmax.xlane.f32.xlu1 %v4248_v58 }
 0x816   : > { %4267 = vrot.lane.b32.xlu1 %v10566_v31, %s9306_s15 }
 0x817   : > { %4343 = vrot.lane.b32.xlu0 %v10568_v62, %s9306_s15 }
 0x81a   : > { %4421 = vrot.lane.b32.xlu1 %v10532_v6, %s9307_s17 }
 0x81e   : > { %4499 = vrot.lane.b32.xlu1 %v10534_v57, %s9307_s17 }
 0x822   : > { %4497 = vrot.lane.b32.xlu1 %v10548_v22, %s9308_s21 }
 0x88e   : > { %v4247_v56 = vpop.xlane.xlu0 %4246 }
 0x88f   : > { %v4251_v42 = vsub.f32 %v4243_v14, %v4247_v56 }
 0x891   : > { %v4253_v54 = vmul.f32 1.442695, %v4251_v42 }
 0x892   : > { %v4344_v1 = vpop.permute.xlu0 %4343  ;;  %v4250_v20 = vpop.xlane.xlu1 %4249 }
 0x893   : > { %9225 = vpow2.f32 %v4253_v54  ;;  %v4252_v26 = vsub.f32 %v4244_v29, %v4250_v20  ;;  %8823 = vmatpush3.msra.mxu0 %v4344_v1 }
 0x894   : > { %8832 = vmatprep.subr.mxu0 %v9299_v24 }
 0x895   : > { %v4255_v61 = vmul.f32 1.442695, %v4252_v26 }
 0x896   : > { %v4268_v16 = vpop.permute.xlu1 %4267 }
 0x897   : > { %9227 = vpow2.f32 %v4255_v61  ;;  %8818 = vmatpush3.msra.mxu1 %v4268_v16 }
 0x898   : > { %8827 = vmatprep.subr.mxu1 %v9299_v24 }
 0x89a   : > { %v4422_v27 = vpop.permute.xlu1 %4421 }
 0x89d   : > { %v9226_v23 = vpop.eup %9225 }
 0x89e   : > { %v4257_v3 = vsel %vm3749_vm5, %v9226_v23, 0.0  ;;  %v4500_v33 = vpop.permute.xlu1 %4499 }
 0x89f   : > { %4258 = vadd.xlane.f32.xlu0 %v4257_v3 }
 0x8a1   : > { %v9228_v48 = vpop.eup %9227 }
 0x8a2   : > { %v4260_v50 = vsel %vm3749_vm5, %v9228_v48, 0.0  ;;  %v4498_v2 = vpop.permute.xlu1 %4497 }
 0x8a3   : > { %4261 = vadd.xlane.f32.xlu0 %v4260_v50 }
 0x8b9   : > { %4419 = vrot.lane.b32.xlu0 %v10540_v53, %s9308_s21 }
 0x92c   : > { %v4259_v43 = vpop.xlane.xlu0 %4258 }
 0x92d   : > { %9229 = vrcp.f32 %v4259_v43 }
 0x930   : > { %v4262_v18 = vpop.xlane.xlu0 %4261 }
 0x931   : > { %9231 = vrcp.f32 %v4262_v18 }
 0x934   : > { %v4420_v44 = vpop.permute.xlu0 %4419 }
 0x937   : > { %v9230_v59 = vpop.eup %9229 }
 0x938   : > { %v4265_v30 = vmul.f32 %v9230_v59, %v9226_v23 }
 0x93a   : > { %8820 = vmatmul.mubr.msk.f32.vlgmr.msra.gmra.mrb[8].mxu1 %vm3749_vm5, %v4265_v30 }
 0x93b   : > { %v9232_v38 = vpop.eup %9231  ;;  %8828 = vmatpush3.xpose.msk.msra.mxu1 %vm3749_vm5, %v4422_v27  ;;  %8829 = vmatprep.mubr.msk.f32.mxu1 %vm9300_vm3, %v9299_v24 }
 0x93c   : > { %v4266_v0 = vmul.f32 %v9232_v38, %v9228_v48  ;;  %8837 = vmatprep.subr.mxu1 %v9299_v24 }
 0x93e   : > { %8825 = vmatmul.mubr.msk.f32.vlgmr.msra.gmra.mrb[8].mxu0 %vm3749_vm5, %v4266_v0  ;;  %8830 = vmatmul.mubr.msk.f32.vlgmr.msra.gmra.mrb[10].mxu1 %vm3749_vm5, %v4420_v44 }
 0x93f   : > { %8833 = vmatpush3.xpose.msk.msra.mxu0 %vm3749_vm5, %v4500_v33  ;;  %8834 = vmatprep.mubr.msk.f32.mxu0 %vm9300_vm3, %v9299_v24 }
 0x940   : > { %8842 = vmatprep.subr.mxu0 %v9299_v24  ;;  %8839 = vmatprep.mubr.msk.f32.mxu1 %vm9300_vm3, %v9299_v24 }
 0x942   : > { %8835 = vmatmul.mubr.msk.f32.vlgmr.msra.gmra.mrb[10].mxu0 %vm3749_vm5, %v4498_v2 }
 0x943   : > { %8844 = vmatprep.mubr.msk.f32.mxu0 %vm9300_vm3, %v9299_v24 }
 0xa0d   : > { %v10632_v28 = vpop.f32.mrb[8].mxu1 }
 0xa0e   : > { %v8821_v7 = vpop.f32.mrb[9].mxu1 }
 0xa11   : > { %v10634_v10 = vpop.f32.mrb[8].mxu0  ;;  %v4493_v40 = vpop.f32.mrb[10].mxu1 }
 0xa12   : > { %v9070_v25 = vpack.i.bf16 %v10634_v10, %v10632_v28  ;;  %v4575_v47 = vmul.f32 0.35355338, %v4493_v40  ;;  %v8826_v51 = vpop.f32.mrb[9].mxu0  ;;  %v8831_v32 = vpop.f32.mrb[11].mxu1 }
 0xa14   : > { %v4577_v11 = vsel %vm3745_vm6, %v4575_v47, -1e+30 }
 0xa15   : > { %v4571_v34 = vpop.f32.mrb[10].mxu0  ;;  %v4579_v45 = vsel %vm3749_vm5, %v4577_v11, -inf }
 0xa16   : > { %v4576_v41 = vmul.f32 0.35355338, %v4571_v34  ;;  %4580 = vmax.xlane.f32.xlu0 %v4579_v45  ;;  %v8836_v12 = vpop.f32.mrb[11].mxu0 }
 0xa18   : > { %v4578_v19 = vsel %vm3745_vm6, %v4576_v41, -1e+30  ;;  %v9087_v41 = vld [vmem:[%s9405_s13] sm:$0xff]  }
 0xa19   : > { %v4582_v36 = vsel %vm3749_vm5, %v4578_v19, -inf }
 0xa1a   : > { %4583 = vmax.xlane.f32.xlu1 %v4582_v36 }
 0xa2b   : > { %4601 = vrot.lane.b32.xlu1 %v10566_v31, %s9309_s23 }
 0xa2c   : > { %4677 = vrot.lane.b32.xlu0 %v10568_v62, %s9309_s23 }
 0xa2f   : > { %4755 = vrot.lane.b32.xlu1 %v10532_v6, %s9310_s4 }
 0xa33   : > { %4833 = vrot.lane.b32.xlu1 %v10534_v57, %s9310_s4 }
 0xa37   : > { %4831 = vrot.lane.b32.xlu1 %v10548_v22, %s9311_s24 }
 0xaa3   : > { %v4581_v46 = vpop.xlane.xlu0 %4580 }
 0xaa4   : > { %v4585_v5 = vsub.f32 %v4577_v11, %v4581_v46 }
 0xaa6   : > { %v4587_v55 = vmul.f32 1.442695, %v4585_v5 }
 0xaa7   : > { %v4678_v35 = vpop.permute.xlu0 %4677  ;;  %v4584_v49 = vpop.xlane.xlu1 %4583 }
 0xaa8   : > { %9233 = vpow2.f32 %v4587_v55  ;;  %v4586_v8 = vsub.f32 %v4578_v19, %v4584_v49  ;;  %8843 = vmatpush3.msra.mxu0 %v4678_v35 }
 0xaa9   : > { %8852 = vmatprep.subr.mxu0 %v9299_v24 }
 0xaaa   : > { %v4589_v37 = vmul.f32 1.442695, %v4586_v8 }
 0xaab   : > { %v4602_v39 = vpop.permute.xlu1 %4601 }
 0xaac   : > { %9235 = vpow2.f32 %v4589_v37  ;;  %8838 = vmatpush3.msra.mxu1 %v4602_v39 }
 0xaad   : > { %8847 = vmatprep.subr.mxu1 %v9299_v24 }
 0xaaf   : > { %v4756_v21 = vpop.permute.xlu1 %4755 }
 0xab2   : > { %v9234_v6 = vpop.eup %9233 }
 0xab3   : > { %v4591_v57 = vsel %vm3749_vm5, %v9234_v6, 0.0  ;;  %v4834_v58 = vpop.permute.xlu1 %4833 }
 0xab4   : > { %4592 = vadd.xlane.f32.xlu0 %v4591_v57 }
 0xab6   : > { %v9236_v22 = vpop.eup %9235 }
 0xab7   : > { %v4594_v52 = vsel %vm3749_vm5, %v9236_v22, 0.0  ;;  %v4832_v42 = vpop.permute.xlu1 %4831 }
 0xab8   : > { %4595 = vadd.xlane.f32.xlu0 %v4594_v52 }
 0xace   : > { %4753 = vrot.lane.b32.xlu0 %v10540_v53, %s9311_s24 }
 0xb41   : > { %v4593_v14 = vpop.xlane.xlu0 %4592 }
 0xb42   : > { %9237 = vrcp.f32 %v4593_v14 }
 0xb45   : > { %v4596_v4 = vpop.xlane.xlu0 %4595 }
 0xb46   : > { %9239 = vrcp.f32 %v4596_v4 }
 0xb49   : > { %v4754_v53 = vpop.permute.xlu0 %4753 }
 0xb4c   : > { %v9238_v9 = vpop.eup %9237 }
 0xb4d   : > { %v4599_v15 = vmul.f32 %v9238_v9, %v9234_v6 }
 0xb4f   : > { %8840 = vmatmul.mubr.msk.f32.vlgmr.msra.gmra.mrb[12].mxu1 %vm3749_vm5, %v4599_v15 }
 0xb50   : > { %v9240_v29 = vpop.eup %9239  ;;  %8848 = vmatpush3.xpose.msk.msra.mxu1 %vm3749_vm5, %v4756_v21  ;;  %8849 = vmatprep.mubr.msk.f32.mxu1 %vm9300_vm3, %v9299_v24 }
 0xb51   : > { %v4600_v56 = vmul.f32 %v9240_v29, %v9236_v22  ;;  %8857 = vmatprep.subr.mxu1 %v9299_v24  ;;  %v7805_v29 = vld [vmem:[%s9420_s27 + $0x3] ss:$0 sm:$0xff] }
 0xb53   : > { %8845 = vmatmul.mubr.msk.f32.vlgmr.msra.gmra.mrb[12].mxu0 %vm3749_vm5, %v4600_v56  ;;  %8850 = vmatmul.mubr.msk.f32.vlgmr.msra.gmra.mrb[14].mxu1 %vm3749_vm5, %v4754_v53 }
 0xb54   : > { %8853 = vmatpush3.xpose.msk.msra.mxu0 %vm3749_vm5, %v4834_v58  ;;  %8854 = vmatprep.mubr.msk.f32.mxu0 %vm9300_vm3, %v9299_v24 }
 0xb55   : > { %8862 = vmatprep.subr.mxu0 %v9299_v24  ;;  %8859 = vmatprep.mubr.msk.f32.mxu1 %vm9300_vm3, %v9299_v24 }
 0xb57   : > { %8855 = vmatmul.mubr.msk.f32.vlgmr.msra.gmra.mrb[14].mxu0 %vm3749_vm5, %v4832_v42 }
 0xb58   : > { %8864 = vmatprep.mubr.msk.f32.mxu0 %vm9300_vm3, %v9299_v24 }
 0xc22   : > { %v4673_v54 = vpop.f32.mrb[12].mxu1 }
 0xc23   : > { %v8841_v1 = vpop.f32.mrb[13].mxu1 }
 0xc26   : > { %v4749_v20 = vpop.f32.mrb[12].mxu0  ;;  %v4827_v26 = vpop.f32.mrb[14].mxu1 }
 0xc27   : > { %v9075_v61 = vpack.i.bf16 %v4749_v20, %v4673_v54  ;;  %v4909_v16 = vmul.f32 0.35355338, %v4827_v26  ;;  %v8846_v23 = vpop.f32.mrb[13].mxu0  ;;  %v8851_v3 = vpop.f32.mrb[15].mxu1  ;;  %v9258_v26 = vld [vmem:[#allocation2 + $0x8] sm:$0xff] }
 0xc29   : > { %v4911_v48 = vsel %vm3745_vm6, %v4909_v16, -1e+30 }
 0xc2a   : > { %v4905_v50 = vpop.f32.mrb[14].mxu0  ;;  %v4913_v43 = vsel %vm3749_vm5, %v4911_v48, -inf }
 0xc2b   : > { %v4910_v18 = vmul.f32 0.35355338, %v4905_v50  ;;  %4914 = vmax.xlane.f32.xlu0 %v4913_v43  ;;  %v8856_v27 = vpop.f32.mrb[15].mxu0 }
 0xc2d   : > { %v4912_v59 = vsel %vm3745_vm6, %v4910_v18, -1e+30 }
 0xc2e   : > { %v4916_v30 = vsel %vm3749_vm5, %v4912_v59, -inf }
 0xc2f   : > { %4917 = vmax.xlane.f32.xlu1 %v4916_v30 }
 0xc40   : > { %4935 = vrot.lane.b32.xlu1 %v10566_v31, %s9312_s18 }
 0xc44   : > { %9071 = vrot.lane.b32.xlu1 %v9070_v25, %s9313_s20 }
 0xc48   : > { %9076 = vrot.lane.b32.xlu1 %v9075_v61, %s9314_s26 }
 0xcb8   : > { %v4915_v38 = vpop.xlane.xlu0 %4914 }
 0xcb9   : > { %v4919_v33 = vsub.f32 %v4911_v48, %v4915_v38 }
 0xcbb   : > { %v4921_v0 = vmul.f32 1.442695, %v4919_v33  ;;  %v5229_v33 = vld [vmem:[%s9410_s16] sm:$0xff] }
 0xcbc   : > { %v4918_v44 = vpop.xlane.xlu1 %4917 }
 0xcbd   : > { %9241 = vpow2.f32 %v4921_v0  ;;  %v4920_v17 = vsub.f32 %v4912_v59, %v4918_v44  ;;  %v5237_v0 = vld [vmem:[%s9410_s16 + $0x40] sm:$0xff]  ;;  %v5230_v44 = vld [vmem:[%s9410_s16 + $0x8] sm:$0xff] }
 0xcbf   : > { %v4923_v2 = vmul.f32 1.442695, %v4920_v17  ;;  %v7812_v17 = vcombine.high %v5229_v33, %v5237_v0 }
 0xcc0   : > { %v4936_v7 = vpop.permute.xlu1 %4935 }
 0xcc1   : > { %9243 = vpow2.f32 %v4923_v2  ;;  %8858 = vmatpush3.msra.mxu1 %v4936_v7  ;;  %v5238_v2 = vld [vmem:[%s9410_s16 + $0x48] sm:$0xff]  ;;  %v7811_v7 = vcombine.low %v5229_v33, %v5237_v0  ;;  %v5235_v0 = vld [vmem:[%s9410_s16 + $0x30] sm:$0xff] }
 0xcc2   : > { %8867 = vmatprep.subr.bf16.mxu1 %v9299_v24 }
 0xcc4   : > { %v9072_v55 = vpop.permute.xlu1 %9071 }
 0xcc5   : > { %v9074_v49 = vunpack.i.h.bf16 %v9072_v55  ;;  %v9073_v8 = vunpack.i.l.bf16 %v9072_v55 }
 0xcc7   : > { %v9242_v31 = vpop.eup %9241  ;;  %v5111_v57 = vsel %vm3749_vm5, %v10596_v63, %v9073_v8 }
 0xcc8   : > { %v4925_v40 = vsel %vm3749_vm5, %v9242_v31, 0.0  ;;  %v9077_v35 = vpop.permute.xlu1 %9076 }
 0xcc9   : > { %4926 = vadd.xlane.f32.xlu0 %v4925_v40  ;;  %v9079_v37 = vunpack.i.h.bf16 %v9077_v35  ;;  %v9078_v39 = vunpack.i.l.bf16 %v9077_v35  ;;  %v7814_v40 = vcombine.high %v5230_v44, %v5238_v2 }
 0xccb   : > { %v9244_v28 = vpop.eup %9243  ;;  %v5114_v14 = vsel %vm5113_vm7, %v5111_v57, %v9078_v39  ;;  %v7809_v57 = vld [vmem:[%s9420_s27 + $0x4] ss:$0 sm:$0xff] }
 0xccc   : > { %v4928_v10 = vsel %vm3749_vm5, %v9244_v28, 0.0 }
 0xccd   : > { %4929 = vadd.xlane.f32.xlu0 %v4928_v10  ;;  %v5253_v10 = vld [vmem:[%s9410_s16 + $0xc0] sm:$0xff] }
 0xce3   : > { %5011 = vrot.lane.b32.xlu0 %v10568_v62, %s9312_s18  ;;  %v9088_v62 = vld [vmem:[%s9405_s13 + $0x8] sm:$0xff]  }
 0xd56   : > { %v4927_v25 = vpop.xlane.xlu0 %4926 }
 0xd57   : > { %9245 = vrcp.f32 %v4927_v25  ;;  %v5246_v25 = vld [vmem:[%s9410_s16 + $0x88] sm:$0xff] }
 0xd5a   : > { %v4930_v47 = vpop.xlane.xlu0 %4929 }
 0xd5b   : > { %9247 = vrcp.f32 %v4930_v47 }
 0xd5e   : > { %v5012_v51 = vpop.permute.xlu0 %5011 }
 0xd5f   : > { %8863 = vmatpush3.msra.mxu0 %v5012_v51  ;;  %v5254_v51 = vld [vmem:[%s9410_s16 + $0xc8] sm:$0xff] }
 0xd60   : > { %5508 = vmatprep.subr.bf16.mxu0 %v7812_v17  ;;  %v5236_v17 = vld [vmem:[%s9410_s16 + $0x38] sm:$0xff] }
 0xd61   : > { %v9246_v32 = vpop.eup %9245 }
 0xd62   : > { %v4933_v11 = vmul.f32 %v9246_v32, %v9242_v31  ;;  %v7813_v31 = vcombine.low %v5230_v44, %v5238_v2  ;;  %v5243_v44 = vld [vmem:[%s9410_s16 + $0x70] sm:$0xff]  ;;  %v5244_v2 = vld [vmem:[%s9410_s16 + $0x78] sm:$0xff] }
 0xd64   : > { %8860 = vmatmul.mubr.msk.f32.vlgmr.msra.gmra.mrb[16].mxu1 %vm3749_vm5, %v4933_v11  ;;  %v7829_v11 = vcombine.low %v5246_v25, %v5254_v51 }
 0xd65   : > { %v9248_v34 = vpop.eup %9247  ;;  %8871 = vmatprep.mubr.msk.bf16.mxu1 %vm9300_vm3, %v9299_v24  ;;  %8868 = vmatpush3.bf16.msra.mxu1 %v9087_v41  ;;  %v5239_v41 = vld [vmem:[%s9410_s16 + $0x50] sm:$0xff] }
 0xd66   : > { %v4934_v45 = vmul.f32 %v9248_v34, %v9244_v28  ;;  %8869 = vmatprep.subr.bf16.mxu1 %v9299_v24  ;;  %v5112_v24 = vsel %vm3749_vm5, %v10598_v13, %v9074_v49  ;;  %v9257_v13 = vld [vmem:[#allocation2] sm:$0xff]  ;;  %v7830_v34 = vcombine.high %v5246_v25, %v5254_v51  ;;  %v5259_v25 = vld [vmem:[%s9410_s16 + $0xf0] sm:$0xff]  ;;  %v5260_v51 = vld [vmem:[%s9410_s16 + $0xf8] sm:$0xff] }
 0xd67   : > { %v5115_v4 = vsel %vm5113_vm7, %v5112_v24, %v9079_v37  ;;  %v5245_v28 = vld [vmem:[%s9410_s16 + $0x80] sm:$0xff] }
 0xd68   : > { %8865 = vmatmul.mubr.msk.f32.vlgmr.msra.gmra.mrb[16].mxu0 %vm3749_vm5, %v4934_v45  ;;  %v7828_v47 = vcombine.high %v5245_v28, %v5253_v10  ;;  %v7827_v32 = vcombine.low %v5245_v28, %v5253_v10  ;;  %v5231_v45 = vld [vmem:[%s9410_s16 + $0x10] sm:$0xff]  ;;  %v7826_v28 = vcombine.high %v5236_v17, %v5244_v2 }
 0xd69   : > { %8870 = vmatpush3.bf16.msra.mxu1 %v9088_v62  ;;  %5509 = vmatpush1.bf16.msra.mxu0 %v7811_v7  ;;  %v5232_v62 = vld [vmem:[%s9410_s16 + $0x18] sm:$0xff]  ;;  %v5251_v10 = vld [vmem:[%s9410_s16 + $0xb0] sm:$0xff] }
 0xd6a   : > { %5551 = vmatprep.subr.bf16.mxu1 %v7814_v40  ;;  %5510 = vmatprep.subr.bf16.mxu0 %v7828_v47  ;;  %v7824_v40 = vcombine.high %v5235_v0, %v5243_v44  ;;  %v5252_v47 = vld [vmem:[%s9410_s16 + $0xb8] sm:$0xff] }
 0xd6d   : > { %5511 = vmatpush1.bf16.msra.mxu0 %v7827_v32  ;;  %v7823_v32 = vcombine.low %v5235_v0, %v5243_v44 }
 0xe37   : > { %v5007_v12 = vpop.f32.mrb[16].mxu1 }
 0xe38   : > { %v8861_v19 = vpop.f32.mrb[17].mxu1 }
 0xe39   : > { %v7816_v19 = vcombine.high %v5231_v45, %v5239_v41 }
 0xe3b   : > { %v5083_v36 = vpop.f32.mrb[16].mxu0  ;;  %5594 = vmatprep.subr.bf16.mxu0 %v7816_v19  ;;  %v9089_v19 = vld [vmem:[%s9425_s30 + $0x40] sm:$0xff]  }
 0xe3c   : > { %v9080_v46 = vpack.i.bf16 %v5083_v36, %v5007_v12  ;;  %v8866_v5 = vpop.f32.mrb[17].mxu0  ;;  %v9316_v12 = vmov 0   ;;  %v5240_v36 = vld [vmem:[%s9410_s16 + $0x58] sm:$0xff] }
 0xe3d   : > { %5540 = vmatprep.mubr.bf16.mxu0 %v9316_v12  ;;  %v7817_v5 = vcombine.low %v5232_v62, %v5240_v36  ;;  %v7818_v55 = vcombine.high %v5232_v62, %v5240_v36  ;;  %v7841_v62 = vcombine.low %v5252_v47, %v5260_v51  ;;  %v9090_v36 = vld [vmem:[%s9425_s30 + $0xc0] sm:$0xff]  }
 0xe3e   : > { %9081 = vrot.lane.b32.xlu0 %v9080_v46, %s9315_s28  ;;  %v7815_v46 = vcombine.low %v5231_v45, %v5239_v41  ;;  %v7842_v45 = vcombine.high %v5252_v47, %v5260_v51  ;;  %v7839_v41 = vcombine.low %v5251_v10, %v5259_v25 }
 0xeb0   : > { %v9082_v6 = vpop.permute.xlu0 %9081 }
 0xeb1   : > { %v9084_v22 = vunpack.i.h.bf16 %v9082_v6  ;;  %v9083_v52 = vunpack.i.l.bf16 %v9082_v6 }
 0xeb3   : > { %v5118_v21 = vsel %vm5116_vm8, %v5115_v4, %v9084_v22  ;;  %v5117_v9 = vsel %vm5116_vm8, %v5114_v14, %v9083_v52 }
 0xeb4   : > { %v5119_v15 = vpack.c.bf16 %v5118_v21, %v5117_v9  ;;  %v7810_v21 = vld [vmem:[%s9420_s27 + $0x5] ss:$0 sm:$0xff] }
 0xeb6   : > { %8872 = vmatmul.mubr.msk.bf16.vlgmr.msra.gmra.mrb[20].mxu1 %vm3669_vm4, %v5119_v15  ;;  %v5247_v15 = vld [vmem:[%s9410_s16 + $0x90] sm:$0xff] }
 0xeb7   : > { %5552 = vmatpush1.bf16.msra.mxu1 %v7813_v31  ;;  %5583 = vmatprep.mubr.bf16.mxu1 %v9316_v12 }
 0xeb8   : > { %5553 = vmatprep.subr.bf16.mxu1 %v7830_v34  ;;  %v7840_v34 = vcombine.high %v5251_v10, %v5259_v25 }
 0xebb   : > { %5554 = vmatpush1.bf16.msra.mxu1 %v7829_v11  ;;  %v7825_v11 = vcombine.low %v5236_v17, %v5244_v2 }
 0xebc   : > { %5637 = vmatprep.subr.bf16.mxu1 %v7818_v55  ;;  %v9093_v55 = vld [vmem:[%s9425_s30 + $0x48] sm:$0xff]  }
 0xf89   : > { %v5178_v58 = vpop.f32.mrb[20].mxu1 }
 0xf8a   : > { %v5179_v56 = vadd.f32 %v7805_v29, %v5178_v58  ;;  %v8873_v53 = vpop.f32.mrb[21].mxu1  ;;  %v5248_v58 = vld [vmem:[%s9410_s16 + $0x98] sm:$0xff] }
 0xf8b   : > { %v5181_v42 = vpop.f32.mrb[22].mxu1 }
 0xf8c   : > { %v5182_v54 = vadd.f32 %v7805_v29, %v5181_v42  ;;  %v8874_v1 = vpop.f32.mrb[23].mxu1  ;;  %v5185_v20 = vadd.f32 %v9257_v13, %v5179_v56  ;;  %v5255_v29 = vld [vmem:[%s9410_s16 + $0xd0] sm:$0xff]  ;;  %v5256_v56 = vld [vmem:[%s9410_s16 + $0xd8] sm:$0xff] }
 0xf8d   : > { %v7832_v1 = vcombine.high %v5247_v15, %v5255_v29  ;;  %v7834_v13 = vcombine.high %v5248_v58, %v5256_v56 }
 0xf8e   : > { %v5187_v63 = vsel %vm3669_vm4, %v5185_v20, 0.0  ;;  %v5186_v61 = vadd.f32 %v9258_v26, %v5182_v54  ;;  %v5234_v26 = vld [vmem:[%s9410_s16 + $0x28] sm:$0xff] }
 0xf8f   : > { %5188 = vadd.xlane.f32.xlu1 %v5187_v63  ;;  %v5241_v63 = vld [vmem:[%s9410_s16 + $0x60] sm:$0xff] }
 0xf90   : > { %v5190_v16 = vsel %vm3669_vm4, %v5186_v61, 0.0 }
 0xf91   : > { %5191 = vadd.xlane.f32.xlu0 %v5190_v16  ;;  %v7831_v16 = vcombine.low %v5247_v15, %v5255_v29  ;;  %v9109_v15 = vld [vmem:[%s9425_s30 + $0x68] sm:$0xff]  }
 0xf92   : > { %v9110_v29 = vld [vmem:[%s9425_s30 + $0xe8] sm:$0xff]  }
0x101c   : > { %v5189_v23 = vpop.xlane.xlu1 %5188 }
0x101d   : > { %v5194_v3 = vmul.f32 0.03125, %v5189_v23  ;;  %v7833_v23 = vcombine.low %v5248_v58, %v5256_v56  ;;  %v9111_v58 = vld [vmem:[%s9425_s30 + $0x28] sm:$0xff]  }
0x101e   : > { %v5192_v48 = vpop.xlane.xlu0 %5191  ;;  %v9112_v56 = vld [vmem:[%s9425_s30 + $0xa8] sm:$0xff]  }
0x101f   : > { %v5196_v50 = vsub.f32 %v5185_v20, %v5194_v3  ;;  %v5195_v43 = vmul.f32 0.03125, %v5192_v48  ;;  %v5233_v20 = vld [vmem:[%s9410_s16 + $0x20] sm:$0xff] }
0x1020   : > { %v7820_v3 = vcombine.high %v5233_v20, %v5241_v63 }
0x1021   : > { %v5197_v18 = vsub.f32 %v5186_v61, %v5195_v43  ;;  %v5198_v27 = vmul.f32 %v5196_v50, %v5196_v50  ;;  %v5242_v61 = vld [vmem:[%s9410_s16 + $0x68] sm:$0xff]  ;;  %v5257_v43 = vld [vmem:[%s9410_s16 + $0xe0] sm:$0xff] }
0x1022   : > { %v7822_v48 = vcombine.high %v5234_v26, %v5242_v61 }
0x1023   : > { %v5200_v59 = vsel %vm3669_vm4, %v5198_v27, 0.0  ;;  %v5199_v30 = vmul.f32 %v5197_v18, %v5197_v18  ;;  %v5258_v27 = vld [vmem:[%s9410_s16 + $0xe8] sm:$0xff] }
0x1024   : > { %5201 = vadd.xlane.f32.xlu0 %v5200_v59  ;;  %v7819_v59 = vcombine.low %v5233_v20, %v5241_v63  ;;  %v9116_v20 = vld [vmem:[%s9425_s30 + $0xb0] sm:$0xff]   ;;  %v9117_v63 = vld [vmem:[%s9425_s30 + $0x78] sm:$0xff]  }
0x1025   : > { %v5203_v38 = vsel %vm3669_vm4, %v5199_v30, 0.0  ;;  %v7821_v30 = vcombine.low %v5234_v26, %v5242_v61  ;;  %v9118_v26 = vld [vmem:[%s9425_s30 + $0xf8] sm:$0xff]  }
0x1026   : > { %5204 = vadd.xlane.f32.xlu1 %v5203_v38  ;;  %v9119_v61 = vld [vmem:[%s9425_s30 + $0x38] sm:$0xff]  }
0x10b1   : > { %v5202_v35 = vpop.xlane.xlu0 %5201 }
0x10b2   : > { %v5206_v49 = vmul.f32 0.03125, %v5202_v35  ;;  %v9094_v35 = vld [vmem:[%s9425_s30 + $0xc8] sm:$0xff]  }
0x10b3   : > { %v5205_v8 = vpop.xlane.xlu1 %5204 }
0x10b4   : > { %v5208_v37 = vadd.f32 1e-05, %v5206_v49  ;;  %v5207_v39 = vmul.f32 0.03125, %v5205_v8  ;;  %v9096_v49 = vld [vmem:[%s9425_s30 + $0x88] sm:$0xff]   ;;  %v9097_v8 = vld [vmem:[%s9425_s30 + $0x50] sm:$0xff]  }
0x10b6   : > { %9249 = vrsqrt.f32 %v5208_v37  ;;  %v5209_v6 = vadd.f32 1e-05, %v5207_v39  ;;  %v9098_v37 = vld [vmem:[%s9425_s30 + $0xd0] sm:$0xff]  }
0x10b7   : > { %v9099_v39 = vld [vmem:[%s9425_s30 + $0x10] sm:$0xff]  }
0x10b8   : > { %9251 = vrsqrt.f32 %v5209_v6  ;;  %v9100_v6 = vld [vmem:[%s9425_s30 + $0x90] sm:$0xff]  }
0x10c0   : > { %v9250_v24 = vpop.eup %9249 }
0x10c1   : > { %v5212_v22 = vmul.f32 %v9250_v24, %v5196_v50  ;;  %v5249_v50 = vld [vmem:[%s9410_s16 + $0xa0] sm:$0xff]  ;;  %v9101_v24 = vld [vmem:[%s9425_s30 + $0x58] sm:$0xff]  }
0x10c2   : > { %v9252_v52 = vpop.eup %9251  ;;  %v7836_v38 = vcombine.high %v5249_v50, %v5257_v43  ;;  %v7835_v7 = vcombine.low %v5249_v50, %v5257_v43  ;;  %v10806_v43 = vld [vmem:[%s9415_s19 + $0x8] sm:$0xff] }
0x10c3   : > { %v5219_v14 = vmul.f32 %v7809_v57, %v5212_v22  ;;  %v5213_v4 = vmul.f32 %v9252_v52, %v5197_v18  ;;  %v5250_v18 = vld [vmem:[%s9410_s16 + $0xa8] sm:$0xff]  ;;  %v9103_v22 = vld [vmem:[%s9425_s30 + $0x18] sm:$0xff]  }
0x10c4   : > { %v7838_v33 = vcombine.high %v5250_v18, %v5258_v27  ;;  %v7837_v31 = vcombine.low %v5250_v18, %v5258_v27  ;;  %v9104_v52 = vld [vmem:[%s9425_s30 + $0x98] sm:$0xff]  }
0x10c5   : > { %v5220_v9 = vmul.f32 %v7809_v57, %v5213_v4  ;;  %v10721_v53 = vadd.f32 %v7810_v21, %v5219_v14  ;;  %v9102_v57 = vld [vmem:[%s9425_s30 + $0xd8] sm:$0xff]   ;;  %v9105_v14 = vld [vmem:[%s9425_s30 + $0x60] sm:$0xff]  }
0x10c6   : > { %v9106_v4 = vld [vmem:[%s9425_s30 + $0xe0] sm:$0xff]  }
0x10c7   : > { %v10723_v42 = vadd.f32 %v7810_v21, %v5220_v9  ;;  %v9107_v21 = vld [vmem:[%s9425_s30 + $0x20] sm:$0xff]  }
0x10c8   : > { %v9108_v9 = vld [vmem:[%s9425_s30 + $0xa0] sm:$0xff]  }
0x10c9   : > { %v10727_v54 = vpack.c.bf16 %v10723_v42, %v10721_v53 }
0x10cb   : > { %7843 = vmatmul.mubr.msk.bf16.vlgmr.msra.gmra.mrb[20].mxu0 %vm3669_vm4, %v10727_v54  ;;  %7844 = vmatmul.mubr.msk.bf16.vlgmr.msra.gmra.mrb[24].mxu1 %vm3669_vm4, %v10727_v54 }
0x10cc   : > { %5595 = vmatpush1.bf16.msra.mxu0 %v7815_v46  ;;  %5638 = vmatpush1.bf16.msra.mxu1 %v7817_v5  ;;  %v9091_v46 = vld [vmem:[%s9425_s30] sm:$0xff]  }
0x10cd   : > { %5596 = vmatprep.subr.bf16.mxu0 %v7832_v1  ;;  %5639 = vmatprep.subr.bf16.mxu1 %v7834_v13  ;;  %v9092_v5 = vld [vmem:[%s9425_s30 + $0x80] sm:$0xff]   ;;  %v9114_v1 = vld [vmem:[%s9425_s30 + $0xf0] sm:$0xff]  }
0x10ce   : > { %5626 = vmatprep.mubr.bf16.mxu0 %v9316_v12  ;;  %5669 = vmatprep.mubr.bf16.mxu1 %v9316_v12  ;;  %v9115_v13 = vld [vmem:[%s9425_s30 + $0x30] sm:$0xff]  }
0x10d0   : > { %5597 = vmatpush1.bf16.msra.mxu0 %v7831_v16  ;;  %5640 = vmatpush1.bf16.msra.mxu1 %v7833_v23  ;;  %v9120_v16 = vld [vmem:[%s9425_s30 + $0xb8] sm:$0xff]   ;;  %v9121_v23 = vld [vmem:[%s9425_s30 + $0x140] sm:$0xff]  }
0x10d1   : > { %5680 = vmatprep.subr.bf16.mxu0 %v7820_v3  ;;  %5723 = vmatprep.subr.bf16.mxu1 %v7822_v48  ;;  %v9122_v3 = vld [vmem:[%s9425_s30 + $0x1c0] sm:$0xff]   ;;  %v10802_v48 = vshrl.u32 %v3743_v60, 7 }
0x10d3   : > { %7845 = vmatmul.mubr.msk.bf16.vlgmr.msra.gmra.mrb[24].mxu0 %vm3669_vm4, %v10727_v54  ;;  %7846 = vmatmul.mubr.msk.bf16.vlgmr.msra.gmra.mrb[28].mxu1 %vm3669_vm4, %v10727_v54  ;;  %v5291_v50 = vsub.s32 6, %v10802_v48  ;;  %v5267_v27 = vsub.s32 0, %v10802_v48  ;;  %v5283_v2 = vsub.s32 4, %v10802_v48 }
0x10d4   : > { %5681 = vmatpush1.bf16.msra.mxu0 %v7819_v59  ;;  %5724 = vmatpush1.bf16.msra.mxu1 %v7821_v30  ;;  %v5275_v59 = vsub.s32 2, %v10802_v48  ;;  %v5261_v30 = vld [vmem:[%s9415_s19] sm:$0xff] }
0x10d5   : > { %5682 = vmatprep.subr.bf16.mxu0 %v7836_v38  ;;  %5725 = vmatprep.subr.bf16.mxu1 %v7838_v33  ;;  %v10809_v18 = vrot.slane %v10806_v43, %v5291_v50  ;;  %v5271_v38 = vsub.s32 1, %v10802_v48  ;;  %v5279_v33 = vsub.s32 3, %v10802_v48  ;;  %v5268_v0 = vrot.slane %v5261_v30, %v5267_v27 }
0x10d6   : > { %5712 = vmatprep.mubr.bf16.mxu0 %v9316_v12  ;;  %5755 = vmatprep.mubr.bf16.mxu1 %v9316_v12  ;;  %v5276_v44 = vrot.slane %v5261_v30, %v5275_v59 }
0x10d7   : > { %v5272_v60 = vrot.slane %v5261_v30, %v5271_v38  ;;  %v5280_v17 = vrot.slane %v5261_v30, %v5279_v33 }
0x10d8   : > { %5683 = vmatpush1.bf16.msra.mxu0 %v7835_v7  ;;  %5726 = vmatpush1.bf16.msra.mxu1 %v7837_v31 }
0x10d9   : > { %5766 = vmatprep.subr.bf16.mxu0 %v7824_v40  ;;  %5809 = vmatprep.subr.bf16.mxu1 %v7826_v28  ;;  %v5287_v40 = vsub.s32 5, %v10802_v48  ;;  %v5295_v28 = vsub.s32 7, %v10802_v48 }
0x10db   : > { %7847 = vmatmul.mubr.msk.bf16.vlgmr.msra.gmra.mrb[28].mxu0 %vm3669_vm4, %v10727_v54  ;;  %7848 = vmatmul.mubr.msk.bf16.vlgmr.msra.gmra.mrb[32].mxu1 %vm3669_vm4, %v10727_v54 }
0x10dc   : > { %5767 = vmatpush1.bf16.msra.mxu0 %v7823_v32  ;;  %5810 = vmatpush1.bf16.msra.mxu1 %v7825_v11 }
0x10dd   : > { %5768 = vmatprep.subr.bf16.mxu0 %v7840_v34  ;;  %5811 = vmatprep.subr.bf16.mxu1 %v7842_v45 }
0x10de   : > { %5798 = vmatprep.mubr.bf16.mxu0 %v9316_v12  ;;  %5841 = vmatprep.mubr.bf16.mxu1 %v9316_v12  ;;  %v9095_v12 = vld [vmem:[%s9425_s30 + $0x8] sm:$0xff]  }
0x10e0   : > { %5769 = vmatpush1.bf16.msra.mxu0 %v7839_v41  ;;  %5812 = vmatpush1.bf16.msra.mxu1 %v7841_v62 }
0x10e1   : > { %8340 = vmatprep.subr.bf16.mxu0 %v9089_v19  ;;  %8362 = vmatprep.subr.bf16.mxu1 %v9090_v36 }
0x10e3   : > { %7849 = vmatmul.mubr.msk.bf16.vlgmr.msra.gmra.mrb[32].mxu0 %vm3669_vm4, %v10727_v54  ;;  %7850 = vmatmul.mubr.msk.bf16.vlgmr.msra.gmra.mrb[36].mxu1 %vm3669_vm4, %v10727_v54  ;;  %v9113_v54 = vld [vmem:[%s9425_s30 + $0x70] sm:$0xff]  }
0x10e4   : > { %8341 = vmatpush3.bf16.msra.mxu0 %v9091_v46  ;;  %8363 = vmatpush3.bf16.msra.mxu1 %v9092_v5  ;;  %v5284_v46 = vrot.slane %v5261_v30, %v5283_v2  ;;  %v5292_v5 = vrot.slane %v5261_v30, %v5291_v50 }
0x10e5   : > { %8342 = vmatprep.subr.bf16.mxu0 %v9093_v55  ;;  %8364 = vmatprep.subr.bf16.mxu1 %v9094_v35 }
0x10e8   : > { %8343 = vmatpush3.bf16.msra.mxu0 %v9095_v12  ;;  %8365 = vmatpush3.bf16.msra.mxu1 %v9096_v49  ;;  %v5288_v12 = vrot.slane %v5261_v30, %v5287_v40  ;;  %v5296_v49 = vrot.slane %v5261_v30, %v5295_v28  ;;  %v5308_v30 = vrot.slane %v10806_v43, %v5275_v59 }
0x10e9   : > { %8344 = vmatprep.subr.bf16.mxu0 %v9097_v8  ;;  %8366 = vmatprep.subr.bf16.mxu1 %v9098_v37  ;;  %v5312_v59 = vrot.slane %v10806_v43, %v5279_v33 }
0x10ec   : > { %8345 = vmatpush3.bf16.msra.mxu0 %v9099_v39  ;;  %8367 = vmatpush3.bf16.msra.mxu1 %v9100_v6 }
0x10ed   : > { %8346 = vmatprep.subr.bf16.mxu0 %v9101_v24  ;;  %8368 = vmatprep.subr.bf16.mxu1 %v9102_v57 }
0x10f0   : > { %8347 = vmatpush3.bf16.msra.mxu0 %v9103_v22  ;;  %8369 = vmatpush3.bf16.msra.mxu1 %v9104_v52 }
0x10f1   : > { %8348 = vmatprep.subr.bf16.mxu0 %v9105_v14  ;;  %8370 = vmatprep.subr.bf16.mxu1 %v9106_v4 }
0x10f4   : > { %8349 = vmatpush3.bf16.msra.mxu0 %v9107_v21  ;;  %8371 = vmatpush3.bf16.msra.mxu1 %v9108_v9 }
0x10f5   : > { %8350 = vmatprep.subr.bf16.mxu0 %v9109_v15  ;;  %8372 = vmatprep.subr.bf16.mxu1 %v9110_v29 }
0x10f8   : > { %8351 = vmatpush3.bf16.msra.mxu0 %v9111_v58  ;;  %8373 = vmatpush3.bf16.msra.mxu1 %v9112_v56  ;;  %v9123_v58 = vld [vmem:[%s9425_s30 + $0x100] sm:$0xff]  }
0x10f9   : > { %8352 = vmatprep.subr.bf16.mxu0 %v9113_v54  ;;  %8374 = vmatprep.subr.bf16.mxu1 %v9114_v1  ;;  %v9124_v56 = vld [vmem:[%s9425_s30 + $0x180] sm:$0xff]  }
0x10fc   : > { %8353 = vmatpush3.bf16.msra.mxu0 %v9115_v13  ;;  %8375 = vmatpush3.bf16.msra.mxu1 %v9116_v20 }
0x10fd   : > { %8354 = vmatprep.subr.bf16.mxu0 %v9117_v63  ;;  %8376 = vmatprep.subr.bf16.mxu1 %v9118_v26  ;;  %v9125_v63 = vld [vmem:[%s9425_s30 + $0x148] sm:$0xff]  }
0x10fe   : > { %v9126_v26 = vld [vmem:[%s9425_s30 + $0x1c8] sm:$0xff]  }
0x1100   : > { %8355 = vmatpush3.bf16.msra.mxu0 %v9119_v61  ;;  %8377 = vmatpush3.bf16.msra.mxu1 %v9120_v16  ;;  %v5300_v61 = vrot.slane %v10806_v43, %v5267_v27  ;;  %v5304_v27 = vrot.slane %v10806_v43, %v5271_v38  ;;  %v9130_v38 = vld [vmem:[%s9425_s30 + $0x1d0] sm:$0xff]  }
0x1101   : > { %8384 = vmatprep.subr.bf16.mxu0 %v9121_v23  ;;  %8406 = vmatprep.subr.bf16.mxu1 %v9122_v3 }
0x119e   : > { %v5542_v7 = vpop.f32.mrb[20].mxu0  ;;  %v5585_v31 = vpop.f32.mrb[24].mxu1 }
0x119f   : > { %v5543_v10 = vadd.f32 %v5542_v7, %v5268_v0  ;;  %v5586_v25 = vadd.f32 %v5585_v31, %v5276_v44  ;;  %v5544_v47 = vpop.f32.mrb[21].mxu0  ;;  %v5587_v51 = vpop.f32.mrb[25].mxu1 }
0x11a0   : > { %v5545_v32 = vadd.f32 %v5544_v47, %v5272_v60  ;;  %v5588_v11 = vadd.f32 %v5587_v51, %v5280_v17  ;;  %v5546_v34 = vpop.f32.mrb[22].mxu0  ;;  %v5589_v45 = vpop.f32.mrb[26].mxu1 }
0x11a1   : > { %v5547_v41 = vadd.f32 %v5546_v34, %v5268_v0  ;;  %v5590_v62 = vadd.f32 %v5589_v45, %v5276_v44  ;;  %v5548_v19 = vpop.f32.mrb[23].mxu0  ;;  %v5591_v36 = vpop.f32.mrb[27].mxu1  ;;  %v5852_v8 = vmax.f32 %v5543_v10, 0.0  ;;  %v5854_v37 = vmax.f32 %v5586_v25, 0.0  ;;  %v9127_v10 = vld [vmem:[%s9425_s30 + $0x108] sm:$0xff]   ;;  %v9129_v34 = vld [vmem:[%s9425_s30 + $0x150] sm:$0xff]  }
0x11a2   : > { %v5549_v55 = vadd.f32 %v5548_v19, %v5272_v60  ;;  %v5592_v35 = vadd.f32 %v5591_v36, %v5280_v17  ;;  %v5853_v24 = vmax.f32 %v5545_v32, 0.0  ;;  %v5855_v57 = vmax.f32 %v5588_v11, 0.0  ;;  %v9128_v25 = vld [vmem:[%s9425_s30 + $0x188] sm:$0xff]  }
0x11a3   : > { %v5868_v39 = vmax.f32 %v5547_v41, 0.0  ;;  %v5870_v6 = vmax.f32 %v5590_v62, 0.0 }
0x11a4   : > { %v5869_v22 = vmax.f32 %v5549_v55, 0.0  ;;  %v5871_v52 = vmax.f32 %v5592_v35, 0.0 }
0x11a5   : > { %v5884_v14 = vpack.c.bf16 %v5868_v39, %v5852_v8  ;;  %v5886_v4 = vpack.c.bf16 %v5870_v6, %v5854_v37 }
0x11a6   : > { %v5885_v21 = vpack.c.bf16 %v5869_v22, %v5853_v24  ;;  %v5887_v9 = vpack.c.bf16 %v5871_v52, %v5855_v57  ;;  %v5628_v15 = vpop.f32.mrb[24].mxu0  ;;  %v5671_v29 = vpop.f32.mrb[28].mxu1  ;;  %v9133_v24 = vld [vmem:[%s9425_s30 + $0x158] sm:$0xff]  }
0x11a7   : > { %v5629_v54 = vadd.f32 %v5628_v15, %v5284_v46  ;;  %v5672_v1 = vadd.f32 %v5671_v29, %v5292_v5  ;;  %v5630_v13 = vpop.f32.mrb[25].mxu0  ;;  %v5673_v20 = vpop.f32.mrb[29].mxu1  ;;  %v9134_v57 = vld [vmem:[%s9425_s30 + $0x1d8] sm:$0xff]  }
0x11a8   : > { %v5631_v16 = vadd.f32 %v5630_v13, %v5288_v12  ;;  %v5674_v23 = vadd.f32 %v5673_v20, %v5296_v49  ;;  %v5632_v3 = vpop.f32.mrb[26].mxu0  ;;  %v5675_v50 = vpop.f32.mrb[30].mxu1  ;;  %6961 = vmatprep.mubr.bf16.mxu0 %v5885_v21  ;;  %7002 = vmatprep.mubr.bf16.mxu1 %v5887_v9  ;;  %v9135_v13 = vld [vmem:[%s9425_s30 + $0x118] sm:$0xff]  }
0x11a9   : > { %v5633_v0 = vadd.f32 %v5632_v3, %v5284_v46  ;;  %v5676_v44 = vadd.f32 %v5675_v50, %v5292_v5  ;;  %v5634_v60 = vpop.f32.mrb[27].mxu0  ;;  %v5677_v17 = vpop.f32.mrb[31].mxu1  ;;  %6962 = vmatmul.mubr.bf16.vlgmr.msra.gmra.mrb[36].mxu0 %v5884_v14  ;;  %7003 = vmatmul.mubr.bf16.vlgmr.msra.gmra.mrb[40].mxu1 %v5886_v4  ;;  %v5856_v47 = vmax.f32 %v5629_v54, 0.0  ;;  %v5858_v51 = vmax.f32 %v5672_v1, 0.0  ;;  %v9136_v20 = vld [vmem:[%s9425_s30 + $0x198] sm:$0xff]  }
0x11aa   : > { %v5635_v7 = vadd.f32 %v5634_v60, %v5288_v12  ;;  %v5678_v31 = vadd.f32 %v5677_v17, %v5296_v49  ;;  %8385 = vmatpush3.bf16.msra.mxu0 %v9123_v58  ;;  %8407 = vmatpush3.bf16.msra.mxu1 %v9124_v56  ;;  %v5857_v45 = vmax.f32 %v5631_v16, 0.0  ;;  %v5859_v41 = vmax.f32 %v5674_v23, 0.0  ;;  %v9131_v12 = vld [vmem:[%s9425_s30 + $0x110] sm:$0xff]  }
0x11ab   : > { %v5872_v32 = vmax.f32 %v5633_v0, 0.0  ;;  %v5874_v11 = vmax.f32 %v5676_v44, 0.0  ;;  %8386 = vmatprep.subr.bf16.mxu0 %v9125_v63  ;;  %8408 = vmatprep.subr.bf16.mxu1 %v9126_v26  ;;  %v9132_v49 = vld [vmem:[%s9425_s30 + $0x190] sm:$0xff]   ;;  %v5316_v58 = vrot.slane %v10806_v43, %v5283_v2  ;;  %v5320_v56 = vrot.slane %v10806_v43, %v5287_v40  ;;  %v9137_v2 = vld [vmem:[%s9425_s30 + $0x160] sm:$0xff]  }
0x11ac   : > { %v5873_v62 = vmax.f32 %v5635_v7, 0.0  ;;  %v5875_v19 = vmax.f32 %v5678_v31, 0.0  ;;  %v5328_v63 = vrot.slane %v10806_v43, %v5295_v28  ;;  %v9138_v40 = vld [vmem:[%s9425_s30 + $0x1e0] sm:$0xff]  }
0x11ad   : > { %v10845_v36 = vpack.c.bf16 %v5872_v32, %v5856_v47  ;;  %v10847_v46 = vpack.c.bf16 %v5874_v11, %v5858_v51  ;;  %v9140_v7 = vld [vmem:[%s9425_s30 + $0x1a0] sm:$0xff]   ;;  %v9141_v47 = vld [vmem:[%s9425_s30 + $0x168] sm:$0xff]  }
0x11ae   : > { %v5889_v33 = vpack.c.bf16 %v5873_v62, %v5857_v45  ;;  %v5891_v5 = vpack.c.bf16 %v5875_v19, %v5859_v41  ;;  %8387 = vmatpush3.bf16.msra.mxu0 %v9127_v10  ;;  %8409 = vmatpush3.bf16.msra.mxu1 %v9128_v25  ;;  %v5714_v55 = vpop.f32.mrb[28].mxu0  ;;  %v5757_v35 = vpop.f32.mrb[32].mxu1  ;;  %v9142_v51 = vld [vmem:[%s9425_s30 + $0x1e8] sm:$0xff]  }
0x11af   : > { %v5715_v8 = vadd.f32 %v5714_v55, %v5300_v61  ;;  %v5758_v37 = vadd.f32 %v5757_v35, %v5308_v30  ;;  %v5716_v39 = vpop.f32.mrb[29].mxu0  ;;  %v5759_v6 = vpop.f32.mrb[33].mxu1  ;;  %8388 = vmatprep.subr.bf16.mxu0 %v9129_v34  ;;  %8410 = vmatprep.subr.bf16.mxu1 %v9130_v38  ;;  %v9143_v55 = vld [vmem:[%s9425_s30 + $0x128] sm:$0xff]  }
0x11b0   : > { %v5717_v22 = vadd.f32 %v5716_v39, %v5304_v27  ;;  %v5760_v52 = vadd.f32 %v5759_v6, %v5312_v59  ;;  %v5718_v14 = vpop.f32.mrb[30].mxu0  ;;  %v5761_v4 = vpop.f32.mrb[34].mxu1  ;;  %7043 = vmatprep.mubr.bf16.mxu0 %v5889_v33  ;;  %7084 = vmatprep.mubr.bf16.mxu1 %v5891_v5  ;;  %v9144_v35 = vld [vmem:[%s9425_s30 + $0x1a8] sm:$0xff]   ;;  %v9145_v39 = vld [vmem:[%s9425_s30 + $0x170] sm:$0xff]  }
0x11b1   : > { %v5719_v21 = vadd.f32 %v5718_v14, %v5300_v61  ;;  %v5762_v9 = vadd.f32 %v5761_v4, %v5308_v30  ;;  %v5720_v15 = vpop.f32.mrb[31].mxu0  ;;  %v5763_v29 = vpop.f32.mrb[35].mxu1  ;;  %v5860_v26 = vmax.f32 %v5715_v8, 0.0  ;;  %v5862_v61 = vmax.f32 %v5758_v37, 0.0 }
0x11b2   : > { %v5721_v54 = vadd.f32 %v5720_v15, %v5304_v27  ;;  %v5764_v1 = vadd.f32 %v5763_v29, %v5312_v59  ;;  %8389 = vmatpush3.bf16.msra.mxu0 %v9131_v12  ;;  %8411 = vmatpush3.bf16.msra.mxu1 %v9132_v49  ;;  %v5861_v3 = vmax.f32 %v5717_v22, 0.0  ;;  %v5863_v50 = vmax.f32 %v5760_v52, 0.0  ;;  %v9139_v27 = vld [vmem:[%s9425_s30 + $0x120] sm:$0xff]   ;;  %v9148_v15 = vld [vmem:[%s9425_s30 + $0x1b0] sm:$0xff]   ;;  %v9149_v29 = vld [vmem:[%s9425_s30 + $0x178] sm:$0xff]  }
0x11b3   : > { %v5876_v16 = vmax.f32 %v5719_v21, 0.0  ;;  %v5878_v23 = vmax.f32 %v5762_v9, 0.0  ;;  %8390 = vmatprep.subr.bf16.mxu0 %v9133_v24  ;;  %8412 = vmatprep.subr.bf16.mxu1 %v9134_v57  ;;  %v9147_v9 = vld [vmem:[%s9425_s30 + $0x130] sm:$0xff]  }
0x11b4   : > { %v5877_v30 = vmax.f32 %v5721_v54, 0.0  ;;  %v5879_v0 = vmax.f32 %v5764_v1, 0.0  ;;  %v9152_v54 = vld [vmem:[%s9425_s30 + $0x1b8] sm:$0xff]   ;;  %v9153_v1 = vld [vmem:[%s9425_s30 + $0x240] sm:$0xff]  }
0x11b5   : > { %v10866_v44 = vpack.c.bf16 %v5876_v16, %v5860_v26  ;;  %v10868_v48 = vpack.c.bf16 %v5878_v23, %v5862_v61  ;;  %v9157_v26 = vld [vmem:[%s9425_s30 + $0x248] sm:$0xff]  }
0x11b6   : > { %v10870_v43 = vpack.c.bf16 %v5877_v30, %v5861_v3  ;;  %v10872_v28 = vpack.c.bf16 %v5879_v0, %v5863_v50  ;;  %8391 = vmatpush3.bf16.msra.mxu0 %v9135_v13  ;;  %8413 = vmatpush3.bf16.msra.mxu1 %v9136_v20  ;;  %v5800_v60 = vpop.f32.mrb[32].mxu0  ;;  %v5843_v17 = vpop.f32.mrb[36].mxu1  ;;  %v9154_v13 = vld [vmem:[%s9425_s30 + $0x2c0] sm:$0xff]   ;;  %v9158_v61 = vld [vmem:[%s9425_s30 + $0x2c8] sm:$0xff]   ;;  %v9165_v3 = vld [vmem:[%s9425_s30 + $0x258] sm:$0xff]  }
0x11b7   : > { %v5801_v31 = vadd.f32 %v5800_v60, %v5316_v58  ;;  %v5844_v10 = vadd.f32 %v5843_v17, %v10809_v18  ;;  %v5802_v25 = vpop.f32.mrb[33].mxu0  ;;  %v5845_v59 = vpop.f32.mrb[37].mxu1  ;;  %8392 = vmatprep.subr.bf16.mxu0 %v9137_v2  ;;  %8414 = vmatprep.subr.bf16.mxu1 %v9138_v40  ;;  %v9155_v20 = vld [vmem:[%s9425_s30 + $0x200] sm:$0xff]   ;;  %v9159_v16 = vld [vmem:[%s9425_s30 + $0x208] sm:$0xff]   ;;  %v9161_v2 = vld [vmem:[%s9425_s30 + $0x250] sm:$0xff]  }
0x11b8   : > { %v5803_v32 = vadd.f32 %v5802_v25, %v5320_v56  ;;  %v5846_v11 = vadd.f32 %v5845_v59, %v5328_v63  ;;  %v5804_v34 = vpop.f32.mrb[34].mxu0  ;;  %v5847_v38 = vpop.f32.mrb[38].mxu1  ;;  %v9160_v23 = vld [vmem:[%s9425_s30 + $0x288] sm:$0xff]   ;;  %v9164_v40 = vld [vmem:[%s9425_s30 + $0x290] sm:$0xff]   ;;  %v9166_v50 = vld [vmem:[%s9425_s30 + $0x2d8] sm:$0xff]  }
0x11b9   : > { %v5805_v45 = vadd.f32 %v5804_v34, %v5316_v58  ;;  %v5848_v41 = vadd.f32 %v5847_v38, %v10809_v18  ;;  %v5806_v62 = vpop.f32.mrb[35].mxu0  ;;  %v5849_v19 = vpop.f32.mrb[39].mxu1  ;;  %v5864_v12 = vmax.f32 %v5801_v31, 0.0  ;;  %v5866_v49 = vmax.f32 %v5844_v10, 0.0  ;;  %v9146_v18 = vld [vmem:[%s9425_s30 + $0x1f0] sm:$0xff]   ;;  %v9150_v58 = vld [vmem:[%s9425_s30 + $0x1f8] sm:$0xff]  }
0x11ba   : > { %v5807_v33 = vadd.f32 %v5806_v62, %v5320_v56  ;;  %v5850_v5 = vadd.f32 %v5849_v19, %v5328_v63  ;;  %8393 = vmatpush3.bf16.msra.mxu0 %v9139_v27  ;;  %8415 = vmatpush3.bf16.msra.mxu1 %v9140_v7  ;;  %v5865_v6 = vmax.f32 %v5803_v32, 0.0  ;;  %v5867_v24 = vmax.f32 %v5846_v11, 0.0  ;;  %v9151_v56 = vld [vmem:[%s9425_s30 + $0x138] sm:$0xff]   ;;  %v9156_v63 = vld [vmem:[%s9425_s30 + $0x280] sm:$0xff]   ;;  %v9173_v27 = vld [vmem:[%s9425_s30 + $0x268] sm:$0xff]  }
0x11bb   : > { %v5880_v8 = vmax.f32 %v5805_v45, 0.0  ;;  %v5882_v37 = vmax.f32 %v5848_v41, 0.0  ;;  %8394 = vmatprep.subr.bf16.mxu0 %v9141_v47  ;;  %8416 = vmatprep.subr.bf16.mxu1 %v9142_v51  ;;  %v9167_v30 = vld [vmem:[%s9425_s30 + $0x218] sm:$0xff]   ;;  %v9171_v60 = vld [vmem:[%s9425_s30 + $0x220] sm:$0xff]   ;;  %v9174_v7 = vld [vmem:[%s9425_s30 + $0x2e8] sm:$0xff]  }
0x11bc   : > { %v5881_v57 = vmax.f32 %v5807_v33, 0.0  ;;  %v5883_v22 = vmax.f32 %v5850_v5, 0.0  ;;  %v9168_v0 = vld [vmem:[%s9425_s30 + $0x298] sm:$0xff]   ;;  %v9172_v17 = vld [vmem:[%s9425_s30 + $0x2a0] sm:$0xff]   ;;  %v9175_v31 = vld [vmem:[%s9425_s30 + $0x228] sm:$0xff]  }
0x11bd   : > { %v10884_v52 = vpack.c.bf16 %v5880_v8, %v5864_v12  ;;  %v10886_v14 = vpack.c.bf16 %v5882_v37, %v5866_v49  ;;  %v9176_v10 = vld [vmem:[%s9425_s30 + $0x2a8] sm:$0xff]   ;;  %v9177_v25 = vld [vmem:[%s9425_s30 + $0x270] sm:$0xff]   ;;  %v9181_v32 = vld [vmem:[%s9425_s30 + $0x278] sm:$0xff]  }
0x11be   : > { %v10888_v4 = vpack.c.bf16 %v5881_v57, %v5865_v6  ;;  %v10890_v21 = vpack.c.bf16 %v5883_v22, %v5867_v24  ;;  %8395 = vmatpush3.bf16.msra.mxu0 %v9143_v55  ;;  %8417 = vmatpush3.bf16.msra.mxu1 %v9144_v35  ;;  %v9178_v59 = vld [vmem:[%s9425_s30 + $0x2f0] sm:$0xff]   ;;  %v9182_v11 = vld [vmem:[%s9425_s30 + $0x2f8] sm:$0xff]   ;;  %v9185_v45 = vld [vmem:[%s9425_s30 + $0x340] sm:$0xff]  }
0x11bf   : > { %8396 = vmatprep.subr.bf16.mxu0 %v9145_v39  ;;  %8418 = vmatprep.subr.bf16.mxu1 %v9146_v18  ;;  %v9179_v47 = vld [vmem:[%s9425_s30 + $0x230] sm:$0xff]   ;;  %v9183_v34 = vld [vmem:[%s9425_s30 + $0x238] sm:$0xff]   ;;  %v9186_v41 = vld [vmem:[%s9425_s30 + $0x3c0] sm:$0xff]  }
0x11c0   : > { %v9180_v51 = vld [vmem:[%s9425_s30 + $0x2b0] sm:$0xff]   ;;  %v9184_v38 = vld [vmem:[%s9425_s30 + $0x2b8] sm:$0xff]   ;;  %v9187_v62 = vld [vmem:[%s9425_s30 + $0x300] sm:$0xff]  }
0x11c1   : > { %v9188_v19 = vld [vmem:[%s9425_s30 + $0x380] sm:$0xff]   ;;  %v9189_v33 = vld [vmem:[%s9425_s30 + $0x348] sm:$0xff]   ;;  %v9193_v12 = vld [vmem:[%s9425_s30 + $0x350] sm:$0xff]  }
0x11c2   : > { %8397 = vmatpush3.bf16.msra.mxu0 %v9147_v9  ;;  %8419 = vmatpush3.bf16.msra.mxu1 %v9148_v15  ;;  %v9190_v5 = vld [vmem:[%s9425_s30 + $0x3c8] sm:$0xff]   ;;  %v9196_v49 = vld [vmem:[%s9425_s30 + $0x390] sm:$0xff]   ;;  %v9197_v8 = vld [vmem:[%s9425_s30 + $0x358] sm:$0xff]  }
0x11c3   : > { %8398 = vmatprep.subr.bf16.mxu0 %v9149_v29  ;;  %8420 = vmatprep.subr.bf16.mxu1 %v9150_v58  ;;  %v9191_v55 = vld [vmem:[%s9425_s30 + $0x308] sm:$0xff]   ;;  %v9198_v37 = vld [vmem:[%s9425_s30 + $0x3d8] sm:$0xff]   ;;  %v9201_v6 = vld [vmem:[%s9425_s30 + $0x360] sm:$0xff]  }
0x11c4   : > { %v9192_v35 = vld [vmem:[%s9425_s30 + $0x388] sm:$0xff]   ;;  %v9199_v39 = vld [vmem:[%s9425_s30 + $0x318] sm:$0xff]   ;;  %v9202_v24 = vld [vmem:[%s9425_s30 + $0x3e0] sm:$0xff]  }
0x11c5   : > { %v9200_v18 = vld [vmem:[%s9425_s30 + $0x398] sm:$0xff]   ;;  %v9203_v57 = vld [vmem:[%s9425_s30 + $0x320] sm:$0xff]   ;;  %v9207_v9 = vld [vmem:[%s9425_s30 + $0x328] sm:$0xff]  }
0x11c6   : > { %8399 = vmatpush3.bf16.msra.mxu0 %v9151_v56  ;;  %8421 = vmatpush3.bf16.msra.mxu1 %v9152_v54  ;;  %v9204_v22 = vld [vmem:[%s9425_s30 + $0x3a0] sm:$0xff]   ;;  %v9208_v15 = vld [vmem:[%s9425_s30 + $0x3a8] sm:$0xff]   ;;  %v9209_v29 = vld [vmem:[%s9425_s30 + $0x370] sm:$0xff]  }
0x11c7   : > { %8428 = vmatprep.subr.bf16.mxu0 %v9153_v1  ;;  %8450 = vmatprep.subr.bf16.mxu1 %v9154_v13  ;;  %v9210_v58 = vld [vmem:[%s9425_s30 + $0x3f0] sm:$0xff]   ;;  %v9213_v1 = vld [vmem:[%s9425_s30 + $0x378] sm:$0xff]  }
0x11c8   : > { %v9211_v56 = vld [vmem:[%s9425_s30 + $0x330] sm:$0xff]   ;;  %v9214_v13 = vld [vmem:[%s9425_s30 + $0x3f8] sm:$0xff]  }
0x11c9   : > { %7044 = vmatmul.mubr.bf16.vlgmr.msra.gmra.mrb[40].mxu0 %v10845_v36  ;;  %7085 = vmatmul.mubr.bf16.vlgmr.msra.gmra.mrb[44].mxu1 %v10847_v46  ;;  %v9162_v36 = vld [vmem:[%s9425_s30 + $0x2d0] sm:$0xff]  }
0x11ca   : > { %8429 = vmatpush3.bf16.msra.mxu0 %v9155_v20  ;;  %7125 = vmatprep.mubr.bf16.mxu0 %v10870_v43  ;;  %v9163_v46 = vld [vmem:[%s9425_s30 + $0x210] sm:$0xff]   ;;  %v9169_v43 = vld [vmem:[%s9425_s30 + $0x260] sm:$0xff]   ;;  %v9215_v20 = vld [vmem:[%s9425_s30 + $0x338] sm:$0xff]  }
0x11cb   : > { %8451 = vmatpush3.bf16.msra.mxu1 %v9156_v63  ;;  %7166 = vmatprep.mubr.bf16.mxu1 %v10872_v28  ;;  %v9170_v28 = vld [vmem:[%s9425_s30 + $0x2e0] sm:$0xff]   ;;  %v9212_v54 = vld [vmem:[%s9425_s30 + $0x3b0] sm:$0xff]   ;;  %v9216_v63 = vld [vmem:[%s9425_s30 + $0x3b8] sm:$0xff]  }
0x11cc   : > { %8430 = vmatprep.subr.bf16.mxu0 %v9157_v26  ;;  %8452 = vmatprep.subr.bf16.mxu1 %v9158_v61 }
0x11ce   : > { %8431 = vmatpush3.bf16.msra.mxu0 %v9159_v16  ;;  %v7851_v16 = vld [vmem:[%s9420_s27 + $0x6] ss:$0 sm:$0xff] }
0x11cf   : > { %8453 = vmatpush3.bf16.msra.mxu1 %v9160_v23  ;;  %8432 = vmatprep.subr.bf16.mxu0 %v9161_v2 }
0x11d0   : > { %8454 = vmatprep.subr.bf16.mxu1 %v9162_v36 }
0x11d2   : > { %8433 = vmatpush3.bf16.msra.mxu0 %v9163_v46 }
0x11d3   : > { %8455 = vmatpush3.bf16.msra.mxu1 %v9164_v40  ;;  %8434 = vmatprep.subr.bf16.mxu0 %v9165_v3 }
0x11d4   : > { %8456 = vmatprep.subr.bf16.mxu1 %v9166_v50 }
0x11d6   : > { %8435 = vmatpush3.bf16.msra.mxu0 %v9167_v30 }
0x11d7   : > { %8457 = vmatpush3.bf16.msra.mxu1 %v9168_v0  ;;  %8436 = vmatprep.subr.bf16.mxu0 %v9169_v43 }
0x11d8   : > { %8458 = vmatprep.subr.bf16.mxu1 %v9170_v28 }
0x11da   : > { %8437 = vmatpush3.bf16.msra.mxu0 %v9171_v60 }
0x11db   : > { %8459 = vmatpush3.bf16.msra.mxu1 %v9172_v17  ;;  %8438 = vmatprep.subr.bf16.mxu0 %v9173_v27 }
0x11dc   : > { %8460 = vmatprep.subr.bf16.mxu1 %v9174_v7 }
0x11de   : > { %8439 = vmatpush3.bf16.msra.mxu0 %v9175_v31 }
0x11df   : > { %8461 = vmatpush3.bf16.msra.mxu1 %v9176_v10  ;;  %8440 = vmatprep.subr.bf16.mxu0 %v9177_v25 }
0x11e0   : > { %8462 = vmatprep.subr.bf16.mxu1 %v9178_v59 }
0x11e2   : > { %8441 = vmatpush3.bf16.msra.mxu0 %v9179_v47 }
0x11e3   : > { %8463 = vmatpush3.bf16.msra.mxu1 %v9180_v51  ;;  %8442 = vmatprep.subr.bf16.mxu0 %v9181_v32 }
0x11e4   : > { %8464 = vmatprep.subr.bf16.mxu1 %v9182_v11 }
0x11e6   : > { %8443 = vmatpush3.bf16.msra.mxu0 %v9183_v34 }
0x11e7   : > { %8465 = vmatpush3.bf16.msra.mxu1 %v9184_v38  ;;  %8472 = vmatprep.subr.bf16.mxu0 %v9185_v45 }
0x11e8   : > { %8494 = vmatprep.subr.bf16.mxu1 %v9186_v41 }
0x11e9   : > { %7126 = vmatmul.mubr.bf16.vlgmr.msra.gmra.mrb[44].mxu0 %v10866_v44  ;;  %v9194_v44 = vld [vmem:[%s9425_s30 + $0x3d0] sm:$0xff]  }
0x11ea   : > { %7167 = vmatmul.mubr.bf16.vlgmr.msra.gmra.mrb[48].mxu1 %v10868_v48  ;;  %8473 = vmatpush3.bf16.msra.mxu0 %v9187_v62  ;;  %v9195_v48 = vld [vmem:[%s9425_s30 + $0x310] sm:$0xff]  }
0x11eb   : > { %7207 = vmatprep.mubr.bf16.mxu0 %v10888_v4  ;;  %8495 = vmatpush3.bf16.msra.mxu1 %v9188_v19  ;;  %v9205_v4 = vld [vmem:[%s9425_s30 + $0x368] sm:$0xff]  }
0x11ec   : > { %7248 = vmatprep.mubr.bf16.mxu1 %v10890_v21  ;;  %8474 = vmatprep.subr.bf16.mxu0 %v9189_v33  ;;  %v9206_v21 = vld [vmem:[%s9425_s30 + $0x3e8] sm:$0xff]  }
0x11ed   : > { %8496 = vmatprep.subr.bf16.mxu1 %v9190_v5 }
0x11ee   : > { %8475 = vmatpush3.bf16.msra.mxu0 %v9191_v55 }
0x11ef   : > { %8497 = vmatpush3.bf16.msra.mxu1 %v9192_v35  ;;  %8476 = vmatprep.subr.bf16.mxu0 %v9193_v12 }
0x11f0   : > { %8498 = vmatprep.subr.bf16.mxu1 %v9194_v44 }
0x11f2   : > { %8477 = vmatpush3.bf16.msra.mxu0 %v9195_v48 }
0x11f3   : > { %8499 = vmatpush3.bf16.msra.mxu1 %v9196_v49  ;;  %8478 = vmatprep.subr.bf16.mxu0 %v9197_v8 }
0x11f4   : > { %8500 = vmatprep.subr.bf16.mxu1 %v9198_v37 }
0x11f6   : > { %8479 = vmatpush3.bf16.msra.mxu0 %v9199_v39 }
0x11f7   : > { %8501 = vmatpush3.bf16.msra.mxu1 %v9200_v18  ;;  %8480 = vmatprep.subr.bf16.mxu0 %v9201_v6 }
0x11f8   : > { %8502 = vmatprep.subr.bf16.mxu1 %v9202_v24 }
0x11fa   : > { %8481 = vmatpush3.bf16.msra.mxu0 %v9203_v57 }
0x11fb   : > { %8503 = vmatpush3.bf16.msra.mxu1 %v9204_v22  ;;  %8482 = vmatprep.subr.bf16.mxu0 %v9205_v4 }
0x11fc   : > { %8504 = vmatprep.subr.bf16.mxu1 %v9206_v21 }
0x11fe   : > { %8483 = vmatpush3.bf16.msra.mxu0 %v9207_v9 }
0x11ff   : > { %8505 = vmatpush3.bf16.msra.mxu1 %v9208_v15  ;;  %8484 = vmatprep.subr.bf16.mxu0 %v9209_v29 }
0x1200   : > { %8506 = vmatprep.subr.bf16.mxu1 %v9210_v58 }
0x1202   : > { %8485 = vmatpush3.bf16.msra.mxu0 %v9211_v56 }
0x1203   : > { %8507 = vmatpush3.bf16.msra.mxu1 %v9212_v54  ;;  %8486 = vmatprep.subr.bf16.mxu0 %v9213_v1 }
0x1204   : > { %8508 = vmatprep.subr.bf16.mxu1 %v9214_v13 }
0x1206   : > { %8487 = vmatpush3.bf16.msra.mxu0 %v9215_v20 }
0x1207   : > { %8509 = vmatpush3.bf16.msra.mxu1 %v9216_v63 }
0x1209   : > { %7208 = vmatmul.mubr.bf16.vlgmr.msra.gmra.mrb[48].mxu0 %v10884_v52 }
0x120a   : > { %7249 = vmatmul.mubr.bf16.vlgmr.msra.gmra.mrb[52].mxu1 %v10886_v14 }
0x127c   : > { %v8356_v26 = vpop.f32.mrb[36].mxu0  ;;  %v8378_v61 = vpop.f32.mrb[40].mxu1 }
0x127d   : > { %v8357_v23 = vpop.f32.mrb[37].mxu0  ;;  %v8379_v2 = vpop.f32.mrb[41].mxu1 }
0x127e   : > { %v8358_v36 = vadd.f32 %v8357_v23, %v8356_v26  ;;  %v8380_v46 = vadd.f32 %v8379_v2, %v8378_v61  ;;  %v8359_v40 = vpop.f32.mrb[38].mxu0  ;;  %v8381_v3 = vpop.f32.mrb[42].mxu1 }
0x127f   : > { %v8360_v50 = vpop.f32.mrb[39].mxu0  ;;  %v8382_v30 = vpop.f32.mrb[43].mxu1 }
0x1280   : > { %v6964_v0 = vadd.f32 %v8358_v36, %v7851_v16  ;;  %v8361_v43 = vadd.f32 %v8360_v50, %v8359_v40  ;;  %v8383_v28 = vadd.f32 %v8382_v30, %v8381_v3 }
0x1282   : > { %v7005_v60 = vadd.f32 %v8380_v46, %v6964_v0  ;;  %v6967_v17 = vadd.f32 %v8361_v43, %v7851_v16 }
0x1284   : > { %v7008_v27 = vadd.f32 %v8383_v28, %v6967_v17 }
0x129c   : > { %v8400_v52 = vpop.f32.mrb[40].mxu0  ;;  %v8422_v7 = vpop.f32.mrb[44].mxu1 }
0x129d   : > { %v8401_v14 = vpop.f32.mrb[41].mxu0  ;;  %v8423_v31 = vpop.f32.mrb[45].mxu1 }
0x129e   : > { %v8402_v10 = vadd.f32 %v8401_v14, %v8400_v52  ;;  %v8424_v25 = vadd.f32 %v8423_v31, %v8422_v7  ;;  %v8403_v59 = vpop.f32.mrb[42].mxu0  ;;  %v8425_v47 = vpop.f32.mrb[46].mxu1 }
0x129f   : > { %v8404_v51 = vpop.f32.mrb[43].mxu0  ;;  %v8426_v32 = vpop.f32.mrb[47].mxu1 }
0x12a0   : > { %v7046_v11 = vadd.f32 %v8402_v10, %v7005_v60  ;;  %v8405_v34 = vadd.f32 %v8404_v51, %v8403_v59  ;;  %v8427_v38 = vadd.f32 %v8426_v32, %v8425_v47  ;;  %v7981_v51 = vld [vmem:[%s9420_s27 + $0x8] ss:$0 sm:$0xff] }
0x12a2   : > { %v7087_v45 = vadd.f32 %v8424_v25, %v7046_v11  ;;  %v7049_v41 = vadd.f32 %v8405_v34, %v7008_v27  ;;  %v7980_v25 = vld [vmem:[%s9420_s27 + $0x7] ss:$0 sm:$0xff] }
0x12a4   : > { %v7090_v62 = vadd.f32 %v8427_v38, %v7049_v41  ;;  %v9259_v41 = vld [vmem:[%s11030_s10] sm:$0xff] (!%p7982_p5)  }
0x12bc   : > { %v8444_v19 = vpop.f32.mrb[44].mxu0 }
0x12bd   : > { %v8466_v33 = vpop.f32.mrb[48].mxu1  ;;  %v8445_v5 = vpop.f32.mrb[45].mxu0 }
0x12be   : > { %v8446_v55 = vadd.f32 %v8445_v5, %v8444_v19  ;;  %v8467_v35 = vpop.f32.mrb[49].mxu1  ;;  %v8447_v12 = vpop.f32.mrb[46].mxu0  ;;  %v9260_v19 = vld [vmem:[%s11030_s10 + $0x8] sm:$0xff] (!%p7982_p5)  }
0x12bf   : > { %v8468_v44 = vadd.f32 %v8467_v35, %v8466_v33  ;;  %v8469_v48 = vpop.f32.mrb[50].mxu1  ;;  %v8448_v49 = vpop.f32.mrb[47].mxu0  ;;  %v7983_v35 = vld [vmem:[%s11031_s11] ss:$0 sm:$0xff] (!%p7982_p5) }
0x12c0   : > { %v7128_v8 = vadd.f32 %v8446_v55, %v7087_v45  ;;  %v8449_v37 = vadd.f32 %v8448_v49, %v8447_v12  ;;  %v8470_v39 = vpop.f32.mrb[51].mxu1 }
0x12c1   : > { %v8471_v18 = vadd.f32 %v8470_v39, %v8469_v48 }
0x12c2   : > { %v7169_v6 = vadd.f32 %v8468_v44, %v7128_v8  ;;  %v7131_v24 = vadd.f32 %v8449_v37, %v7090_v62  ;;  %v9317_v62 = vmov (!%p7982_p5), 0.0  }
0x12c3   : > { %8875 = vmatprep.subr.bf16.mxu0 (!%p7982_p5), %v9317_v62  ;;  %8879 = vmatprep.mubr.msk.bf16.mxu0 (!%p7982_p5), %vm9318_vm9, %v9317_v62 }
0x12c4   : > { %v7172_v57 = vadd.f32 %v8471_v18, %v7131_v24  ;;  %8876 = vmatpush3.bf16.msra.mxu0 (!%p7982_p5), %v9259_v41 }
0x12c5   : > { %8877 = vmatprep.subr.bf16.mxu0 (!%p7982_p5), %v9317_v62 }
0x12c8   : > { %8878 = vmatpush3.bf16.msra.mxu0 (!%p7982_p5), %v9260_v19 }
0x12dc   : > { %v8488_v22 = vpop.f32.mrb[48].mxu0 }
0x12dd   : > { %v8510_v4 = vpop.f32.mrb[52].mxu1  ;;  %v8489_v21 = vpop.f32.mrb[49].mxu0 }
0x12de   : > { %v8490_v9 = vadd.f32 %v8489_v21, %v8488_v22  ;;  %v8511_v15 = vpop.f32.mrb[53].mxu1  ;;  %v8491_v29 = vpop.f32.mrb[50].mxu0 }
0x12df   : > { %v8512_v58 = vadd.f32 %v8511_v15, %v8510_v4  ;;  %v8513_v56 = vpop.f32.mrb[54].mxu1  ;;  %v8492_v54 = vpop.f32.mrb[51].mxu0 }
0x12e0   : > { %v7210_v1 = vadd.f32 %v8490_v9, %v7169_v6  ;;  %v8493_v13 = vadd.f32 %v8492_v54, %v8491_v29  ;;  %v8514_v20 = vpop.f32.mrb[55].mxu1 }
0x12e1   : > { %v8515_v63 = vadd.f32 %v8514_v20, %v8513_v56 }
0x12e2   : > { %v7251_v26 = vadd.f32 %v8512_v58, %v7210_v1  ;;  %v7213_v61 = vadd.f32 %v8493_v13, %v7172_v57 }
0x12e4   : > { %v7254_v16 = vadd.f32 %v8515_v63, %v7213_v61  ;;  %v7257_v23 = vadd.f32 %v7251_v26, %v10721_v53 }
0x12e6   : > { %v7259_v2 = vsel %vm3669_vm4, %v7257_v23, 0.0  ;;  %v7258_v36 = vadd.f32 %v7254_v16, %v10723_v42 }
0x12e7   : > { %7260 = vadd.xlane.f32.xlu0 %v7259_v2 }
0x12e8   : > { %v7262_v46 = vsel %vm3669_vm4, %v7258_v36, 0.0 }
0x12e9   : > { %7263 = vadd.xlane.f32.xlu1 %v7262_v46 }
0x1374   : > { %v7261_v40 = vpop.xlane.xlu0 %7260 }
0x1375   : > { %v7265_v3 = vmul.f32 0.03125, %v7261_v40 }
0x1376   : > { %v7264_v50 = vpop.xlane.xlu1 %7263 }
0x1377   : > { %v7267_v30 = vsub.f32 %v7257_v23, %v7265_v3  ;;  %v7266_v0 = vmul.f32 0.03125, %v7264_v50 }
0x1379   : > { %v7268_v43 = vsub.f32 %v7258_v36, %v7266_v0  ;;  %v7269_v28 = vmul.f32 %v7267_v30, %v7267_v30 }
0x137b   : > { %v7271_v60 = vsel %vm3669_vm4, %v7269_v28, 0.0  ;;  %v7270_v17 = vmul.f32 %v7268_v43, %v7268_v43 }
0x137c   : > { %7272 = vadd.xlane.f32.xlu0 %v7271_v60 }
0x137d   : > { %v7274_v53 = vsel %vm3669_vm4, %v7270_v17, 0.0 }
0x137e   : > { %7275 = vadd.xlane.f32.xlu1 %v7274_v53 }
0x1409   : > { %v7273_v42 = vpop.xlane.xlu0 %7272 }
0x140a   : > { %v7277_v27 = vmul.f32 0.03125, %v7273_v42 }
0x140b   : > { %v7276_v52 = vpop.xlane.xlu1 %7275 }
0x140c   : > { %v7279_v7 = vadd.f32 1e-05, %v7277_v27  ;;  %v7278_v14 = vmul.f32 0.03125, %v7276_v52 }
0x140e   : > { %9253 = vrsqrt.f32 %v7279_v7  ;;  %v7280_v31 = vadd.f32 1e-05, %v7278_v14 }
0x1410   : > { %9255 = vrsqrt.f32 %v7280_v31 }
0x1418   : > { %v9254_v10 = vpop.eup %9253 }
0x1419   : > { %v7283_v59 = vmul.f32 %v9254_v10, %v7267_v30 }
0x141a   : > { %v9256_v47 = vpop.eup %9255 }
0x141b   : > { %v7290_v32 = vmul.f32 %v7980_v25, %v7283_v59  ;;  %v7284_v11 = vmul.f32 %v9256_v47, %v7268_v43  ;;  %7304 = sbr.rel (%p7982_p5) target bundleno = 5373 (0x14fd), region = 76 }
0x141d   : > { %v7297_v34 = vadd.f32 %v7981_v51, %v7290_v32  ;;  %v7291_v38 = vmul.f32 %v7980_v25, %v7284_v11 }
0x141f   : > { %7299 = vst.msk [vmem:[#allocation2] sm:$0xff] %vm3669_vm4, %v7297_v34  ;;  %v7298_v45 = vadd.f32 %v7981_v51, %v7291_v38 }
0x1421   : > { %7300 = vst.msk [vmem:[#allocation2 + $0x8] sm:$0xff] %vm3669_vm4, %v7298_v45  ;;  %v7306_v33 = vrot.slane (!%p7982_p5), %v7298_v45, 7 }
0x1423   : > { %v7309_v5 = vsel %vm7308_vm10, %v7297_v34, %v7306_v33 }
0x1424   : > { %v7310_v55 = vpack.c.bf16 %v7309_v5, %v7309_v5 }
0x1426   : > { %8880 = vmatmul.mubr.msk.bf16.vlgmr.msra.gmra.mrb[0].mxu0 %vm3669_vm4, %v7310_v55 }
0x14f9   : > { %v7371_v12 = vpop.f32.mrb[0].mxu0 }
0x14fa   : > { %v7372_v44 = vadd.f32 %v7983_v35, %v7371_v12  ;;  %v8881_v48 = vpop.f32.mrb[1].mxu0 }
0x14fb   : > { %v7374_v49 = vpop.f32.mrb[2].mxu0 }
0x14fc   : > { %7377 = vst [vmem:[#allocation3] sm:$0x3] %v7372_v44  ;;  %v8882_v8 = vpop.f32.mrb[3].mxu0 }
0x14fd PF: > { %p8891_p6 = scmp.eq.s32.totalorder %s9391_s22, 1  ;;  %s9319_s25 = smov [#allocation3]  }
0x14fe   : > { %s7385_s14 = sshll.u32 %s9319_s25, 4  ;;  %s7386_s14 = int_to_ptr.vmem [resolvable:$true] %s7385_s14 }
0x14ff   : > { %s9261_s15 = scalar_lea.vmem %s7386_s14, 32  ;;  %p9268_p10 = scmp.lt.s32.totalorder %s7386_s14, %s7386_s14 }
0x1500   : > { %p9262_p7 = scmp.ne.s32.totalorder %s7386_s14, %s9261_s15  ;;  %p9269_p11 = scmp.lt.s32.totalorder %s9261_s15, %s9261_s15 }
0x1502   : > { %p9263_p8 = pnand %p9262_p7, %p8891_p6  ;;  %p9270_p12 = por %p9269_p11, %p9268_p10 }
0x1504   : > { %p9264_p9 = pneg %p9263_p8 }
0x1506   : > { %p9271_p13 = pnand %p9270_p12, %p9264_p9 }
0x1508   : > { %9274 = shalt.err (!%p9271_p13)
}
0x1509   : > { %s9275_s23 = scalar_lea.hbm %s11032_s12, 32 }
0x150a   : > { %p9276_p0 = scmp.ne.s32.totalorder %s11032_s12, %s9275_s23  ;;  %p9281_p3 = scmp.lt.u32.totalorder %s9275_s23, %s11032_s12 }
0x150c   : > { %p9277_p1 = pnand %p9276_p0, %p8891_p6 }
0x150e   : > { %p9278_p2 = pneg %p9277_p1 }
0x1510   : > { %p9283_p4 = pnand %p9281_p3, %p9278_p2 }
0x1512   : > { %9286 = shalt.err (!%p9283_p4)
}
0x1513   : > { %8888 = dma.vmem_to_hbm [thread:$0]  (%p8891_p6), %s7386_s14, 32, %s11032_s12, [#allocation4]  }
0x1514   : > { %9292 = dma.done.wait (%p8891_p6), [#allocation4], 32  }
0x1515   : > { %9294 = vsyncadd (%p8891_p6), [#allocation4], 4294967264 }
0x1516 PF: > { %s11041_s13 = sld [smem:[#allocation6_spill]] }
0x151c   : > { %s23_s21 = sadd.s32 1, %s11041_s13  }
0x151d   : > { %p20_p5 = scmp.ge.s32.totalorder %s23_s21, 4  }
0x151f   :  { %22 = sbr.rel (!%p20_p5) target bundleno = 3 (0x3), region = 118 }
0x1526   :  { %7398 = vsyncpa [#allocation4], 1 }
0x1527   :  { %7400 = vsyncpa [#allocation4 + $0x1], 1 }

</bundles_post_ra>
